<compile_context>
chip_gen: v5e
topology: v5e:2x2
jax: 0.10.0
libtpu: 0.0.40
codegen_flags: <defaults>
</compile_context>

<pallas_src>
import functools
import math

import jax
import jax.numpy as jnp
from jax.experimental import pallas as pl
from jax.experimental.pallas import tpu as pltpu

EPS = 1e-5  # torch.nn.LayerNorm default


# ---------------------------------------------------------------------------
# in-kernel helpers
# ---------------------------------------------------------------------------
def _layernorm(x, gamma, beta):
    # x: (N, D), gamma/beta: (1, D)
    mu = jnp.mean(x, axis=-1, keepdims=True)
    var = jnp.mean((x - mu) ** 2, axis=-1, keepdims=True)
    return (x - mu) * jax.lax.rsqrt(var + EPS) * gamma + beta


# ---------------------------------------------------------------------------
# fused decoder-layer kernel (one grid step = one batch element)
# ---------------------------------------------------------------------------
def decoder_layer_kernel(
    x_ref, m_ref,
    ln1g_ref, ln1b_ref, qkv1_ref, wout1_ref, bout1_ref,
    ln2g_ref, ln2b_ref, qkv2_ref, fc1_ref, fc2_ref, wout2_ref, bout2_ref,
    ln3g_ref, ln3b_ref, w1_ref, b1_ref, w2_ref, b2_ref,
    o_ref,
    *, heads, dim_head, scale, mx_dtype):

    f32 = jnp.float32

    def dot2(a, b):
        return jnp.dot(a.astype(mx_dtype), b.astype(mx_dtype),
                       preferred_element_type=f32)

    def bmm(eq, a, b):
        return jnp.einsum(eq, a.astype(mx_dtype), b.astype(mx_dtype),
                          preferred_element_type=f32)

    def mha(q, k, v, wout_h):
        # q/k/v: (H, N, d), wout_h: (H, d, D)   (head-batched, no lane slicing)
        dots = bmm('hnd,hmd->hnm', q, k) * scale
        dots = dots - jnp.max(dots, axis=-1, keepdims=True)
        e = jnp.exp(dots)
        p = e * pl.reciprocal(jnp.sum(e, axis=-1, keepdims=True), approx=True)
        o = bmm('hnm,hmd->hnd', p, v)                          # (H, N, d)
        # output projection folded per head, then summed over heads -> (N, D)
        return jnp.sum(bmm('hnd,hde->hne', o, wout_h), axis=0)

    x = x_ref[0]                                               # (N, D)
    m = m_ref[0]
    n_seq, dim = x.shape
    cr = fc1_ref.shape[-1]

    # ---------------- block 1: Residual(PreNorm(Attention)) -----------------
    xn = _layernorm(x, ln1g_ref[...], ln1b_ref[...])
    xb = jnp.broadcast_to(xn[None], (heads, n_seq, dim))       # (H, N, D)
    q = bmm('hnd,hde->hne', xb, qkv1_ref[0])                   # (H, N, d)
    k = bmm('hnd,hde->hne', xb, qkv1_ref[1])
    v = bmm('hnd,hde->hne', xb, qkv1_ref[2])
    x = x + mha(q, k, v, wout1_ref[...]) + bout1_ref[...]

    # ------------- block 2: Residual2(PreNorm2(MixedAttention)) -------------
    xn = _layernorm(x, ln2g_ref[...], ln2b_ref[...])
    mn = _layernorm(m, ln2g_ref[...], ln2b_ref[...])
    xb = jnp.broadcast_to(xn[None], (heads, n_seq, dim))
    mb = jnp.broadcast_to(mn[None], (heads, n_seq, dim))
    q = bmm('hnd,hde->hne', xb, qkv2_ref[0])                   # q from x
    k = bmm('hnd,hde->hne', mb, qkv2_ref[1])                   # k, v from m
    v = bmm('hnd,hde->hne', mb, qkv2_ref[2])

    def channel_gate(t):                                       # t: (H, N, d)
        # ChannelAttention over the flattened (h*d) channel axis.
        # fc1(max)+fc1(avg) == fc1(max+avg)  (fc1 has no bias).
        pooled = (jnp.max(t, axis=1, keepdims=True) +
                  jnp.mean(t, axis=1, keepdims=True))          # (H, 1, d)
        hid = jnp.sum(bmm('hxd,hdc->hxc', pooled, fc1_ref[...]), axis=0)  # (1, cr)
        hid = jnp.maximum(hid, 0.0)
        hidh = jnp.broadcast_to(hid[None], (heads, 1, cr))     # (H, 1, cr)
        gate = jax.nn.sigmoid(bmm('hxc,hcd->hxd', hidh, fc2_ref[...]))    # (H, 1, d)
        return t * gate                                        # broadcast over N

    q = channel_gate(q)
    k = channel_gate(k)
    v = channel_gate(v)
    x = x + mha(q, k, v, wout2_ref[...]) + bout2_ref[...]

    # ---------------- block 3: Residual(PreNorm(FeedForward)) ---------------
    xn = _layernorm(x, ln3g_ref[...], ln3b_ref[...])
    h = dot2(xn, w1_ref[...]) + b1_ref[...]
    h = 0.5 * h * (1.0 + jax.lax.erf(h * (1.0 / math.sqrt(2.0))))  # exact GELU
    x = x + dot2(h, w2_ref[...]) + b2_ref[...]

    o_ref[0] = x.astype(o_ref.dtype)
    # TODO(synk): for long sequences (N >> 128) switch mha() to an online-softmax
    # kv-tiled loop (flash-style) so the (H, N, N) scores never fully materialize.


# ---------------------------------------------------------------------------
# pallas_call wrapper (one fused call per decoder layer)
# ---------------------------------------------------------------------------
def _full_spec(a):
    rank = a.ndim
    return pl.BlockSpec(a.shape, lambda i, r=rank: (0,) * r)


def decoder_layer(x, m, lp, *, heads, dim_head, scale, mx_dtype=jnp.float32):
    B, N, D = x.shape
    kern = functools.partial(decoder_layer_kernel, heads=heads,
                             dim_head=dim_head, scale=scale, mx_dtype=mx_dtype)
    weights = (lp["ln1_g"], lp["ln1_b"], lp["qkv1"], lp["wout1"], lp["bout1"],
               lp["ln2_g"], lp["ln2_b"], lp["qkv2"], lp["fc1"], lp["fc2"],
               lp["wout2"], lp["bout2"],
               lp["ln3_g"], lp["ln3_b"], lp["w1"], lp["b1"], lp["w2"], lp["b2"])
    seq_spec = pl.BlockSpec((1, N, D), lambda i: (i, 0, 0))
    return pl.pallas_call(
        kern,
        out_shape=jax.ShapeDtypeStruct((B, N, D), x.dtype),
        grid=(B,),
        in_specs=[seq_spec, seq_spec] + [_full_spec(w) for w in weights],
        out_specs=seq_spec,
        compiler_params=pltpu.CompilerParams(
            dimension_semantics=("parallel",),      # megacore sharding on v7x
            vmem_limit_bytes=32 * 1024 * 1024,      # explicit, safe on v5e/v6e/v7x
        ),
    )(x, m, *weights)


def transformer_decoder(x, m, params, *, heads, dim_head, dim,
                        mx_dtype=jnp.float32):
    # mask=None path; dropout=0.0 (identity)
    scale = dim ** (-0.5)
    for lp in params:
        x = decoder_layer(x, m, lp, heads=heads, dim_head=dim_head,
                          scale=scale, mx_dtype=mx_dtype)
    return x


# ---------------------------------------------------------------------------
# deterministic parameter construction (torch-layout weights -> kernel layout)
# ---------------------------------------------------------------------------
def make_params(key, depth, dim, heads, dim_head, mlp_dim, reduction_ratio=16):
    inner = heads * dim_head
    cr = inner // reduction_ratio
    layers = []
    for _ in range(depth):
        keys = jax.random.split(key, 11)
        key = keys[-1]

        def w(k, shape, s=0.05):
            return (s * jax.random.normal(k, shape)).astype(jnp.float32)

        wqkv = w(keys[0], (dim, 3 * inner))       # Attention.to_qkv (bias=False)
        wout1 = w(keys[1], (inner, dim))          # Attention.to_out
        wq = w(keys[2], (dim, inner))             # MixedAttention.to_q/k/v
        wk = w(keys[3], (dim, inner))
        wv = w(keys[4], (dim, inner))
        fc1 = w(keys[5], (inner, cr))             # ChannelAttention.fc1 (no bias)
        fc2 = w(keys[6], (cr, inner))             # ChannelAttention.fc2 (no bias)
        wout2 = w(keys[7], (inner, dim))          # MixedAttention.to_out
        w1 = w(keys[8], (dim, mlp_dim))           # FeedForward
        w2 = w(keys[9], (mlp_dim, dim))

        p = {
            # self-attention block
            "ln1_g": jnp.ones((1, dim), jnp.float32),
            "ln1_b": jnp.zeros((1, dim), jnp.float32),
            # head-stacked layouts so the kernel never slices the lane axis:
            "qkv1": wqkv.reshape(dim, 3, heads, dim_head).transpose(1, 2, 0, 3),  # (3,H,D,d)
            "wout1": wout1.reshape(heads, dim_head, dim),                          # (H,d,D)
            "bout1": jnp.zeros((1, dim), jnp.float32),
            # mixed-attention block
            "ln2_g": jnp.ones((1, dim), jnp.float32),
            "ln2_b": jnp.zeros((1, dim), jnp.float32),
            "qkv2": jnp.stack([wq, wk, wv], 0)
                       .reshape(3, dim, heads, dim_head).transpose(0, 2, 1, 3),   # (3,H,D,d)
            "fc1": fc1.reshape(heads, dim_head, cr),                               # (H,d,cr)
            "fc2": fc2.reshape(cr, heads, dim_head).transpose(1, 0, 2),            # (H,cr,d)
            "wout2": wout2.reshape(heads, dim_head, dim),                          # (H,d,D)
            "bout2": jnp.zeros((1, dim), jnp.float32),
            # feed-forward block
            "ln3_g": jnp.ones((1, dim), jnp.float32),
            "ln3_b": jnp.zeros((1, dim), jnp.float32),
            "w1": w1, "b1": jnp.zeros((1, mlp_dim), jnp.float32),
            "w2": w2, "b2": jnp.zeros((1, dim), jnp.float32),
        }
        layers.append(p)
    return layers


if __name__ == "__main__":
    B, N, DIM = 2, 8, 32
    DEPTH, HEADS, DIM_HEAD, MLP_DIM = 2, 2, 16, 64

    key = jax.random.PRNGKey(0)
    kx, km, kp = jax.random.split(key, 3)
    x = jax.random.normal(kx, (B, N, DIM), dtype=jnp.float32)
    m = jax.random.normal(km, (B, N, DIM), dtype=jnp.float32)
    params = make_params(kp, DEPTH, DIM, HEADS, DIM_HEAD, MLP_DIM)

    run = jax.jit(functools.partial(transformer_decoder, heads=HEADS,
                                    dim_head=DIM_HEAD, dim=DIM))
    out = jax.block_until_ready(run(x, m, params))
    assert out.shape == (B, N, DIM) and bool(jnp.all(jnp.isfinite(out)))
    print("KERNEL_OK")
</pallas_src>

<mosaic_0001>
module attributes {stable_mosaic.version = 11 : i64} {
  func.func @decoder_layer_kernel(%arg0: i32, %arg1: memref<1x8x32xf32, #tpu.memory_space<vmem>>, %arg2: memref<1x8x32xf32, #tpu.memory_space<vmem>>, %arg3: memref<1x32xf32, #tpu.memory_space<vmem>>, %arg4: memref<1x32xf32, #tpu.memory_space<vmem>>, %arg5: memref<3x2x32x16xf32, #tpu.memory_space<vmem>>, %arg6: memref<2x16x32xf32, #tpu.memory_space<vmem>>, %arg7: memref<1x32xf32, #tpu.memory_space<vmem>>, %arg8: memref<1x32xf32, #tpu.memory_space<vmem>>, %arg9: memref<1x32xf32, #tpu.memory_space<vmem>>, %arg10: memref<3x2x32x16xf32, #tpu.memory_space<vmem>>, %arg11: memref<2x16x2xf32, #tpu.memory_space<vmem>>, %arg12: memref<2x2x16xf32, #tpu.memory_space<vmem>>, %arg13: memref<2x16x32xf32, #tpu.memory_space<vmem>>, %arg14: memref<1x32xf32, #tpu.memory_space<vmem>>, %arg15: memref<1x32xf32, #tpu.memory_space<vmem>>, %arg16: memref<1x32xf32, #tpu.memory_space<vmem>>, %arg17: memref<32x64xf32, #tpu.memory_space<vmem>>, %arg18: memref<1x64xf32, #tpu.memory_space<vmem>>, %arg19: memref<64x32xf32, #tpu.memory_space<vmem>>, %arg20: memref<1x32xf32, #tpu.memory_space<vmem>>, %arg21: memref<1x8x32xf32, #tpu.memory_space<vmem>>) attributes {dimension_semantics = [#tpu.dimension_semantics<parallel>], iteration_bounds = array<i64: 2>, scalar_prefetch = 0 : i64, scratch_operands = 0 : i64, tpu.core_type = #tpu.core_type<tc>, window_params = [{transform_indices = @transform_0, window_bounds = array<i64: 1, 8, 32>}, {transform_indices = @transform_1, window_bounds = array<i64: 1, 8, 32>}, {pipeline_mode = #tpu.pipeline_mode<synchronous>, transform_indices = @transform_2, window_bounds = array<i64: 1, 32>}, {pipeline_mode = #tpu.pipeline_mode<synchronous>, transform_indices = @transform_3, window_bounds = array<i64: 1, 32>}, {pipeline_mode = #tpu.pipeline_mode<synchronous>, transform_indices = @transform_4, window_bounds = array<i64: 3, 2, 32, 16>}, {pipeline_mode = #tpu.pipeline_mode<synchronous>, transform_indices = @transform_5, window_bounds = array<i64: 2, 16, 32>}, {pipeline_mode = #tpu.pipeline_mode<synchronous>, transform_indices = @transform_6, window_bounds = array<i64: 1, 32>}, {pipeline_mode = #tpu.pipeline_mode<synchronous>, transform_indices = @transform_7, window_bounds = array<i64: 1, 32>}, {pipeline_mode = #tpu.pipeline_mode<synchronous>, transform_indices = @transform_8, window_bounds = array<i64: 1, 32>}, {pipeline_mode = #tpu.pipeline_mode<synchronous>, transform_indices = @transform_9, window_bounds = array<i64: 3, 2, 32, 16>}, {pipeline_mode = #tpu.pipeline_mode<synchronous>, transform_indices = @transform_10, window_bounds = array<i64: 2, 16, 2>}, {pipeline_mode = #tpu.pipeline_mode<synchronous>, transform_indices = @transform_11, window_bounds = array<i64: 2, 2, 16>}, {pipeline_mode = #tpu.pipeline_mode<synchronous>, transform_indices = @transform_12, window_bounds = array<i64: 2, 16, 32>}, {pipeline_mode = #tpu.pipeline_mode<synchronous>, transform_indices = @transform_13, window_bounds = array<i64: 1, 32>}, {pipeline_mode = #tpu.pipeline_mode<synchronous>, transform_indices = @transform_14, window_bounds = array<i64: 1, 32>}, {pipeline_mode = #tpu.pipeline_mode<synchronous>, transform_indices = @transform_15, window_bounds = array<i64: 1, 32>}, {pipeline_mode = #tpu.pipeline_mode<synchronous>, transform_indices = @transform_16, window_bounds = array<i64: 32, 64>}, {pipeline_mode = #tpu.pipeline_mode<synchronous>, transform_indices = @transform_17, window_bounds = array<i64: 1, 64>}, {pipeline_mode = #tpu.pipeline_mode<synchronous>, transform_indices = @transform_18, window_bounds = array<i64: 64, 32>}, {pipeline_mode = #tpu.pipeline_mode<synchronous>, transform_indices = @transform_19, window_bounds = array<i64: 1, 32>}, {transform_indices = @transform_20, window_bounds = array<i64: 1, 8, 32>}]} {
    %c0 = arith.constant 0 : index
    %c0_0 = arith.constant 0 : index
    %c0_1 = arith.constant 0 : index
    %0 = vector.load %arg1[%c0, %c0_0, %c0_1] : memref<1x8x32xf32, #tpu.memory_space<vmem>>, vector<1x8x32xf32>
    %1 = vector.shape_cast %0 : vector<1x8x32xf32> to vector<8x32xf32>
    %c0_2 = arith.constant 0 : index
    %c0_3 = arith.constant 0 : index
    %c0_4 = arith.constant 0 : index
    %2 = vector.load %arg2[%c0_2, %c0_3, %c0_4] : memref<1x8x32xf32, #tpu.memory_space<vmem>>, vector<1x8x32xf32>
    %3 = vector.shape_cast %2 : vector<1x8x32xf32> to vector<8x32xf32>
    %c0_5 = arith.constant 0 : index
    %c0_6 = arith.constant 0 : index
    %4 = vector.load %arg3[%c0_5, %c0_6] : memref<1x32xf32, #tpu.memory_space<vmem>>, vector<1x32xf32>
    %c0_7 = arith.constant 0 : index
    %c0_8 = arith.constant 0 : index
    %5 = vector.load %arg4[%c0_7, %c0_8] : memref<1x32xf32, #tpu.memory_space<vmem>>, vector<1x32xf32>
    %cst = arith.constant dense<0.000000e+00> : vector<8xf32>
    %6 = vector.multi_reduction <add>, %1, %cst [1] : vector<8x32xf32> to vector<8xf32>
    %7 = vector.shape_cast %6 : vector<8xf32> to vector<8x1xf32>
    %cst_9 = arith.constant 3.200000e+01 : f32
    %8 = vector.broadcast %cst_9 : f32 to vector<8x1xf32>
    %9 = arith.divf %7, %8 : vector<8x1xf32>
    %10 = vector.broadcast %9 : vector<8x1xf32> to vector<8x32xf32>
    %11 = arith.subf %1, %10 : vector<8x32xf32>
    %12 = arith.mulf %11, %11 : vector<8x32xf32>
    %cst_10 = arith.constant dense<0.000000e+00> : vector<8xf32>
    %13 = vector.multi_reduction <add>, %12, %cst_10 [1] : vector<8x32xf32> to vector<8xf32>
    %14 = vector.shape_cast %13 : vector<8xf32> to vector<8x1xf32>
    %cst_11 = arith.constant 3.200000e+01 : f32
    %15 = vector.broadcast %cst_11 : f32 to vector<8x1xf32>
    %16 = arith.divf %14, %15 : vector<8x1xf32>
    %17 = vector.broadcast %9 : vector<8x1xf32> to vector<8x32xf32>
    %18 = arith.subf %1, %17 : vector<8x32xf32>
    %cst_12 = arith.constant 9.99999974E-6 : f32
    %19 = vector.broadcast %cst_12 : f32 to vector<8x1xf32>
    %20 = arith.addf %16, %19 : vector<8x1xf32>
    %21 = math.rsqrt %20 : vector<8x1xf32>
    %22 = vector.broadcast %21 : vector<8x1xf32> to vector<8x32xf32>
    %23 = arith.mulf %18, %22 : vector<8x32xf32>
    %24 = vector.broadcast %4 : vector<1x32xf32> to vector<8x32xf32>
    %25 = arith.mulf %23, %24 : vector<8x32xf32>
    %26 = vector.broadcast %5 : vector<1x32xf32> to vector<8x32xf32>
    %27 = arith.addf %25, %26 : vector<8x32xf32>
    %28 = vector.shape_cast %27 : vector<8x32xf32> to vector<1x8x32xf32>
    %29 = vector.shape_cast %28 : vector<1x8x32xf32> to vector<1x8x32xf32>
    %30 = vector.broadcast %29 : vector<1x8x32xf32> to vector<2x8x32xf32>
    %c0_13 = arith.constant 0 : index
    %c0_14 = arith.constant 0 : index
    %c0_15 = arith.constant 0 : index
    %c0_16 = arith.constant 0 : index
    %31 = vector.load %arg5[%c0_13, %c0_14, %c0_15, %c0_16] : memref<3x2x32x16xf32, #tpu.memory_space<vmem>>, vector<1x2x32x16xf32>
    %32 = vector.shape_cast %31 : vector<1x2x32x16xf32> to vector<2x32x16xf32>
    "tpu.trace_start"() <{level = 10 : i32, message = "hnd,hde->hne"}> : () -> ()
    %cst_17 = arith.constant dense<0.000000e+00> : vector<2x8x16xf32>
    %33 = tpu.matmul %30, %32, %cst_17 {dimension_numbers = #tpu.dot_dimension_numbers<[2], [1], [1], [2], [0, 0, 0, 1, 1, 2], [0], [0]>} : vector<2x8x32xf32>, vector<2x32x16xf32>, vector<2x8x16xf32> -> vector<2x8x16xf32>
    "tpu.trace_stop"() : () -> ()
    %c1 = arith.constant 1 : index
    %c0_18 = arith.constant 0 : index
    %c0_19 = arith.constant 0 : index
    %c0_20 = arith.constant 0 : index
    %34 = vector.load %arg5[%c1, %c0_18, %c0_19, %c0_20] : memref<3x2x32x16xf32, #tpu.memory_space<vmem>>, vector<1x2x32x16xf32>
    %35 = vector.shape_cast %34 : vector<1x2x32x16xf32> to vector<2x32x16xf32>
    "tpu.trace_start"() <{level = 10 : i32, message = "hnd,hde->hne"}> : () -> ()
    %cst_21 = arith.constant dense<0.000000e+00> : vector<2x8x16xf32>
    %36 = tpu.matmul %30, %35, %cst_21 {dimension_numbers = #tpu.dot_dimension_numbers<[2], [1], [1], [2], [0, 0, 0, 1, 1, 2], [0], [0]>} : vector<2x8x32xf32>, vector<2x32x16xf32>, vector<2x8x16xf32> -> vector<2x8x16xf32>
    "tpu.trace_stop"() : () -> ()
    %c2 = arith.constant 2 : index
    %c0_22 = arith.constant 0 : index
    %c0_23 = arith.constant 0 : index
    %c0_24 = arith.constant 0 : index
    %37 = vector.load %arg5[%c2, %c0_22, %c0_23, %c0_24] : memref<3x2x32x16xf32, #tpu.memory_space<vmem>>, vector<1x2x32x16xf32>
    %38 = vector.shape_cast %37 : vector<1x2x32x16xf32> to vector<2x32x16xf32>
    "tpu.trace_start"() <{level = 10 : i32, message = "hnd,hde->hne"}> : () -> ()
    %cst_25 = arith.constant dense<0.000000e+00> : vector<2x8x16xf32>
    %39 = tpu.matmul %30, %38, %cst_25 {dimension_numbers = #tpu.dot_dimension_numbers<[2], [1], [1], [2], [0, 0, 0, 1, 1, 2], [0], [0]>} : vector<2x8x32xf32>, vector<2x32x16xf32>, vector<2x8x16xf32> -> vector<2x8x16xf32>
    "tpu.trace_stop"() : () -> ()
    %c0_26 = arith.constant 0 : index
    %c0_27 = arith.constant 0 : index
    %c0_28 = arith.constant 0 : index
    %40 = vector.load %arg6[%c0_26, %c0_27, %c0_28] : memref<2x16x32xf32, #tpu.memory_space<vmem>>, vector<2x16x32xf32>
    "tpu.trace_start"() <{level = 10 : i32, message = "hnd,hmd->hnm"}> : () -> ()
    %cst_29 = arith.constant dense<0.000000e+00> : vector<2x8x8xf32>
    %41 = tpu.matmul %33, %36, %cst_29 {dimension_numbers = #tpu.dot_dimension_numbers<[2], [2], [1], [1], [0, 0, 0, 1, 1, 1], [0], [0]>} : vector<2x8x16xf32>, vector<2x8x16xf32>, vector<2x8x8xf32> -> vector<2x8x8xf32>
    "tpu.trace_stop"() : () -> ()
    %cst_30 = arith.constant 0.176776692 : f32
    %42 = vector.broadcast %cst_30 : f32 to vector<2x8x8xf32>
    %43 = arith.mulf %41, %42 : vector<2x8x8xf32>
    %cst_31 = arith.constant dense<0xFF800000> : vector<2x8xf32>
    %44 = vector.multi_reduction <maximumf>, %43, %cst_31 [2] : vector<2x8x8xf32> to vector<2x8xf32>
    %45 = vector.shape_cast %44 : vector<2x8xf32> to vector<2x8x1xf32>
    %46 = vector.broadcast %45 : vector<2x8x1xf32> to vector<2x8x8xf32>
    %47 = arith.subf %43, %46 : vector<2x8x8xf32>
    %48 = math.exp %47 : vector<2x8x8xf32>
    %cst_32 = arith.constant dense<0.000000e+00> : vector<2x8xf32>
    %49 = vector.multi_reduction <add>, %48, %cst_32 [2] : vector<2x8x8xf32> to vector<2x8xf32>
    %50 = vector.shape_cast %49 : vector<2x8xf32> to vector<2x8x1xf32>
    %51 = tpu.reciprocal %50 {approx = true} : vector<2x8x1xf32> -> vector<2x8x1xf32>
    %52 = vector.broadcast %51 : vector<2x8x1xf32> to vector<2x8x8xf32>
    %53 = arith.mulf %48, %52 : vector<2x8x8xf32>
    "tpu.trace_start"() <{level = 10 : i32, message = "hnm,hmd->hnd"}> : () -> ()
    %cst_33 = arith.constant dense<0.000000e+00> : vector<2x8x16xf32>
    %54 = tpu.matmul %53, %39, %cst_33 {dimension_numbers = #tpu.dot_dimension_numbers<[2], [1], [1], [2], [0, 0, 0, 1, 1, 2], [0], [0]>} : vector<2x8x8xf32>, vector<2x8x16xf32>, vector<2x8x16xf32> -> vector<2x8x16xf32>
    "tpu.trace_stop"() : () -> ()
    "tpu.trace_start"() <{level = 10 : i32, message = "hnd,hde->hne"}> : () -> ()
    %cst_34 = arith.constant dense<0.000000e+00> : vector<2x8x32xf32>
    %55 = tpu.matmul %54, %40, %cst_34 {dimension_numbers = #tpu.dot_dimension_numbers<[2], [1], [1], [2], [0, 0, 0, 1, 1, 2], [0], [0]>} : vector<2x8x16xf32>, vector<2x16x32xf32>, vector<2x8x32xf32> -> vector<2x8x32xf32>
    "tpu.trace_stop"() : () -> ()
    %cst_35 = arith.constant dense<0.000000e+00> : vector<8x32xf32>
    %56 = vector.multi_reduction <add>, %55, %cst_35 [0] : vector<2x8x32xf32> to vector<8x32xf32>
    %57 = arith.addf %1, %56 : vector<8x32xf32>
    %c0_36 = arith.constant 0 : index
    %c0_37 = arith.constant 0 : index
    %58 = vector.load %arg7[%c0_36, %c0_37] : memref<1x32xf32, #tpu.memory_space<vmem>>, vector<1x32xf32>
    %59 = vector.broadcast %58 : vector<1x32xf32> to vector<8x32xf32>
    %60 = arith.addf %57, %59 : vector<8x32xf32>
    %c0_38 = arith.constant 0 : index
    %c0_39 = arith.constant 0 : index
    %61 = vector.load %arg8[%c0_38, %c0_39] : memref<1x32xf32, #tpu.memory_space<vmem>>, vector<1x32xf32>
    %c0_40 = arith.constant 0 : index
    %c0_41 = arith.constant 0 : index
    %62 = vector.load %arg9[%c0_40, %c0_41] : memref<1x32xf32, #tpu.memory_space<vmem>>, vector<1x32xf32>
    %cst_42 = arith.constant dense<0.000000e+00> : vector<8xf32>
    %63 = vector.multi_reduction <add>, %60, %cst_42 [1] : vector<8x32xf32> to vector<8xf32>
    %64 = vector.shape_cast %63 : vector<8xf32> to vector<8x1xf32>
    %cst_43 = arith.constant 3.200000e+01 : f32
    %65 = vector.broadcast %cst_43 : f32 to vector<8x1xf32>
    %66 = arith.divf %64, %65 : vector<8x1xf32>
    %67 = vector.broadcast %66 : vector<8x1xf32> to vector<8x32xf32>
    %68 = arith.subf %60, %67 : vector<8x32xf32>
    %69 = arith.mulf %68, %68 : vector<8x32xf32>
    %cst_44 = arith.constant dense<0.000000e+00> : vector<8xf32>
    %70 = vector.multi_reduction <add>, %69, %cst_44 [1] : vector<8x32xf32> to vector<8xf32>
    %71 = vector.shape_cast %70 : vector<8xf32> to vector<8x1xf32>
    %cst_45 = arith.constant 3.200000e+01 : f32
    %72 = vector.broadcast %cst_45 : f32 to vector<8x1xf32>
    %73 = arith.divf %71, %72 : vector<8x1xf32>
    %74 = vector.broadcast %66 : vector<8x1xf32> to vector<8x32xf32>
    %75 = arith.subf %60, %74 : vector<8x32xf32>
    %cst_46 = arith.constant 9.99999974E-6 : f32
    %76 = vector.broadcast %cst_46 : f32 to vector<8x1xf32>
    %77 = arith.addf %73, %76 : vector<8x1xf32>
    %78 = math.rsqrt %77 : vector<8x1xf32>
    %79 = vector.broadcast %78 : vector<8x1xf32> to vector<8x32xf32>
    %80 = arith.mulf %75, %79 : vector<8x32xf32>
    %81 = vector.broadcast %61 : vector<1x32xf32> to vector<8x32xf32>
    %82 = arith.mulf %80, %81 : vector<8x32xf32>
    %83 = vector.broadcast %62 : vector<1x32xf32> to vector<8x32xf32>
    %84 = arith.addf %82, %83 : vector<8x32xf32>
    %c0_47 = arith.constant 0 : index
    %c0_48 = arith.constant 0 : index
    %85 = vector.load %arg8[%c0_47, %c0_48] : memref<1x32xf32, #tpu.memory_space<vmem>>, vector<1x32xf32>
    %c0_49 = arith.constant 0 : index
    %c0_50 = arith.constant 0 : index
    %86 = vector.load %arg9[%c0_49, %c0_50] : memref<1x32xf32, #tpu.memory_space<vmem>>, vector<1x32xf32>
    %cst_51 = arith.constant dense<0.000000e+00> : vector<8xf32>
    %87 = vector.multi_reduction <add>, %3, %cst_51 [1] : vector<8x32xf32> to vector<8xf32>
    %88 = vector.shape_cast %87 : vector<8xf32> to vector<8x1xf32>
    %cst_52 = arith.constant 3.200000e+01 : f32
    %89 = vector.broadcast %cst_52 : f32 to vector<8x1xf32>
    %90 = arith.divf %88, %89 : vector<8x1xf32>
    %91 = vector.broadcast %90 : vector<8x1xf32> to vector<8x32xf32>
    %92 = arith.subf %3, %91 : vector<8x32xf32>
    %93 = arith.mulf %92, %92 : vector<8x32xf32>
    %cst_53 = arith.constant dense<0.000000e+00> : vector<8xf32>
    %94 = vector.multi_reduction <add>, %93, %cst_53 [1] : vector<8x32xf32> to vector<8xf32>
    %95 = vector.shape_cast %94 : vector<8xf32> to vector<8x1xf32>
    %cst_54 = arith.constant 3.200000e+01 : f32
    %96 = vector.broadcast %cst_54 : f32 to vector<8x1xf32>
    %97 = arith.divf %95, %96 : vector<8x1xf32>
    %98 = vector.broadcast %90 : vector<8x1xf32> to vector<8x32xf32>
    %99 = arith.subf %3, %98 : vector<8x32xf32>
    %cst_55 = arith.constant 9.99999974E-6 : f32
    %100 = vector.broadcast %cst_55 : f32 to vector<8x1xf32>
    %101 = arith.addf %97, %100 : vector<8x1xf32>
    %102 = math.rsqrt %101 : vector<8x1xf32>
    %103 = vector.broadcast %102 : vector<8x1xf32> to vector<8x32xf32>
    %104 = arith.mulf %99, %103 : vector<8x32xf32>
    %105 = vector.broadcast %85 : vector<1x32xf32> to vector<8x32xf32>
    %106 = arith.mulf %104, %105 : vector<8x32xf32>
    %107 = vector.broadcast %86 : vector<1x32xf32> to vector<8x32xf32>
    %108 = arith.addf %106, %107 : vector<8x32xf32>
    %109 = vector.shape_cast %84 : vector<8x32xf32> to vector<1x8x32xf32>
    %110 = vector.shape_cast %109 : vector<1x8x32xf32> to vector<1x8x32xf32>
    %111 = vector.broadcast %110 : vector<1x8x32xf32> to vector<2x8x32xf32>
    %112 = vector.shape_cast %108 : vector<8x32xf32> to vector<1x8x32xf32>
    %113 = vector.shape_cast %112 : vector<1x8x32xf32> to vector<1x8x32xf32>
    %114 = vector.broadcast %113 : vector<1x8x32xf32> to vector<2x8x32xf32>
    %c0_56 = arith.constant 0 : index
    %c0_57 = arith.constant 0 : index
    %c0_58 = arith.constant 0 : index
    %c0_59 = arith.constant 0 : index
    %115 = vector.load %arg10[%c0_56, %c0_57, %c0_58, %c0_59] : memref<3x2x32x16xf32, #tpu.memory_space<vmem>>, vector<1x2x32x16xf32>
    %116 = vector.shape_cast %115 : vector<1x2x32x16xf32> to vector<2x32x16xf32>
    "tpu.trace_start"() <{level = 10 : i32, message = "hnd,hde->hne"}> : () -> ()
    %cst_60 = arith.constant dense<0.000000e+00> : vector<2x8x16xf32>
    %117 = tpu.matmul %111, %116, %cst_60 {dimension_numbers = #tpu.dot_dimension_numbers<[2], [1], [1], [2], [0, 0, 0, 1, 1, 2], [0], [0]>} : vector<2x8x32xf32>, vector<2x32x16xf32>, vector<2x8x16xf32> -> vector<2x8x16xf32>
    "tpu.trace_stop"() : () -> ()
    %c1_61 = arith.constant 1 : index
    %c0_62 = arith.constant 0 : index
    %c0_63 = arith.constant 0 : index
    %c0_64 = arith.constant 0 : index
    %118 = vector.load %arg10[%c1_61, %c0_62, %c0_63, %c0_64] : memref<3x2x32x16xf32, #tpu.memory_space<vmem>>, vector<1x2x32x16xf32>
    %119 = vector.shape_cast %118 : vector<1x2x32x16xf32> to vector<2x32x16xf32>
    "tpu.trace_start"() <{level = 10 : i32, message = "hnd,hde->hne"}> : () -> ()
    %cst_65 = arith.constant dense<0.000000e+00> : vector<2x8x16xf32>
    %120 = tpu.matmul %114, %119, %cst_65 {dimension_numbers = #tpu.dot_dimension_numbers<[2], [1], [1], [2], [0, 0, 0, 1, 1, 2], [0], [0]>} : vector<2x8x32xf32>, vector<2x32x16xf32>, vector<2x8x16xf32> -> vector<2x8x16xf32>
    "tpu.trace_stop"() : () -> ()
    %c2_66 = arith.constant 2 : index
    %c0_67 = arith.constant 0 : index
    %c0_68 = arith.constant 0 : index
    %c0_69 = arith.constant 0 : index
    %121 = vector.load %arg10[%c2_66, %c0_67, %c0_68, %c0_69] : memref<3x2x32x16xf32, #tpu.memory_space<vmem>>, vector<1x2x32x16xf32>
    %122 = vector.shape_cast %121 : vector<1x2x32x16xf32> to vector<2x32x16xf32>
    "tpu.trace_start"() <{level = 10 : i32, message = "hnd,hde->hne"}> : () -> ()
    %cst_70 = arith.constant dense<0.000000e+00> : vector<2x8x16xf32>
    %123 = tpu.matmul %114, %122, %cst_70 {dimension_numbers = #tpu.dot_dimension_numbers<[2], [1], [1], [2], [0, 0, 0, 1, 1, 2], [0], [0]>} : vector<2x8x32xf32>, vector<2x32x16xf32>, vector<2x8x16xf32> -> vector<2x8x16xf32>
    "tpu.trace_stop"() : () -> ()
    %cst_71 = arith.constant dense<0xFF800000> : vector<2x16xf32>
    %124 = vector.multi_reduction <maximumf>, %117, %cst_71 [1] : vector<2x8x16xf32> to vector<2x16xf32>
    %125 = vector.shape_cast %124 : vector<2x16xf32> to vector<2x1x16xf32>
    %cst_72 = arith.constant dense<0.000000e+00> : vector<2x16xf32>
    %126 = vector.multi_reduction <add>, %117, %cst_72 [1] : vector<2x8x16xf32> to vector<2x16xf32>
    %127 = vector.shape_cast %126 : vector<2x16xf32> to vector<2x1x16xf32>
    %cst_73 = arith.constant 8.000000e+00 : f32
    %128 = vector.broadcast %cst_73 : f32 to vector<2x1x16xf32>
    %129 = arith.divf %127, %128 : vector<2x1x16xf32>
    %130 = arith.addf %125, %129 : vector<2x1x16xf32>
    %c0_74 = arith.constant 0 : index
    %c0_75 = arith.constant 0 : index
    %c0_76 = arith.constant 0 : index
    %131 = vector.load %arg11[%c0_74, %c0_75, %c0_76] : memref<2x16x2xf32, #tpu.memory_space<vmem>>, vector<2x16x2xf32>
    "tpu.trace_start"() <{level = 10 : i32, message = "hxd,hdc->hxc"}> : () -> ()
    %cst_77 = arith.constant dense<0.000000e+00> : vector<2x1x2xf32>
    %132 = tpu.matmul %130, %131, %cst_77 {dimension_numbers = #tpu.dot_dimension_numbers<[2], [1], [1], [2], [0, 0, 0, 1, 1, 2], [0], [0]>} : vector<2x1x16xf32>, vector<2x16x2xf32>, vector<2x1x2xf32> -> vector<2x1x2xf32>
    "tpu.trace_stop"() : () -> ()
    %cst_78 = arith.constant dense<0.000000e+00> : vector<1x2xf32>
    %133 = vector.multi_reduction <add>, %132, %cst_78 [0] : vector<2x1x2xf32> to vector<1x2xf32>
    %cst_79 = arith.constant 0.000000e+00 : f32
    %134 = vector.broadcast %cst_79 : f32 to vector<1x2xf32>
    %135 = arith.maximumf %133, %134 : vector<1x2xf32>
    %136 = vector.shape_cast %135 : vector<1x2xf32> to vector<1x1x2xf32>
    %137 = vector.shape_cast %136 : vector<1x1x2xf32> to vector<1x1x2xf32>
    %138 = vector.broadcast %137 : vector<1x1x2xf32> to vector<2x1x2xf32>
    %c0_80 = arith.constant 0 : index
    %c0_81 = arith.constant 0 : index
    %c0_82 = arith.constant 0 : index
    %139 = vector.load %arg12[%c0_80, %c0_81, %c0_82] : memref<2x2x16xf32, #tpu.memory_space<vmem>>, vector<2x2x16xf32>
    "tpu.trace_start"() <{level = 10 : i32, message = "hxc,hcd->hxd"}> : () -> ()
    %cst_83 = arith.constant dense<0.000000e+00> : vector<2x1x16xf32>
    %140 = tpu.matmul %138, %139, %cst_83 {dimension_numbers = #tpu.dot_dimension_numbers<[2], [1], [1], [2], [0, 0, 0, 1, 1, 2], [0], [0]>} : vector<2x1x2xf32>, vector<2x2x16xf32>, vector<2x1x16xf32> -> vector<2x1x16xf32>
    "tpu.trace_stop"() : () -> ()
    %141 = arith.negf %140 : vector<2x1x16xf32>
    %142 = math.exp %141 : vector<2x1x16xf32>
    %cst_84 = arith.constant 1.000000e+00 : f32
    %143 = vector.broadcast %cst_84 : f32 to vector<2x1x16xf32>
    %144 = arith.addf %143, %142 : vector<2x1x16xf32>
    %145 = arith.divf %143, %144 : vector<2x1x16xf32>
    %146 = vector.broadcast %145 : vector<2x1x16xf32> to vector<2x8x16xf32>
    %147 = arith.mulf %117, %146 : vector<2x8x16xf32>
    %cst_85 = arith.constant dense<0xFF800000> : vector<2x16xf32>
    %148 = vector.multi_reduction <maximumf>, %120, %cst_85 [1] : vector<2x8x16xf32> to vector<2x16xf32>
    %149 = vector.shape_cast %148 : vector<2x16xf32> to vector<2x1x16xf32>
    %cst_86 = arith.constant dense<0.000000e+00> : vector<2x16xf32>
    %150 = vector.multi_reduction <add>, %120, %cst_86 [1] : vector<2x8x16xf32> to vector<2x16xf32>
    %151 = vector.shape_cast %150 : vector<2x16xf32> to vector<2x1x16xf32>
    %cst_87 = arith.constant 8.000000e+00 : f32
    %152 = vector.broadcast %cst_87 : f32 to vector<2x1x16xf32>
    %153 = arith.divf %151, %152 : vector<2x1x16xf32>
    %154 = arith.addf %149, %153 : vector<2x1x16xf32>
    %c0_88 = arith.constant 0 : index
    %c0_89 = arith.constant 0 : index
    %c0_90 = arith.constant 0 : index
    %155 = vector.load %arg11[%c0_88, %c0_89, %c0_90] : memref<2x16x2xf32, #tpu.memory_space<vmem>>, vector<2x16x2xf32>
    "tpu.trace_start"() <{level = 10 : i32, message = "hxd,hdc->hxc"}> : () -> ()
    %cst_91 = arith.constant dense<0.000000e+00> : vector<2x1x2xf32>
    %156 = tpu.matmul %154, %155, %cst_91 {dimension_numbers = #tpu.dot_dimension_numbers<[2], [1], [1], [2], [0, 0, 0, 1, 1, 2], [0], [0]>} : vector<2x1x16xf32>, vector<2x16x2xf32>, vector<2x1x2xf32> -> vector<2x1x2xf32>
    "tpu.trace_stop"() : () -> ()
    %cst_92 = arith.constant dense<0.000000e+00> : vector<1x2xf32>
    %157 = vector.multi_reduction <add>, %156, %cst_92 [0] : vector<2x1x2xf32> to vector<1x2xf32>
    %cst_93 = arith.constant 0.000000e+00 : f32
    %158 = vector.broadcast %cst_93 : f32 to vector<1x2xf32>
    %159 = arith.maximumf %157, %158 : vector<1x2xf32>
    %160 = vector.shape_cast %159 : vector<1x2xf32> to vector<1x1x2xf32>
    %161 = vector.shape_cast %160 : vector<1x1x2xf32> to vector<1x1x2xf32>
    %162 = vector.broadcast %161 : vector<1x1x2xf32> to vector<2x1x2xf32>
    %c0_94 = arith.constant 0 : index
    %c0_95 = arith.constant 0 : index
    %c0_96 = arith.constant 0 : index
    %163 = vector.load %arg12[%c0_94, %c0_95, %c0_96] : memref<2x2x16xf32, #tpu.memory_space<vmem>>, vector<2x2x16xf32>
    "tpu.trace_start"() <{level = 10 : i32, message = "hxc,hcd->hxd"}> : () -> ()
    %cst_97 = arith.constant dense<0.000000e+00> : vector<2x1x16xf32>
    %164 = tpu.matmul %162, %163, %cst_97 {dimension_numbers = #tpu.dot_dimension_numbers<[2], [1], [1], [2], [0, 0, 0, 1, 1, 2], [0], [0]>} : vector<2x1x2xf32>, vector<2x2x16xf32>, vector<2x1x16xf32> -> vector<2x1x16xf32>
    "tpu.trace_stop"() : () -> ()
    %165 = arith.negf %164 : vector<2x1x16xf32>
    %166 = math.exp %165 : vector<2x1x16xf32>
    %cst_98 = arith.constant 1.000000e+00 : f32
    %167 = vector.broadcast %cst_98 : f32 to vector<2x1x16xf32>
    %168 = arith.addf %167, %166 : vector<2x1x16xf32>
    %169 = arith.divf %167, %168 : vector<2x1x16xf32>
    %170 = vector.broadcast %169 : vector<2x1x16xf32> to vector<2x8x16xf32>
    %171 = arith.mulf %120, %170 : vector<2x8x16xf32>
    %cst_99 = arith.constant dense<0xFF800000> : vector<2x16xf32>
    %172 = vector.multi_reduction <maximumf>, %123, %cst_99 [1] : vector<2x8x16xf32> to vector<2x16xf32>
    %173 = vector.shape_cast %172 : vector<2x16xf32> to vector<2x1x16xf32>
    %cst_100 = arith.constant dense<0.000000e+00> : vector<2x16xf32>
    %174 = vector.multi_reduction <add>, %123, %cst_100 [1] : vector<2x8x16xf32> to vector<2x16xf32>
    %175 = vector.shape_cast %174 : vector<2x16xf32> to vector<2x1x16xf32>
    %cst_101 = arith.constant 8.000000e+00 : f32
    %176 = vector.broadcast %cst_101 : f32 to vector<2x1x16xf32>
    %177 = arith.divf %175, %176 : vector<2x1x16xf32>
    %178 = arith.addf %173, %177 : vector<2x1x16xf32>
    %c0_102 = arith.constant 0 : index
    %c0_103 = arith.constant 0 : index
    %c0_104 = arith.constant 0 : index
    %179 = vector.load %arg11[%c0_102, %c0_103, %c0_104] : memref<2x16x2xf32, #tpu.memory_space<vmem>>, vector<2x16x2xf32>
    "tpu.trace_start"() <{level = 10 : i32, message = "hxd,hdc->hxc"}> : () -> ()
    %cst_105 = arith.constant dense<0.000000e+00> : vector<2x1x2xf32>
    %180 = tpu.matmul %178, %179, %cst_105 {dimension_numbers = #tpu.dot_dimension_numbers<[2], [1], [1], [2], [0, 0, 0, 1, 1, 2], [0], [0]>} : vector<2x1x16xf32>, vector<2x16x2xf32>, vector<2x1x2xf32> -> vector<2x1x2xf32>
    "tpu.trace_stop"() : () -> ()
    %cst_106 = arith.constant dense<0.000000e+00> : vector<1x2xf32>
    %181 = vector.multi_reduction <add>, %180, %cst_106 [0] : vector<2x1x2xf32> to vector<1x2xf32>
    %cst_107 = arith.constant 0.000000e+00 : f32
    %182 = vector.broadcast %cst_107 : f32 to vector<1x2xf32>
    %183 = arith.maximumf %181, %182 : vector<1x2xf32>
    %184 = vector.shape_cast %183 : vector<1x2xf32> to vector<1x1x2xf32>
    %185 = vector.shape_cast %184 : vector<1x1x2xf32> to vector<1x1x2xf32>
    %186 = vector.broadcast %185 : vector<1x1x2xf32> to vector<2x1x2xf32>
    %c0_108 = arith.constant 0 : index
    %c0_109 = arith.constant 0 : index
    %c0_110 = arith.constant 0 : index
    %187 = vector.load %arg12[%c0_108, %c0_109, %c0_110] : memref<2x2x16xf32, #tpu.memory_space<vmem>>, vector<2x2x16xf32>
    "tpu.trace_start"() <{level = 10 : i32, message = "hxc,hcd->hxd"}> : () -> ()
    %cst_111 = arith.constant dense<0.000000e+00> : vector<2x1x16xf32>
    %188 = tpu.matmul %186, %187, %cst_111 {dimension_numbers = #tpu.dot_dimension_numbers<[2], [1], [1], [2], [0, 0, 0, 1, 1, 2], [0], [0]>} : vector<2x1x2xf32>, vector<2x2x16xf32>, vector<2x1x16xf32> -> vector<2x1x16xf32>
    "tpu.trace_stop"() : () -> ()
    %189 = arith.negf %188 : vector<2x1x16xf32>
    %190 = math.exp %189 : vector<2x1x16xf32>
    %cst_112 = arith.constant 1.000000e+00 : f32
    %191 = vector.broadcast %cst_112 : f32 to vector<2x1x16xf32>
    %192 = arith.addf %191, %190 : vector<2x1x16xf32>
    %193 = arith.divf %191, %192 : vector<2x1x16xf32>
    %194 = vector.broadcast %193 : vector<2x1x16xf32> to vector<2x8x16xf32>
    %195 = arith.mulf %123, %194 : vector<2x8x16xf32>
    %c0_113 = arith.constant 0 : index
    %c0_114 = arith.constant 0 : index
    %c0_115 = arith.constant 0 : index
    %196 = vector.load %arg13[%c0_113, %c0_114, %c0_115] : memref<2x16x32xf32, #tpu.memory_space<vmem>>, vector<2x16x32xf32>
    "tpu.trace_start"() <{level = 10 : i32, message = "hnd,hmd->hnm"}> : () -> ()
    %cst_116 = arith.constant dense<0.000000e+00> : vector<2x8x8xf32>
    %197 = tpu.matmul %147, %171, %cst_116 {dimension_numbers = #tpu.dot_dimension_numbers<[2], [2], [1], [1], [0, 0, 0, 1, 1, 1], [0], [0]>} : vector<2x8x16xf32>, vector<2x8x16xf32>, vector<2x8x8xf32> -> vector<2x8x8xf32>
    "tpu.trace_stop"() : () -> ()
    %cst_117 = arith.constant 0.176776692 : f32
    %198 = vector.broadcast %cst_117 : f32 to vector<2x8x8xf32>
    %199 = arith.mulf %197, %198 : vector<2x8x8xf32>
    %cst_118 = arith.constant dense<0xFF800000> : vector<2x8xf32>
    %200 = vector.multi_reduction <maximumf>, %199, %cst_118 [2] : vector<2x8x8xf32> to vector<2x8xf32>
    %201 = vector.shape_cast %200 : vector<2x8xf32> to vector<2x8x1xf32>
    %202 = vector.broadcast %201 : vector<2x8x1xf32> to vector<2x8x8xf32>
    %203 = arith.subf %199, %202 : vector<2x8x8xf32>
    %204 = math.exp %203 : vector<2x8x8xf32>
    %cst_119 = arith.constant dense<0.000000e+00> : vector<2x8xf32>
    %205 = vector.multi_reduction <add>, %204, %cst_119 [2] : vector<2x8x8xf32> to vector<2x8xf32>
    %206 = vector.shape_cast %205 : vector<2x8xf32> to vector<2x8x1xf32>
    %207 = tpu.reciprocal %206 {approx = true} : vector<2x8x1xf32> -> vector<2x8x1xf32>
    %208 = vector.broadcast %207 : vector<2x8x1xf32> to vector<2x8x8xf32>
    %209 = arith.mulf %204, %208 : vector<2x8x8xf32>
    "tpu.trace_start"() <{level = 10 : i32, message = "hnm,hmd->hnd"}> : () -> ()
    %cst_120 = arith.constant dense<0.000000e+00> : vector<2x8x16xf32>
    %210 = tpu.matmul %209, %195, %cst_120 {dimension_numbers = #tpu.dot_dimension_numbers<[2], [1], [1], [2], [0, 0, 0, 1, 1, 2], [0], [0]>} : vector<2x8x8xf32>, vector<2x8x16xf32>, vector<2x8x16xf32> -> vector<2x8x16xf32>
    "tpu.trace_stop"() : () -> ()
    "tpu.trace_start"() <{level = 10 : i32, message = "hnd,hde->hne"}> : () -> ()
    %cst_121 = arith.constant dense<0.000000e+00> : vector<2x8x32xf32>
    %211 = tpu.matmul %210, %196, %cst_121 {dimension_numbers = #tpu.dot_dimension_numbers<[2], [1], [1], [2], [0, 0, 0, 1, 1, 2], [0], [0]>} : vector<2x8x16xf32>, vector<2x16x32xf32>, vector<2x8x32xf32> -> vector<2x8x32xf32>
    "tpu.trace_stop"() : () -> ()
    %cst_122 = arith.constant dense<0.000000e+00> : vector<8x32xf32>
    %212 = vector.multi_reduction <add>, %211, %cst_122 [0] : vector<2x8x32xf32> to vector<8x32xf32>
    %213 = arith.addf %60, %212 : vector<8x32xf32>
    %c0_123 = arith.constant 0 : index
    %c0_124 = arith.constant 0 : index
    %214 = vector.load %arg14[%c0_123, %c0_124] : memref<1x32xf32, #tpu.memory_space<vmem>>, vector<1x32xf32>
    %215 = vector.broadcast %214 : vector<1x32xf32> to vector<8x32xf32>
    %216 = arith.addf %213, %215 : vector<8x32xf32>
    %c0_125 = arith.constant 0 : index
    %c0_126 = arith.constant 0 : index
    %217 = vector.load %arg15[%c0_125, %c0_126] : memref<1x32xf32, #tpu.memory_space<vmem>>, vector<1x32xf32>
    %c0_127 = arith.constant 0 : index
    %c0_128 = arith.constant 0 : index
    %218 = vector.load %arg16[%c0_127, %c0_128] : memref<1x32xf32, #tpu.memory_space<vmem>>, vector<1x32xf32>
    %cst_129 = arith.constant dense<0.000000e+00> : vector<8xf32>
    %219 = vector.multi_reduction <add>, %216, %cst_129 [1] : vector<8x32xf32> to vector<8xf32>
    %220 = vector.shape_cast %219 : vector<8xf32> to vector<8x1xf32>
    %cst_130 = arith.constant 3.200000e+01 : f32
    %221 = vector.broadcast %cst_130 : f32 to vector<8x1xf32>
    %222 = arith.divf %220, %221 : vector<8x1xf32>
    %223 = vector.broadcast %222 : vector<8x1xf32> to vector<8x32xf32>
    %224 = arith.subf %216, %223 : vector<8x32xf32>
    %225 = arith.mulf %224, %224 : vector<8x32xf32>
    %cst_131 = arith.constant dense<0.000000e+00> : vector<8xf32>
    %226 = vector.multi_reduction <add>, %225, %cst_131 [1] : vector<8x32xf32> to vector<8xf32>
    %227 = vector.shape_cast %226 : vector<8xf32> to vector<8x1xf32>
    %cst_132 = arith.constant 3.200000e+01 : f32
    %228 = vector.broadcast %cst_132 : f32 to vector<8x1xf32>
    %229 = arith.divf %227, %228 : vector<8x1xf32>
    %230 = vector.broadcast %222 : vector<8x1xf32> to vector<8x32xf32>
    %231 = arith.subf %216, %230 : vector<8x32xf32>
    %cst_133 = arith.constant 9.99999974E-6 : f32
    %232 = vector.broadcast %cst_133 : f32 to vector<8x1xf32>
    %233 = arith.addf %229, %232 : vector<8x1xf32>
    %234 = math.rsqrt %233 : vector<8x1xf32>
    %235 = vector.broadcast %234 : vector<8x1xf32> to vector<8x32xf32>
    %236 = arith.mulf %231, %235 : vector<8x32xf32>
    %237 = vector.broadcast %217 : vector<1x32xf32> to vector<8x32xf32>
    %238 = arith.mulf %236, %237 : vector<8x32xf32>
    %239 = vector.broadcast %218 : vector<1x32xf32> to vector<8x32xf32>
    %240 = arith.addf %238, %239 : vector<8x32xf32>
    %c0_134 = arith.constant 0 : index
    %c0_135 = arith.constant 0 : index
    %241 = vector.load %arg17[%c0_134, %c0_135] : memref<32x64xf32, #tpu.memory_space<vmem>>, vector<32x64xf32>
    %cst_136 = arith.constant dense<0.000000e+00> : vector<8x64xf32>
    %242 = tpu.matmul %240, %241, %cst_136 {dimension_numbers = #tpu.dot_dimension_numbers<[1], [0], [0], [1], [0, 0, 1, 1], [], []>} : vector<8x32xf32>, vector<32x64xf32>, vector<8x64xf32> -> vector<8x64xf32>
    %c0_137 = arith.constant 0 : index
    %c0_138 = arith.constant 0 : index
    %243 = vector.load %arg18[%c0_137, %c0_138] : memref<1x64xf32, #tpu.memory_space<vmem>>, vector<1x64xf32>
    %244 = vector.broadcast %243 : vector<1x64xf32> to vector<8x64xf32>
    %245 = arith.addf %242, %244 : vector<8x64xf32>
    %cst_139 = arith.constant 5.000000e-01 : f32
    %246 = vector.broadcast %cst_139 : f32 to vector<8x64xf32>
    %247 = arith.mulf %246, %245 : vector<8x64xf32>
    %cst_140 = arith.constant 0.707106769 : f32
    %248 = vector.broadcast %cst_140 : f32 to vector<8x64xf32>
    %249 = arith.mulf %245, %248 : vector<8x64xf32>
    %250 = math.erf %249 : vector<8x64xf32>
    %cst_141 = arith.constant 1.000000e+00 : f32
    %251 = vector.broadcast %cst_141 : f32 to vector<8x64xf32>
    %252 = arith.addf %251, %250 : vector<8x64xf32>
    %253 = arith.mulf %247, %252 : vector<8x64xf32>
    %c0_142 = arith.constant 0 : index
    %c0_143 = arith.constant 0 : index
    %254 = vector.load %arg19[%c0_142, %c0_143] : memref<64x32xf32, #tpu.memory_space<vmem>>, vector<64x32xf32>
    %cst_144 = arith.constant dense<0.000000e+00> : vector<8x32xf32>
    %255 = tpu.matmul %253, %254, %cst_144 {dimension_numbers = #tpu.dot_dimension_numbers<[1], [0], [0], [1], [0, 0, 1, 1], [], []>} : vector<8x64xf32>, vector<64x32xf32>, vector<8x32xf32> -> vector<8x32xf32>
    %256 = arith.addf %216, %255 : vector<8x32xf32>
    %c0_145 = arith.constant 0 : index
    %c0_146 = arith.constant 0 : index
    %257 = vector.load %arg20[%c0_145, %c0_146] : memref<1x32xf32, #tpu.memory_space<vmem>>, vector<1x32xf32>
    %258 = vector.broadcast %257 : vector<1x32xf32> to vector<8x32xf32>
    %259 = arith.addf %256, %258 : vector<8x32xf32>
    %c0_147 = arith.constant 0 : index
    %c0_148 = arith.constant 0 : index
    %c0_149 = arith.constant 0 : index
    %260 = vector.load %arg21[%c0_147, %c0_148, %c0_149] : memref<1x8x32xf32, #tpu.memory_space<vmem>>, vector<1x8x32xf32>
    %261 = vector.shape_cast %260 : vector<1x8x32xf32> to vector<8x32xf32>
    %262 = vector.shape_cast %259 : vector<8x32xf32> to vector<1x8x32xf32>
    tpu.vector_store %arg21[%c0_147, %c0_148, %c0_149], %262 {strides = array<i32>} : memref<1x8x32xf32, #tpu.memory_space<vmem>>, vector<1x8x32xf32>,
    return
  }
  func.func @transform_0(%arg0: i32) -> (i32, i32, i32) {
    %c0_i32 = arith.constant 0 : i32
    %c0_i32_0 = arith.constant 0 : i32
    %c0_i32_1 = arith.constant 0 : i32
    return %arg0, %c0_i32, %c0_i32_0 : i32, i32, i32
  }
  func.func @transform_1(%arg0: i32) -> (i32, i32, i32) {
    %c0_i32 = arith.constant 0 : i32
    %c0_i32_0 = arith.constant 0 : i32
    %c0_i32_1 = arith.constant 0 : i32
    return %arg0, %c0_i32, %c0_i32_0 : i32, i32, i32
  }
  func.func @transform_2(%arg0: i32) -> (i32, i32) {
    %c0_i32 = arith.constant 0 : i32
    %c0_i32_0 = arith.constant 0 : i32
    %c0_i32_1 = arith.constant 0 : i32
    return %c0_i32, %c0_i32_0 : i32, i32
  }
  func.func @transform_3(%arg0: i32) -> (i32, i32) {
    %c0_i32 = arith.constant 0 : i32
    %c0_i32_0 = arith.constant 0 : i32
    %c0_i32_1 = arith.constant 0 : i32
    return %c0_i32, %c0_i32_0 : i32, i32
  }
  func.func @transform_4(%arg0: i32) -> (i32, i32, i32, i32) {
    %c0_i32 = arith.constant 0 : i32
    %c0_i32_0 = arith.constant 0 : i32
    %c0_i32_1 = arith.constant 0 : i32
    %c0_i32_2 = arith.constant 0 : i32
    %c0_i32_3 = arith.constant 0 : i32
    return %c0_i32, %c0_i32_0, %c0_i32_1, %c0_i32_2 : i32, i32, i32, i32
  }
  func.func @transform_5(%arg0: i32) -> (i32, i32, i32) {
    %c0_i32 = arith.constant 0 : i32
    %c0_i32_0 = arith.constant 0 : i32
    %c0_i32_1 = arith.constant 0 : i32
    %c0_i32_2 = arith.constant 0 : i32
    return %c0_i32, %c0_i32_0, %c0_i32_1 : i32, i32, i32
  }
  func.func @transform_6(%arg0: i32) -> (i32, i32) {
    %c0_i32 = arith.constant 0 : i32
    %c0_i32_0 = arith.constant 0 : i32
    %c0_i32_1 = arith.constant 0 : i32
    return %c0_i32, %c0_i32_0 : i32, i32
  }
  func.func @transform_7(%arg0: i32) -> (i32, i32) {
    %c0_i32 = arith.constant 0 : i32
    %c0_i32_0 = arith.constant 0 : i32
    %c0_i32_1 = arith.constant 0 : i32
    return %c0_i32, %c0_i32_0 : i32, i32
  }
  func.func @transform_8(%arg0: i32) -> (i32, i32) {
    %c0_i32 = arith.constant 0 : i32
    %c0_i32_0 = arith.constant 0 : i32
    %c0_i32_1 = arith.constant 0 : i32
    return %c0_i32, %c0_i32_0 : i32, i32
  }
  func.func @transform_9(%arg0: i32) -> (i32, i32, i32, i32) {
    %c0_i32 = arith.constant 0 : i32
    %c0_i32_0 = arith.constant 0 : i32
    %c0_i32_1 = arith.constant 0 : i32
    %c0_i32_2 = arith.constant 0 : i32
    %c0_i32_3 = arith.constant 0 : i32
    return %c0_i32, %c0_i32_0, %c0_i32_1, %c0_i32_2 : i32, i32, i32, i32
  }
  func.func @transform_10(%arg0: i32) -> (i32, i32, i32) {
    %c0_i32 = arith.constant 0 : i32
    %c0_i32_0 = arith.constant 0 : i32
    %c0_i32_1 = arith.constant 0 : i32
    %c0_i32_2 = arith.constant 0 : i32
    return %c0_i32, %c0_i32_0, %c0_i32_1 : i32, i32, i32
  }
  func.func @transform_11(%arg0: i32) -> (i32, i32, i32) {
    %c0_i32 = arith.constant 0 : i32
    %c0_i32_0 = arith.constant 0 : i32
    %c0_i32_1 = arith.constant 0 : i32
    %c0_i32_2 = arith.constant 0 : i32
    return %c0_i32, %c0_i32_0, %c0_i32_1 : i32, i32, i32
  }
  func.func @transform_12(%arg0: i32) -> (i32, i32, i32) {
    %c0_i32 = arith.constant 0 : i32
    %c0_i32_0 = arith.constant 0 : i32
    %c0_i32_1 = arith.constant 0 : i32
    %c0_i32_2 = arith.constant 0 : i32
    return %c0_i32, %c0_i32_0, %c0_i32_1 : i32, i32, i32
  }
  func.func @transform_13(%arg0: i32) -> (i32, i32) {
    %c0_i32 = arith.constant 0 : i32
    %c0_i32_0 = arith.constant 0 : i32
    %c0_i32_1 = arith.constant 0 : i32
    return %c0_i32, %c0_i32_0 : i32, i32
  }
  func.func @transform_14(%arg0: i32) -> (i32, i32) {
    %c0_i32 = arith.constant 0 : i32
    %c0_i32_0 = arith.constant 0 : i32
    %c0_i32_1 = arith.constant 0 : i32
    return %c0_i32, %c0_i32_0 : i32, i32
  }
  func.func @transform_15(%arg0: i32) -> (i32, i32) {
    %c0_i32 = arith.constant 0 : i32
    %c0_i32_0 = arith.constant 0 : i32
    %c0_i32_1 = arith.constant 0 : i32
    return %c0_i32, %c0_i32_0 : i32, i32
  }
  func.func @transform_16(%arg0: i32) -> (i32, i32) {
    %c0_i32 = arith.constant 0 : i32
    %c0_i32_0 = arith.constant 0 : i32
    %c0_i32_1 = arith.constant 0 : i32
    return %c0_i32, %c0_i32_0 : i32, i32
  }
  func.func @transform_17(%arg0: i32) -> (i32, i32) {
    %c0_i32 = arith.constant 0 : i32
    %c0_i32_0 = arith.constant 0 : i32
    %c0_i32_1 = arith.constant 0 : i32
    return %c0_i32, %c0_i32_0 : i32, i32
  }
  func.func @transform_18(%arg0: i32) -> (i32, i32) {
    %c0_i32 = arith.constant 0 : i32
    %c0_i32_0 = arith.constant 0 : i32
    %c0_i32_1 = arith.constant 0 : i32
    return %c0_i32, %c0_i32_0 : i32, i32
  }
  func.func @transform_19(%arg0: i32) -> (i32, i32) {
    %c0_i32 = arith.constant 0 : i32
    %c0_i32_0 = arith.constant 0 : i32
    %c0_i32_1 = arith.constant 0 : i32
    return %c0_i32, %c0_i32_0 : i32, i32
  }
  func.func @transform_20(%arg0: i32) -> (i32, i32, i32) {
    %c0_i32 = arith.constant 0 : i32
    %c0_i32_0 = arith.constant 0 : i32
    %c0_i32_1 = arith.constant 0 : i32
    return %arg0, %c0_i32, %c0_i32_0 : i32, i32, i32
  }
}

module attributes {stable_mosaic.version = 11 : i64} {
  func.func @decoder_layer_kernel(%arg0: i32, %arg1: memref<1x8x32xf32, #tpu.memory_space<vmem>>, %arg2: memref<1x8x32xf32, #tpu.memory_space<vmem>>, %arg3: memref<1x32xf32, #tpu.memory_space<vmem>>, %arg4: memref<1x32xf32, #tpu.memory_space<vmem>>, %arg5: memref<3x2x32x16xf32, #tpu.memory_space<vmem>>, %arg6: memref<2x16x32xf32, #tpu.memory_space<vmem>>, %arg7: memref<1x32xf32, #tpu.memory_space<vmem>>, %arg8: memref<1x32xf32, #tpu.memory_space<vmem>>, %arg9: memref<1x32xf32, #tpu.memory_space<vmem>>, %arg10: memref<3x2x32x16xf32, #tpu.memory_space<vmem>>, %arg11: memref<2x16x2xf32, #tpu.memory_space<vmem>>, %arg12: memref<2x2x16xf32, #tpu.memory_space<vmem>>, %arg13: memref<2x16x32xf32, #tpu.memory_space<vmem>>, %arg14: memref<1x32xf32, #tpu.memory_space<vmem>>, %arg15: memref<1x32xf32, #tpu.memory_space<vmem>>, %arg16: memref<1x32xf32, #tpu.memory_space<vmem>>, %arg17: memref<32x64xf32, #tpu.memory_space<vmem>>, %arg18: memref<1x64xf32, #tpu.memory_space<vmem>>, %arg19: memref<64x32xf32, #tpu.memory_space<vmem>>, %arg20: memref<1x32xf32, #tpu.memory_space<vmem>>, %arg21: memref<1x8x32xf32, #tpu.memory_space<vmem>>) attributes {dimension_semantics = [#tpu.dimension_semantics<parallel>], iteration_bounds = array<i64: 2>, scalar_prefetch = 0 : i64, scratch_operands = 0 : i64, tpu.core_type = #tpu.core_type<tc>, window_params = [{transform_indices = @transform_0, window_bounds = array<i64: 1, 8, 32>}, {transform_indices = @transform_1, window_bounds = array<i64: 1, 8, 32>}, {pipeline_mode = #tpu.pipeline_mode<synchronous>, transform_indices = @transform_2, window_bounds = array<i64: 1, 32>}, {pipeline_mode = #tpu.pipeline_mode<synchronous>, transform_indices = @transform_3, window_bounds = array<i64: 1, 32>}, {pipeline_mode = #tpu.pipeline_mode<synchronous>, transform_indices = @transform_4, window_bounds = array<i64: 3, 2, 32, 16>}, {pipeline_mode = #tpu.pipeline_mode<synchronous>, transform_indices = @transform_5, window_bounds = array<i64: 2, 16, 32>}, {pipeline_mode = #tpu.pipeline_mode<synchronous>, transform_indices = @transform_6, window_bounds = array<i64: 1, 32>}, {pipeline_mode = #tpu.pipeline_mode<synchronous>, transform_indices = @transform_7, window_bounds = array<i64: 1, 32>}, {pipeline_mode = #tpu.pipeline_mode<synchronous>, transform_indices = @transform_8, window_bounds = array<i64: 1, 32>}, {pipeline_mode = #tpu.pipeline_mode<synchronous>, transform_indices = @transform_9, window_bounds = array<i64: 3, 2, 32, 16>}, {pipeline_mode = #tpu.pipeline_mode<synchronous>, transform_indices = @transform_10, window_bounds = array<i64: 2, 16, 2>}, {pipeline_mode = #tpu.pipeline_mode<synchronous>, transform_indices = @transform_11, window_bounds = array<i64: 2, 2, 16>}, {pipeline_mode = #tpu.pipeline_mode<synchronous>, transform_indices = @transform_12, window_bounds = array<i64: 2, 16, 32>}, {pipeline_mode = #tpu.pipeline_mode<synchronous>, transform_indices = @transform_13, window_bounds = array<i64: 1, 32>}, {pipeline_mode = #tpu.pipeline_mode<synchronous>, transform_indices = @transform_14, window_bounds = array<i64: 1, 32>}, {pipeline_mode = #tpu.pipeline_mode<synchronous>, transform_indices = @transform_15, window_bounds = array<i64: 1, 32>}, {pipeline_mode = #tpu.pipeline_mode<synchronous>, transform_indices = @transform_16, window_bounds = array<i64: 32, 64>}, {pipeline_mode = #tpu.pipeline_mode<synchronous>, transform_indices = @transform_17, window_bounds = array<i64: 1, 64>}, {pipeline_mode = #tpu.pipeline_mode<synchronous>, transform_indices = @transform_18, window_bounds = array<i64: 64, 32>}, {pipeline_mode = #tpu.pipeline_mode<synchronous>, transform_indices = @transform_19, window_bounds = array<i64: 1, 32>}, {transform_indices = @transform_20, window_bounds = array<i64: 1, 8, 32>}]} {
    %c0 = arith.constant 0 : index
    %c0_0 = arith.constant 0 : index
    %c0_1 = arith.constant 0 : index
    %0 = vector.load %arg1[%c0, %c0_0, %c0_1] : memref<1x8x32xf32, #tpu.memory_space<vmem>>, vector<1x8x32xf32>
    %1 = vector.shape_cast %0 : vector<1x8x32xf32> to vector<8x32xf32>
    %c0_2 = arith.constant 0 : index
    %c0_3 = arith.constant 0 : index
    %c0_4 = arith.constant 0 : index
    %2 = vector.load %arg2[%c0_2, %c0_3, %c0_4] : memref<1x8x32xf32, #tpu.memory_space<vmem>>, vector<1x8x32xf32>
    %3 = vector.shape_cast %2 : vector<1x8x32xf32> to vector<8x32xf32>
    %c0_5 = arith.constant 0 : index
    %c0_6 = arith.constant 0 : index
    %4 = vector.load %arg3[%c0_5, %c0_6] : memref<1x32xf32, #tpu.memory_space<vmem>>, vector<1x32xf32>
    %c0_7 = arith.constant 0 : index
    %c0_8 = arith.constant 0 : index
    %5 = vector.load %arg4[%c0_7, %c0_8] : memref<1x32xf32, #tpu.memory_space<vmem>>, vector<1x32xf32>
    %cst = arith.constant dense<0.000000e+00> : vector<8xf32>
    %6 = vector.multi_reduction <add>, %1, %cst [1] : vector<8x32xf32> to vector<8xf32>
    %7 = vector.shape_cast %6 : vector<8xf32> to vector<8x1xf32>
    %cst_9 = arith.constant 3.200000e+01 : f32
    %8 = vector.broadcast %cst_9 : f32 to vector<8x1xf32>
    %9 = arith.divf %7, %8 : vector<8x1xf32>
    %10 = vector.broadcast %9 : vector<8x1xf32> to vector<8x32xf32>
    %11 = arith.subf %1, %10 : vector<8x32xf32>
    %12 = arith.mulf %11, %11 : vector<8x32xf32>
    %cst_10 = arith.constant dense<0.000000e+00> : vector<8xf32>
    %13 = vector.multi_reduction <add>, %12, %cst_10 [1] : vector<8x32xf32> to vector<8xf32>
    %14 = vector.shape_cast %13 : vector<8xf32> to vector<8x1xf32>
    %cst_11 = arith.constant 3.200000e+01 : f32
    %15 = vector.broadcast %cst_11 : f32 to vector<8x1xf32>
    %16 = arith.divf %14, %15 : vector<8x1xf32>
    %17 = vector.broadcast %9 : vector<8x1xf32> to vector<8x32xf32>
    %18 = arith.subf %1, %17 : vector<8x32xf32>
    %cst_12 = arith.constant 9.99999974E-6 : f32
    %19 = vector.broadcast %cst_12 : f32 to vector<8x1xf32>
    %20 = arith.addf %16, %19 : vector<8x1xf32>
    %21 = math.rsqrt %20 : vector<8x1xf32>
    %22 = vector.broadcast %21 : vector<8x1xf32> to vector<8x32xf32>
    %23 = arith.mulf %18, %22 : vector<8x32xf32>
    %24 = vector.broadcast %4 : vector<1x32xf32> to vector<8x32xf32>
    %25 = arith.mulf %23, %24 : vector<8x32xf32>
    %26 = vector.broadcast %5 : vector<1x32xf32> to vector<8x32xf32>
    %27 = arith.addf %25, %26 : vector<8x32xf32>
    %28 = vector.shape_cast %27 : vector<8x32xf32> to vector<1x8x32xf32>
    %29 = vector.shape_cast %28 : vector<1x8x32xf32> to vector<1x8x32xf32>
    %30 = vector.broadcast %29 : vector<1x8x32xf32> to vector<2x8x32xf32>
    %c0_13 = arith.constant 0 : index
    %c0_14 = arith.constant 0 : index
    %c0_15 = arith.constant 0 : index
    %c0_16 = arith.constant 0 : index
    %31 = vector.load %arg5[%c0_13, %c0_14, %c0_15, %c0_16] : memref<3x2x32x16xf32, #tpu.memory_space<vmem>>, vector<1x2x32x16xf32>
    %32 = vector.shape_cast %31 : vector<1x2x32x16xf32> to vector<2x32x16xf32>
    "tpu.trace_start"() <{level = 10 : i32, message = "hnd,hde->hne"}> : () -> ()
    %cst_17 = arith.constant dense<0.000000e+00> : vector<2x8x16xf32>
    %33 = tpu.matmul %30, %32, %cst_17 {dimension_numbers = #tpu.dot_dimension_numbers<[2], [1], [1], [2], [0, 0, 0, 1, 1, 2], [0], [0]>} : vector<2x8x32xf32>, vector<2x32x16xf32>, vector<2x8x16xf32> -> vector<2x8x16xf32>
    "tpu.trace_stop"() : () -> ()
    %c1 = arith.constant 1 : index
    %c0_18 = arith.constant 0 : index
    %c0_19 = arith.constant 0 : index
    %c0_20 = arith.constant 0 : index
    %34 = vector.load %arg5[%c1, %c0_18, %c0_19, %c0_20] : memref<3x2x32x16xf32, #tpu.memory_space<vmem>>, vector<1x2x32x16xf32>
    %35 = vector.shape_cast %34 : vector<1x2x32x16xf32> to vector<2x32x16xf32>
    "tpu.trace_start"() <{level = 10 : i32, message = "hnd,hde->hne"}> : () -> ()
    %cst_21 = arith.constant dense<0.000000e+00> : vector<2x8x16xf32>
    %36 = tpu.matmul %30, %35, %cst_21 {dimension_numbers = #tpu.dot_dimension_numbers<[2], [1], [1], [2], [0, 0, 0, 1, 1, 2], [0], [0]>} : vector<2x8x32xf32>, vector<2x32x16xf32>, vector<2x8x16xf32> -> vector<2x8x16xf32>
    "tpu.trace_stop"() : () -> ()
    %c2 = arith.constant 2 : index
    %c0_22 = arith.constant 0 : index
    %c0_23 = arith.constant 0 : index
    %c0_24 = arith.constant 0 : index
    %37 = vector.load %arg5[%c2, %c0_22, %c0_23, %c0_24] : memref<3x2x32x16xf32, #tpu.memory_space<vmem>>, vector<1x2x32x16xf32>
    %38 = vector.shape_cast %37 : vector<1x2x32x16xf32> to vector<2x32x16xf32>
    "tpu.trace_start"() <{level = 10 : i32, message = "hnd,hde->hne"}> : () -> ()
    %cst_25 = arith.constant dense<0.000000e+00> : vector<2x8x16xf32>
    %39 = tpu.matmul %30, %38, %cst_25 {dimension_numbers = #tpu.dot_dimension_numbers<[2], [1], [1], [2], [0, 0, 0, 1, 1, 2], [0], [0]>} : vector<2x8x32xf32>, vector<2x32x16xf32>, vector<2x8x16xf32> -> vector<2x8x16xf32>
    "tpu.trace_stop"() : () -> ()
    %c0_26 = arith.constant 0 : index
    %c0_27 = arith.constant 0 : index
    %c0_28 = arith.constant 0 : index
    %40 = vector.load %arg6[%c0_26, %c0_27, %c0_28] : memref<2x16x32xf32, #tpu.memory_space<vmem>>, vector<2x16x32xf32>
    "tpu.trace_start"() <{level = 10 : i32, message = "hnd,hmd->hnm"}> : () -> ()
    %cst_29 = arith.constant dense<0.000000e+00> : vector<2x8x8xf32>
    %41 = tpu.matmul %33, %36, %cst_29 {dimension_numbers = #tpu.dot_dimension_numbers<[2], [2], [1], [1], [0, 0, 0, 1, 1, 1], [0], [0]>} : vector<2x8x16xf32>, vector<2x8x16xf32>, vector<2x8x8xf32> -> vector<2x8x8xf32>
    "tpu.trace_stop"() : () -> ()
    %cst_30 = arith.constant 0.176776692 : f32
    %42 = vector.broadcast %cst_30 : f32 to vector<2x8x8xf32>
    %43 = arith.mulf %41, %42 : vector<2x8x8xf32>
    %cst_31 = arith.constant dense<0xFF800000> : vector<2x8xf32>
    %44 = vector.multi_reduction <maximumf>, %43, %cst_31 [2] : vector<2x8x8xf32> to vector<2x8xf32>
    %45 = vector.shape_cast %44 : vector<2x8xf32> to vector<2x8x1xf32>
    %46 = vector.broadcast %45 : vector<2x8x1xf32> to vector<2x8x8xf32>
    %47 = arith.subf %43, %46 : vector<2x8x8xf32>
    %48 = math.exp %47 : vector<2x8x8xf32>
    %cst_32 = arith.constant dense<0.000000e+00> : vector<2x8xf32>
    %49 = vector.multi_reduction <add>, %48, %cst_32 [2] : vector<2x8x8xf32> to vector<2x8xf32>
    %50 = vector.shape_cast %49 : vector<2x8xf32> to vector<2x8x1xf32>
    %51 = tpu.reciprocal %50 {approx = true} : vector<2x8x1xf32> -> vector<2x8x1xf32>
    %52 = vector.broadcast %51 : vector<2x8x1xf32> to vector<2x8x8xf32>
    %53 = arith.mulf %48, %52 : vector<2x8x8xf32>
    "tpu.trace_start"() <{level = 10 : i32, message = "hnm,hmd->hnd"}> : () -> ()
    %cst_33 = arith.constant dense<0.000000e+00> : vector<2x8x16xf32>
    %54 = tpu.matmul %53, %39, %cst_33 {dimension_numbers = #tpu.dot_dimension_numbers<[2], [1], [1], [2], [0, 0, 0, 1, 1, 2], [0], [0]>} : vector<2x8x8xf32>, vector<2x8x16xf32>, vector<2x8x16xf32> -> vector<2x8x16xf32>
    "tpu.trace_stop"() : () -> ()
    "tpu.trace_start"() <{level = 10 : i32, message = "hnd,hde->hne"}> : () -> ()
    %cst_34 = arith.constant dense<0.000000e+00> : vector<2x8x32xf32>
    %55 = tpu.matmul %54, %40, %cst_34 {dimension_numbers = #tpu.dot_dimension_numbers<[2], [1], [1], [2], [0, 0, 0, 1, 1, 2], [0], [0]>} : vector<2x8x16xf32>, vector<2x16x32xf32>, vector<2x8x32xf32> -> vector<2x8x32xf32>
    "tpu.trace_stop"() : () -> ()
    %cst_35 = arith.constant dense<0.000000e+00> : vector<8x32xf32>
    %56 = vector.multi_reduction <add>, %55, %cst_35 [0] : vector<2x8x32xf32> to vector<8x32xf32>
    %57 = arith.addf %1, %56 : vector<8x32xf32>
    %c0_36 = arith.constant 0 : index
    %c0_37 = arith.constant 0 : index
    %58 = vector.load %arg7[%c0_36, %c0_37] : memref<1x32xf32, #tpu.memory_space<vmem>>, vector<1x32xf32>
    %59 = vector.broadcast %58 : vector<1x32xf32> to vector<8x32xf32>
    %60 = arith.addf %57, %59 : vector<8x32xf32>
    %c0_38 = arith.constant 0 : index
    %c0_39 = arith.constant 0 : index
    %61 = vector.load %arg8[%c0_38, %c0_39] : memref<1x32xf32, #tpu.memory_space<vmem>>, vector<1x32xf32>
    %c0_40 = arith.constant 0 : index
    %c0_41 = arith.constant 0 : index
    %62 = vector.load %arg9[%c0_40, %c0_41] : memref<1x32xf32, #tpu.memory_space<vmem>>, vector<1x32xf32>
    %cst_42 = arith.constant dense<0.000000e+00> : vector<8xf32>
    %63 = vector.multi_reduction <add>, %60, %cst_42 [1] : vector<8x32xf32> to vector<8xf32>
    %64 = vector.shape_cast %63 : vector<8xf32> to vector<8x1xf32>
    %cst_43 = arith.constant 3.200000e+01 : f32
    %65 = vector.broadcast %cst_43 : f32 to vector<8x1xf32>
    %66 = arith.divf %64, %65 : vector<8x1xf32>
    %67 = vector.broadcast %66 : vector<8x1xf32> to vector<8x32xf32>
    %68 = arith.subf %60, %67 : vector<8x32xf32>
    %69 = arith.mulf %68, %68 : vector<8x32xf32>
    %cst_44 = arith.constant dense<0.000000e+00> : vector<8xf32>
    %70 = vector.multi_reduction <add>, %69, %cst_44 [1] : vector<8x32xf32> to vector<8xf32>
    %71 = vector.shape_cast %70 : vector<8xf32> to vector<8x1xf32>
    %cst_45 = arith.constant 3.200000e+01 : f32
    %72 = vector.broadcast %cst_45 : f32 to vector<8x1xf32>
    %73 = arith.divf %71, %72 : vector<8x1xf32>
    %74 = vector.broadcast %66 : vector<8x1xf32> to vector<8x32xf32>
    %75 = arith.subf %60, %74 : vector<8x32xf32>
    %cst_46 = arith.constant 9.99999974E-6 : f32
    %76 = vector.broadcast %cst_46 : f32 to vector<8x1xf32>
    %77 = arith.addf %73, %76 : vector<8x1xf32>
    %78 = math.rsqrt %77 : vector<8x1xf32>
    %79 = vector.broadcast %78 : vector<8x1xf32> to vector<8x32xf32>
    %80 = arith.mulf %75, %79 : vector<8x32xf32>
    %81 = vector.broadcast %61 : vector<1x32xf32> to vector<8x32xf32>
    %82 = arith.mulf %80, %81 : vector<8x32xf32>
    %83 = vector.broadcast %62 : vector<1x32xf32> to vector<8x32xf32>
    %84 = arith.addf %82, %83 : vector<8x32xf32>
    %c0_47 = arith.constant 0 : index
    %c0_48 = arith.constant 0 : index
    %85 = vector.load %arg8[%c0_47, %c0_48] : memref<1x32xf32, #tpu.memory_space<vmem>>, vector<1x32xf32>
    %c0_49 = arith.constant 0 : index
    %c0_50 = arith.constant 0 : index
    %86 = vector.load %arg9[%c0_49, %c0_50] : memref<1x32xf32, #tpu.memory_space<vmem>>, vector<1x32xf32>
    %cst_51 = arith.constant dense<0.000000e+00> : vector<8xf32>
    %87 = vector.multi_reduction <add>, %3, %cst_51 [1] : vector<8x32xf32> to vector<8xf32>
    %88 = vector.shape_cast %87 : vector<8xf32> to vector<8x1xf32>
    %cst_52 = arith.constant 3.200000e+01 : f32
    %89 = vector.broadcast %cst_52 : f32 to vector<8x1xf32>
    %90 = arith.divf %88, %89 : vector<8x1xf32>
    %91 = vector.broadcast %90 : vector<8x1xf32> to vector<8x32xf32>
    %92 = arith.subf %3, %91 : vector<8x32xf32>
    %93 = arith.mulf %92, %92 : vector<8x32xf32>
    %cst_53 = arith.constant dense<0.000000e+00> : vector<8xf32>
    %94 = vector.multi_reduction <add>, %93, %cst_53 [1] : vector<8x32xf32> to vector<8xf32>
    %95 = vector.shape_cast %94 : vector<8xf32> to vector<8x1xf32>
    %cst_54 = arith.constant 3.200000e+01 : f32
    %96 = vector.broadcast %cst_54 : f32 to vector<8x1xf32>
    %97 = arith.divf %95, %96 : vector<8x1xf32>
    %98 = vector.broadcast %90 : vector<8x1xf32> to vector<8x32xf32>
    %99 = arith.subf %3, %98 : vector<8x32xf32>
    %cst_55 = arith.constant 9.99999974E-6 : f32
    %100 = vector.broadcast %cst_55 : f32 to vector<8x1xf32>
    %101 = arith.addf %97, %100 : vector<8x1xf32>
    %102 = math.rsqrt %101 : vector<8x1xf32>
    %103 = vector.broadcast %102 : vector<8x1xf32> to vector<8x32xf32>
    %104 = arith.mulf %99, %103 : vector<8x32xf32>
    %105 = vector.broadcast %85 : vector<1x32xf32> to vector<8x32xf32>
    %106 = arith.mulf %104, %105 : vector<8x32xf32>
    %107 = vector.broadcast %86 : vector<1x32xf32> to vector<8x32xf32>
    %108 = arith.addf %106, %107 : vector<8x32xf32>
    %109 = vector.shape_cast %84 : vector<8x32xf32> to vector<1x8x32xf32>
    %110 = vector.shape_cast %109 : vector<1x8x32xf32> to vector<1x8x32xf32>
    %111 = vector.broadcast %110 : vector<1x8x32xf32> to vector<2x8x32xf32>
    %112 = vector.shape_cast %108 : vector<8x32xf32> to vector<1x8x32xf32>
    %113 = vector.shape_cast %112 : vector<1x8x32xf32> to vector<1x8x32xf32>
    %114 = vector.broadcast %113 : vector<1x8x32xf32> to vector<2x8x32xf32>
    %c0_56 = arith.constant 0 : index
    %c0_57 = arith.constant 0 : index
    %c0_58 = arith.constant 0 : index
    %c0_59 = arith.constant 0 : index
    %115 = vector.load %arg10[%c0_56, %c0_57, %c0_58, %c0_59] : memref<3x2x32x16xf32, #tpu.memory_space<vmem>>, vector<1x2x32x16xf32>
    %116 = vector.shape_cast %115 : vector<1x2x32x16xf32> to vector<2x32x16xf32>
    "tpu.trace_start"() <{level = 10 : i32, message = "hnd,hde->hne"}> : () -> ()
    %cst_60 = arith.constant dense<0.000000e+00> : vector<2x8x16xf32>
    %117 = tpu.matmul %111, %116, %cst_60 {dimension_numbers = #tpu.dot_dimension_numbers<[2], [1], [1], [2], [0, 0, 0, 1, 1, 2], [0], [0]>} : vector<2x8x32xf32>, vector<2x32x16xf32>, vector<2x8x16xf32> -> vector<2x8x16xf32>
    "tpu.trace_stop"() : () -> ()
    %c1_61 = arith.constant 1 : index
    %c0_62 = arith.constant 0 : index
    %c0_63 = arith.constant 0 : index
    %c0_64 = arith.constant 0 : index
    %118 = vector.load %arg10[%c1_61, %c0_62, %c0_63, %c0_64] : memref<3x2x32x16xf32, #tpu.memory_space<vmem>>, vector<1x2x32x16xf32>
    %119 = vector.shape_cast %118 : vector<1x2x32x16xf32> to vector<2x32x16xf32>
    "tpu.trace_start"() <{level = 10 : i32, message = "hnd,hde->hne"}> : () -> ()
    %cst_65 = arith.constant dense<0.000000e+00> : vector<2x8x16xf32>
    %120 = tpu.matmul %114, %119, %cst_65 {dimension_numbers = #tpu.dot_dimension_numbers<[2], [1], [1], [2], [0, 0, 0, 1, 1, 2], [0], [0]>} : vector<2x8x32xf32>, vector<2x32x16xf32>, vector<2x8x16xf32> -> vector<2x8x16xf32>
    "tpu.trace_stop"() : () -> ()
    %c2_66 = arith.constant 2 : index
    %c0_67 = arith.constant 0 : index
    %c0_68 = arith.constant 0 : index
    %c0_69 = arith.constant 0 : index
    %121 = vector.load %arg10[%c2_66, %c0_67, %c0_68, %c0_69] : memref<3x2x32x16xf32, #tpu.memory_space<vmem>>, vector<1x2x32x16xf32>
    %122 = vector.shape_cast %121 : vector<1x2x32x16xf32> to vector<2x32x16xf32>
    "tpu.trace_start"() <{level = 10 : i32, message = "hnd,hde->hne"}> : () -> ()
    %cst_70 = arith.constant dense<0.000000e+00> : vector<2x8x16xf32>
    %123 = tpu.matmul %114, %122, %cst_70 {dimension_numbers = #tpu.dot_dimension_numbers<[2], [1], [1], [2], [0, 0, 0, 1, 1, 2], [0], [0]>} : vector<2x8x32xf32>, vector<2x32x16xf32>, vector<2x8x16xf32> -> vector<2x8x16xf32>
    "tpu.trace_stop"() : () -> ()
    %cst_71 = arith.constant dense<0xFF800000> : vector<2x16xf32>
    %124 = vector.multi_reduction <maximumf>, %117, %cst_71 [1] : vector<2x8x16xf32> to vector<2x16xf32>
    %125 = vector.shape_cast %124 : vector<2x16xf32> to vector<2x1x16xf32>
    %cst_72 = arith.constant dense<0.000000e+00> : vector<2x16xf32>
    %126 = vector.multi_reduction <add>, %117, %cst_72 [1] : vector<2x8x16xf32> to vector<2x16xf32>
    %127 = vector.shape_cast %126 : vector<2x16xf32> to vector<2x1x16xf32>
    %cst_73 = arith.constant 8.000000e+00 : f32
    %128 = vector.broadcast %cst_73 : f32 to vector<2x1x16xf32>
    %129 = arith.divf %127, %128 : vector<2x1x16xf32>
    %130 = arith.addf %125, %129 : vector<2x1x16xf32>
    %c0_74 = arith.constant 0 : index
    %c0_75 = arith.constant 0 : index
    %c0_76 = arith.constant 0 : index
    %131 = vector.load %arg11[%c0_74, %c0_75, %c0_76] : memref<2x16x2xf32, #tpu.memory_space<vmem>>, vector<2x16x2xf32>
    "tpu.trace_start"() <{level = 10 : i32, message = "hxd,hdc->hxc"}> : () -> ()
    %cst_77 = arith.constant dense<0.000000e+00> : vector<2x1x2xf32>
    %132 = tpu.matmul %130, %131, %cst_77 {dimension_numbers = #tpu.dot_dimension_numbers<[2], [1], [1], [2], [0, 0, 0, 1, 1, 2], [0], [0]>} : vector<2x1x16xf32>, vector<2x16x2xf32>, vector<2x1x2xf32> -> vector<2x1x2xf32>
    "tpu.trace_stop"() : () -> ()
    %cst_78 = arith.constant dense<0.000000e+00> : vector<1x2xf32>
    %133 = vector.multi_reduction <add>, %132, %cst_78 [0] : vector<2x1x2xf32> to vector<1x2xf32>
    %cst_79 = arith.constant 0.000000e+00 : f32
    %134 = vector.broadcast %cst_79 : f32 to vector<1x2xf32>
    %135 = arith.maximumf %133, %134 : vector<1x2xf32>
    %136 = vector.shape_cast %135 : vector<1x2xf32> to vector<1x1x2xf32>
    %137 = vector.shape_cast %136 : vector<1x1x2xf32> to vector<1x1x2xf32>
    %138 = vector.broadcast %137 : vector<1x1x2xf32> to vector<2x1x2xf32>
    %c0_80 = arith.constant 0 : index
    %c0_81 = arith.constant 0 : index
    %c0_82 = arith.constant 0 : index
    %139 = vector.load %arg12[%c0_80, %c0_81, %c0_82] : memref<2x2x16xf32, #tpu.memory_space<vmem>>, vector<2x2x16xf32>
    "tpu.trace_start"() <{level = 10 : i32, message = "hxc,hcd->hxd"}> : () -> ()
    %cst_83 = arith.constant dense<0.000000e+00> : vector<2x1x16xf32>
    %140 = tpu.matmul %138, %139, %cst_83 {dimension_numbers = #tpu.dot_dimension_numbers<[2], [1], [1], [2], [0, 0, 0, 1, 1, 2], [0], [0]>} : vector<2x1x2xf32>, vector<2x2x16xf32>, vector<2x1x16xf32> -> vector<2x1x16xf32>
    "tpu.trace_stop"() : () -> ()
    %141 = arith.negf %140 : vector<2x1x16xf32>
    %142 = math.exp %141 : vector<2x1x16xf32>
    %cst_84 = arith.constant 1.000000e+00 : f32
    %143 = vector.broadcast %cst_84 : f32 to vector<2x1x16xf32>
    %144 = arith.addf %143, %142 : vector<2x1x16xf32>
    %145 = arith.divf %143, %144 : vector<2x1x16xf32>
    %146 = vector.broadcast %145 : vector<2x1x16xf32> to vector<2x8x16xf32>
    %147 = arith.mulf %117, %146 : vector<2x8x16xf32>
    %cst_85 = arith.constant dense<0xFF800000> : vector<2x16xf32>
    %148 = vector.multi_reduction <maximumf>, %120, %cst_85 [1] : vector<2x8x16xf32> to vector<2x16xf32>
    %149 = vector.shape_cast %148 : vector<2x16xf32> to vector<2x1x16xf32>
    %cst_86 = arith.constant dense<0.000000e+00> : vector<2x16xf32>
    %150 = vector.multi_reduction <add>, %120, %cst_86 [1] : vector<2x8x16xf32> to vector<2x16xf32>
    %151 = vector.shape_cast %150 : vector<2x16xf32> to vector<2x1x16xf32>
    %cst_87 = arith.constant 8.000000e+00 : f32
    %152 = vector.broadcast %cst_87 : f32 to vector<2x1x16xf32>
    %153 = arith.divf %151, %152 : vector<2x1x16xf32>
    %154 = arith.addf %149, %153 : vector<2x1x16xf32>
    %c0_88 = arith.constant 0 : index
    %c0_89 = arith.constant 0 : index
    %c0_90 = arith.constant 0 : index
    %155 = vector.load %arg11[%c0_88, %c0_89, %c0_90] : memref<2x16x2xf32, #tpu.memory_space<vmem>>, vector<2x16x2xf32>
    "tpu.trace_start"() <{level = 10 : i32, message = "hxd,hdc->hxc"}> : () -> ()
    %cst_91 = arith.constant dense<0.000000e+00> : vector<2x1x2xf32>
    %156 = tpu.matmul %154, %155, %cst_91 {dimension_numbers = #tpu.dot_dimension_numbers<[2], [1], [1], [2], [0, 0, 0, 1, 1, 2], [0], [0]>} : vector<2x1x16xf32>, vector<2x16x2xf32>, vector<2x1x2xf32> -> vector<2x1x2xf32>
    "tpu.trace_stop"() : () -> ()
    %cst_92 = arith.constant dense<0.000000e+00> : vector<1x2xf32>
    %157 = vector.multi_reduction <add>, %156, %cst_92 [0] : vector<2x1x2xf32> to vector<1x2xf32>
    %cst_93 = arith.constant 0.000000e+00 : f32
    %158 = vector.broadcast %cst_93 : f32 to vector<1x2xf32>
    %159 = arith.maximumf %157, %158 : vector<1x2xf32>
    %160 = vector.shape_cast %159 : vector<1x2xf32> to vector<1x1x2xf32>
    %161 = vector.shape_cast %160 : vector<1x1x2xf32> to vector<1x1x2xf32>
    %162 = vector.broadcast %161 : vector<1x1x2xf32> to vector<2x1x2xf32>
    %c0_94 = arith.constant 0 : index
    %c0_95 = arith.constant 0 : index
    %c0_96 = arith.constant 0 : index
    %163 = vector.load %arg12[%c0_94, %c0_95, %c0_96] : memref<2x2x16xf32, #tpu.memory_space<vmem>>, vector<2x2x16xf32>
    "tpu.trace_start"() <{level = 10 : i32, message = "hxc,hcd->hxd"}> : () -> ()
    %cst_97 = arith.constant dense<0.000000e+00> : vector<2x1x16xf32>
    %164 = tpu.matmul %162, %163, %cst_97 {dimension_numbers = #tpu.dot_dimension_numbers<[2], [1], [1], [2], [0, 0, 0, 1, 1, 2], [0], [0]>} : vector<2x1x2xf32>, vector<2x2x16xf32>, vector<2x1x16xf32> -> vector<2x1x16xf32>
    "tpu.trace_stop"() : () -> ()
    %165 = arith.negf %164 : vector<2x1x16xf32>
    %166 = math.exp %165 : vector<2x1x16xf32>
    %cst_98 = arith.constant 1.000000e+00 : f32
    %167 = vector.broadcast %cst_98 : f32 to vector<2x1x16xf32>
    %168 = arith.addf %167, %166 : vector<2x1x16xf32>
    %169 = arith.divf %167, %168 : vector<2x1x16xf32>
    %170 = vector.broadcast %169 : vector<2x1x16xf32> to vector<2x8x16xf32>
    %171 = arith.mulf %120, %170 : vector<2x8x16xf32>
    %cst_99 = arith.constant dense<0xFF800000> : vector<2x16xf32>
    %172 = vector.multi_reduction <maximumf>, %123, %cst_99 [1] : vector<2x8x16xf32> to vector<2x16xf32>
    %173 = vector.shape_cast %172 : vector<2x16xf32> to vector<2x1x16xf32>
    %cst_100 = arith.constant dense<0.000000e+00> : vector<2x16xf32>
    %174 = vector.multi_reduction <add>, %123, %cst_100 [1] : vector<2x8x16xf32> to vector<2x16xf32>
    %175 = vector.shape_cast %174 : vector<2x16xf32> to vector<2x1x16xf32>
    %cst_101 = arith.constant 8.000000e+00 : f32
    %176 = vector.broadcast %cst_101 : f32 to vector<2x1x16xf32>
    %177 = arith.divf %175, %176 : vector<2x1x16xf32>
    %178 = arith.addf %173, %177 : vector<2x1x16xf32>
    %c0_102 = arith.constant 0 : index
    %c0_103 = arith.constant 0 : index
    %c0_104 = arith.constant 0 : index
    %179 = vector.load %arg11[%c0_102, %c0_103, %c0_104] : memref<2x16x2xf32, #tpu.memory_space<vmem>>, vector<2x16x2xf32>
    "tpu.trace_start"() <{level = 10 : i32, message = "hxd,hdc->hxc"}> : () -> ()
    %cst_105 = arith.constant dense<0.000000e+00> : vector<2x1x2xf32>
    %180 = tpu.matmul %178, %179, %cst_105 {dimension_numbers = #tpu.dot_dimension_numbers<[2], [1], [1], [2], [0, 0, 0, 1, 1, 2], [0], [0]>} : vector<2x1x16xf32>, vector<2x16x2xf32>, vector<2x1x2xf32> -> vector<2x1x2xf32>
    "tpu.trace_stop"() : () -> ()
    %cst_106 = arith.constant dense<0.000000e+00> : vector<1x2xf32>
    %181 = vector.multi_reduction <add>, %180, %cst_106 [0] : vector<2x1x2xf32> to vector<1x2xf32>
    %cst_107 = arith.constant 0.000000e+00 : f32
    %182 = vector.broadcast %cst_107 : f32 to vector<1x2xf32>
    %183 = arith.maximumf %181, %182 : vector<1x2xf32>
    %184 = vector.shape_cast %183 : vector<1x2xf32> to vector<1x1x2xf32>
    %185 = vector.shape_cast %184 : vector<1x1x2xf32> to vector<1x1x2xf32>
    %186 = vector.broadcast %185 : vector<1x1x2xf32> to vector<2x1x2xf32>
    %c0_108 = arith.constant 0 : index
    %c0_109 = arith.constant 0 : index
    %c0_110 = arith.constant 0 : index
    %187 = vector.load %arg12[%c0_108, %c0_109, %c0_110] : memref<2x2x16xf32, #tpu.memory_space<vmem>>, vector<2x2x16xf32>
    "tpu.trace_start"() <{level = 10 : i32, message = "hxc,hcd->hxd"}> : () -> ()
    %cst_111 = arith.constant dense<0.000000e+00> : vector<2x1x16xf32>
    %188 = tpu.matmul %186, %187, %cst_111 {dimension_numbers = #tpu.dot_dimension_numbers<[2], [1], [1], [2], [0, 0, 0, 1, 1, 2], [0], [0]>} : vector<2x1x2xf32>, vector<2x2x16xf32>, vector<2x1x16xf32> -> vector<2x1x16xf32>
    "tpu.trace_stop"() : () -> ()
    %189 = arith.negf %188 : vector<2x1x16xf32>
    %190 = math.exp %189 : vector<2x1x16xf32>
    %cst_112 = arith.constant 1.000000e+00 : f32
    %191 = vector.broadcast %cst_112 : f32 to vector<2x1x16xf32>
    %192 = arith.addf %191, %190 : vector<2x1x16xf32>
    %193 = arith.divf %191, %192 : vector<2x1x16xf32>
    %194 = vector.broadcast %193 : vector<2x1x16xf32> to vector<2x8x16xf32>
    %195 = arith.mulf %123, %194 : vector<2x8x16xf32>
    %c0_113 = arith.constant 0 : index
    %c0_114 = arith.constant 0 : index
    %c0_115 = arith.constant 0 : index
    %196 = vector.load %arg13[%c0_113, %c0_114, %c0_115] : memref<2x16x32xf32, #tpu.memory_space<vmem>>, vector<2x16x32xf32>
    "tpu.trace_start"() <{level = 10 : i32, message = "hnd,hmd->hnm"}> : () -> ()
    %cst_116 = arith.constant dense<0.000000e+00> : vector<2x8x8xf32>
    %197 = tpu.matmul %147, %171, %cst_116 {dimension_numbers = #tpu.dot_dimension_numbers<[2], [2], [1], [1], [0, 0, 0, 1, 1, 1], [0], [0]>} : vector<2x8x16xf32>, vector<2x8x16xf32>, vector<2x8x8xf32> -> vector<2x8x8xf32>
    "tpu.trace_stop"() : () -> ()
    %cst_117 = arith.constant 0.176776692 : f32
    %198 = vector.broadcast %cst_117 : f32 to vector<2x8x8xf32>
    %199 = arith.mulf %197, %198 : vector<2x8x8xf32>
    %cst_118 = arith.constant dense<0xFF800000> : vector<2x8xf32>
    %200 = vector.multi_reduction <maximumf>, %199, %cst_118 [2] : vector<2x8x8xf32> to vector<2x8xf32>
    %201 = vector.shape_cast %200 : vector<2x8xf32> to vector<2x8x1xf32>
    %202 = vector.broadcast %201 : vector<2x8x1xf32> to vector<2x8x8xf32>
    %203 = arith.subf %199, %202 : vector<2x8x8xf32>
    %204 = math.exp %203 : vector<2x8x8xf32>
    %cst_119 = arith.constant dense<0.000000e+00> : vector<2x8xf32>
    %205 = vector.multi_reduction <add>, %204, %cst_119 [2] : vector<2x8x8xf32> to vector<2x8xf32>
    %206 = vector.shape_cast %205 : vector<2x8xf32> to vector<2x8x1xf32>
    %207 = tpu.reciprocal %206 {approx = true} : vector<2x8x1xf32> -> vector<2x8x1xf32>
    %208 = vector.broadcast %207 : vector<2x8x1xf32> to vector<2x8x8xf32>
    %209 = arith.mulf %204, %208 : vector<2x8x8xf32>
    "tpu.trace_start"() <{level = 10 : i32, message = "hnm,hmd->hnd"}> : () -> ()
    %cst_120 = arith.constant dense<0.000000e+00> : vector<2x8x16xf32>
    %210 = tpu.matmul %209, %195, %cst_120 {dimension_numbers = #tpu.dot_dimension_numbers<[2], [1], [1], [2], [0, 0, 0, 1, 1, 2], [0], [0]>} : vector<2x8x8xf32>, vector<2x8x16xf32>, vector<2x8x16xf32> -> vector<2x8x16xf32>
    "tpu.trace_stop"() : () -> ()
    "tpu.trace_start"() <{level = 10 : i32, message = "hnd,hde->hne"}> : () -> ()
    %cst_121 = arith.constant dense<0.000000e+00> : vector<2x8x32xf32>
    %211 = tpu.matmul %210, %196, %cst_121 {dimension_numbers = #tpu.dot_dimension_numbers<[2], [1], [1], [2], [0, 0, 0, 1, 1, 2], [0], [0]>} : vector<2x8x16xf32>, vector<2x16x32xf32>, vector<2x8x32xf32> -> vector<2x8x32xf32>
    "tpu.trace_stop"() : () -> ()
    %cst_122 = arith.constant dense<0.000000e+00> : vector<8x32xf32>
    %212 = vector.multi_reduction <add>, %211, %cst_122 [0] : vector<2x8x32xf32> to vector<8x32xf32>
    %213 = arith.addf %60, %212 : vector<8x32xf32>
    %c0_123 = arith.constant 0 : index
    %c0_124 = arith.constant 0 : index
    %214 = vector.load %arg14[%c0_123, %c0_124] : memref<1x32xf32, #tpu.memory_space<vmem>>, vector<1x32xf32>
    %215 = vector.broadcast %214 : vector<1x32xf32> to vector<8x32xf32>
    %216 = arith.addf %213, %215 : vector<8x32xf32>
    %c0_125 = arith.constant 0 : index
    %c0_126 = arith.constant 0 : index
    %217 = vector.load %arg15[%c0_125, %c0_126] : memref<1x32xf32, #tpu.memory_space<vmem>>, vector<1x32xf32>
    %c0_127 = arith.constant 0 : index
    %c0_128 = arith.constant 0 : index
    %218 = vector.load %arg16[%c0_127, %c0_128] : memref<1x32xf32, #tpu.memory_space<vmem>>, vector<1x32xf32>
    %cst_129 = arith.constant dense<0.000000e+00> : vector<8xf32>
    %219 = vector.multi_reduction <add>, %216, %cst_129 [1] : vector<8x32xf32> to vector<8xf32>
    %220 = vector.shape_cast %219 : vector<8xf32> to vector<8x1xf32>
    %cst_130 = arith.constant 3.200000e+01 : f32
    %221 = vector.broadcast %cst_130 : f32 to vector<8x1xf32>
    %222 = arith.divf %220, %221 : vector<8x1xf32>
    %223 = vector.broadcast %222 : vector<8x1xf32> to vector<8x32xf32>
    %224 = arith.subf %216, %223 : vector<8x32xf32>
    %225 = arith.mulf %224, %224 : vector<8x32xf32>
    %cst_131 = arith.constant dense<0.000000e+00> : vector<8xf32>
    %226 = vector.multi_reduction <add>, %225, %cst_131 [1] : vector<8x32xf32> to vector<8xf32>
    %227 = vector.shape_cast %226 : vector<8xf32> to vector<8x1xf32>
    %cst_132 = arith.constant 3.200000e+01 : f32
    %228 = vector.broadcast %cst_132 : f32 to vector<8x1xf32>
    %229 = arith.divf %227, %228 : vector<8x1xf32>
    %230 = vector.broadcast %222 : vector<8x1xf32> to vector<8x32xf32>
    %231 = arith.subf %216, %230 : vector<8x32xf32>
    %cst_133 = arith.constant 9.99999974E-6 : f32
    %232 = vector.broadcast %cst_133 : f32 to vector<8x1xf32>
    %233 = arith.addf %229, %232 : vector<8x1xf32>
    %234 = math.rsqrt %233 : vector<8x1xf32>
    %235 = vector.broadcast %234 : vector<8x1xf32> to vector<8x32xf32>
    %236 = arith.mulf %231, %235 : vector<8x32xf32>
    %237 = vector.broadcast %217 : vector<1x32xf32> to vector<8x32xf32>
    %238 = arith.mulf %236, %237 : vector<8x32xf32>
    %239 = vector.broadcast %218 : vector<1x32xf32> to vector<8x32xf32>
    %240 = arith.addf %238, %239 : vector<8x32xf32>
    %c0_134 = arith.constant 0 : index
    %c0_135 = arith.constant 0 : index
    %241 = vector.load %arg17[%c0_134, %c0_135] : memref<32x64xf32, #tpu.memory_space<vmem>>, vector<32x64xf32>
    %cst_136 = arith.constant dense<0.000000e+00> : vector<8x64xf32>
    %242 = tpu.matmul %240, %241, %cst_136 {dimension_numbers = #tpu.dot_dimension_numbers<[1], [0], [0], [1], [0, 0, 1, 1], [], []>} : vector<8x32xf32>, vector<32x64xf32>, vector<8x64xf32> -> vector<8x64xf32>
    %c0_137 = arith.constant 0 : index
    %c0_138 = arith.constant 0 : index
    %243 = vector.load %arg18[%c0_137, %c0_138] : memref<1x64xf32, #tpu.memory_space<vmem>>, vector<1x64xf32>
    %244 = vector.broadcast %243 : vector<1x64xf32> to vector<8x64xf32>
    %245 = arith.addf %242, %244 : vector<8x64xf32>
    %cst_139 = arith.constant 5.000000e-01 : f32
    %246 = vector.broadcast %cst_139 : f32 to vector<8x64xf32>
    %247 = arith.mulf %246, %245 : vector<8x64xf32>
    %cst_140 = arith.constant 0.707106769 : f32
    %248 = vector.broadcast %cst_140 : f32 to vector<8x64xf32>
    %249 = arith.mulf %245, %248 : vector<8x64xf32>
    %250 = math.erf %249 : vector<8x64xf32>
    %cst_141 = arith.constant 1.000000e+00 : f32
    %251 = vector.broadcast %cst_141 : f32 to vector<8x64xf32>
    %252 = arith.addf %251, %250 : vector<8x64xf32>
    %253 = arith.mulf %247, %252 : vector<8x64xf32>
    %c0_142 = arith.constant 0 : index
    %c0_143 = arith.constant 0 : index
    %254 = vector.load %arg19[%c0_142, %c0_143] : memref<64x32xf32, #tpu.memory_space<vmem>>, vector<64x32xf32>
    %cst_144 = arith.constant dense<0.000000e+00> : vector<8x32xf32>
    %255 = tpu.matmul %253, %254, %cst_144 {dimension_numbers = #tpu.dot_dimension_numbers<[1], [0], [0], [1], [0, 0, 1, 1], [], []>} : vector<8x64xf32>, vector<64x32xf32>, vector<8x32xf32> -> vector<8x32xf32>
    %256 = arith.addf %216, %255 : vector<8x32xf32>
    %c0_145 = arith.constant 0 : index
    %c0_146 = arith.constant 0 : index
    %257 = vector.load %arg20[%c0_145, %c0_146] : memref<1x32xf32, #tpu.memory_space<vmem>>, vector<1x32xf32>
    %258 = vector.broadcast %257 : vector<1x32xf32> to vector<8x32xf32>
    %259 = arith.addf %256, %258 : vector<8x32xf32>
    %c0_147 = arith.constant 0 : index
    %c0_148 = arith.constant 0 : index
    %c0_149 = arith.constant 0 : index
    %260 = vector.load %arg21[%c0_147, %c0_148, %c0_149] : memref<1x8x32xf32, #tpu.memory_space<vmem>>, vector<1x8x32xf32>
    %261 = vector.shape_cast %260 : vector<1x8x32xf32> to vector<8x32xf32>
    %262 = vector.shape_cast %259 : vector<8x32xf32> to vector<1x8x32xf32>
    tpu.vector_store %arg21[%c0_147, %c0_148, %c0_149], %262 {strides = array<i32>} : memref<1x8x32xf32, #tpu.memory_space<vmem>>, vector<1x8x32xf32>,
    return
  }
  func.func @transform_0(%arg0: i32) -> (i32, i32, i32) {
    %c0_i32 = arith.constant 0 : i32
    %c0_i32_0 = arith.constant 0 : i32
    %c0_i32_1 = arith.constant 0 : i32
    return %arg0, %c0_i32, %c0_i32_0 : i32, i32, i32
  }
  func.func @transform_1(%arg0: i32) -> (i32, i32, i32) {
    %c0_i32 = arith.constant 0 : i32
    %c0_i32_0 = arith.constant 0 : i32
    %c0_i32_1 = arith.constant 0 : i32
    return %arg0, %c0_i32, %c0_i32_0 : i32, i32, i32
  }
  func.func @transform_2(%arg0: i32) -> (i32, i32) {
    %c0_i32 = arith.constant 0 : i32
    %c0_i32_0 = arith.constant 0 : i32
    %c0_i32_1 = arith.constant 0 : i32
    return %c0_i32, %c0_i32_0 : i32, i32
  }
  func.func @transform_3(%arg0: i32) -> (i32, i32) {
    %c0_i32 = arith.constant 0 : i32
    %c0_i32_0 = arith.constant 0 : i32
    %c0_i32_1 = arith.constant 0 : i32
    return %c0_i32, %c0_i32_0 : i32, i32
  }
  func.func @transform_4(%arg0: i32) -> (i32, i32, i32, i32) {
    %c0_i32 = arith.constant 0 : i32
    %c0_i32_0 = arith.constant 0 : i32
    %c0_i32_1 = arith.constant 0 : i32
    %c0_i32_2 = arith.constant 0 : i32
    %c0_i32_3 = arith.constant 0 : i32
    return %c0_i32, %c0_i32_0, %c0_i32_1, %c0_i32_2 : i32, i32, i32, i32
  }
  func.func @transform_5(%arg0: i32) -> (i32, i32, i32) {
    %c0_i32 = arith.constant 0 : i32
    %c0_i32_0 = arith.constant 0 : i32
    %c0_i32_1 = arith.constant 0 : i32
    %c0_i32_2 = arith.constant 0 : i32
    return %c0_i32, %c0_i32_0, %c0_i32_1 : i32, i32, i32
  }
  func.func @transform_6(%arg0: i32) -> (i32, i32) {
    %c0_i32 = arith.constant 0 : i32
    %c0_i32_0 = arith.constant 0 : i32
    %c0_i32_1 = arith.constant 0 : i32
    return %c0_i32, %c0_i32_0 : i32, i32
  }
  func.func @transform_7(%arg0: i32) -> (i32, i32) {
    %c0_i32 = arith.constant 0 : i32
    %c0_i32_0 = arith.constant 0 : i32
    %c0_i32_1 = arith.constant 0 : i32
    return %c0_i32, %c0_i32_0 : i32, i32
  }
  func.func @transform_8(%arg0: i32) -> (i32, i32) {
    %c0_i32 = arith.constant 0 : i32
    %c0_i32_0 = arith.constant 0 : i32
    %c0_i32_1 = arith.constant 0 : i32
    return %c0_i32, %c0_i32_0 : i32, i32
  }
  func.func @transform_9(%arg0: i32) -> (i32, i32, i32, i32) {
    %c0_i32 = arith.constant 0 : i32
    %c0_i32_0 = arith.constant 0 : i32
    %c0_i32_1 = arith.constant 0 : i32
    %c0_i32_2 = arith.constant 0 : i32
    %c0_i32_3 = arith.constant 0 : i32
    return %c0_i32, %c0_i32_0, %c0_i32_1, %c0_i32_2 : i32, i32, i32, i32
  }
  func.func @transform_10(%arg0: i32) -> (i32, i32, i32) {
    %c0_i32 = arith.constant 0 : i32
    %c0_i32_0 = arith.constant 0 : i32
    %c0_i32_1 = arith.constant 0 : i32
    %c0_i32_2 = arith.constant 0 : i32
    return %c0_i32, %c0_i32_0, %c0_i32_1 : i32, i32, i32
  }
  func.func @transform_11(%arg0: i32) -> (i32, i32, i32) {
    %c0_i32 = arith.constant 0 : i32
    %c0_i32_0 = arith.constant 0 : i32
    %c0_i32_1 = arith.constant 0 : i32
    %c0_i32_2 = arith.constant 0 : i32
    return %c0_i32, %c0_i32_0, %c0_i32_1 : i32, i32, i32
  }
  func.func @transform_12(%arg0: i32) -> (i32, i32, i32) {
    %c0_i32 = arith.constant 0 : i32
    %c0_i32_0 = arith.constant 0 : i32
    %c0_i32_1 = arith.constant 0 : i32
    %c0_i32_2 = arith.constant 0 : i32
    return %c0_i32, %c0_i32_0, %c0_i32_1 : i32, i32, i32
  }
  func.func @transform_13(%arg0: i32) -> (i32, i32) {
    %c0_i32 = arith.constant 0 : i32
    %c0_i32_0 = arith.constant 0 : i32
    %c0_i32_1 = arith.constant 0 : i32
    return %c0_i32, %c0_i32_0 : i32, i32
  }
  func.func @transform_14(%arg0: i32) -> (i32, i32) {
    %c0_i32 = arith.constant 0 : i32
    %c0_i32_0 = arith.constant 0 : i32
    %c0_i32_1 = arith.constant 0 : i32
    return %c0_i32, %c0_i32_0 : i32, i32
  }
  func.func @transform_15(%arg0: i32) -> (i32, i32) {
    %c0_i32 = arith.constant 0 : i32
    %c0_i32_0 = arith.constant 0 : i32
    %c0_i32_1 = arith.constant 0 : i32
    return %c0_i32, %c0_i32_0 : i32, i32
  }
  func.func @transform_16(%arg0: i32) -> (i32, i32) {
    %c0_i32 = arith.constant 0 : i32
    %c0_i32_0 = arith.constant 0 : i32
    %c0_i32_1 = arith.constant 0 : i32
    return %c0_i32, %c0_i32_0 : i32, i32
  }
  func.func @transform_17(%arg0: i32) -> (i32, i32) {
    %c0_i32 = arith.constant 0 : i32
    %c0_i32_0 = arith.constant 0 : i32
    %c0_i32_1 = arith.constant 0 : i32
    return %c0_i32, %c0_i32_0 : i32, i32
  }
  func.func @transform_18(%arg0: i32) -> (i32, i32) {
    %c0_i32 = arith.constant 0 : i32
    %c0_i32_0 = arith.constant 0 : i32
    %c0_i32_1 = arith.constant 0 : i32
    return %c0_i32, %c0_i32_0 : i32, i32
  }
  func.func @transform_19(%arg0: i32) -> (i32, i32) {
    %c0_i32 = arith.constant 0 : i32
    %c0_i32_0 = arith.constant 0 : i32
    %c0_i32_1 = arith.constant 0 : i32
    return %c0_i32, %c0_i32_0 : i32, i32
  }
  func.func @transform_20(%arg0: i32) -> (i32, i32, i32) {
    %c0_i32 = arith.constant 0 : i32
    %c0_i32_0 = arith.constant 0 : i32
    %c0_i32_1 = arith.constant 0 : i32
    return %arg0, %c0_i32, %c0_i32_0 : i32, i32, i32
  }
}

</mosaic_0001>

<bundles_post_ra>
// kernel: transformer_decoder.2
= control target key start
LH: loop header
LB: loop body
LE: loop exit
PB: predicated region body
PF: predicated region fallthrough
CT: control target
= control target key end

     0   :  { %s2971_s0 = inlined_call_operand.vmem [shape: f32[2,8,32], index: 0, kind: input, shape index: {}]   ;;  %s2972_s1 = inlined_call_operand.vmem [shape: f32[2,8,32], index: 1, kind: input, shape index: {}]   ;;  %s2973_s2 = inlined_call_operand.vmem [shape: f32[1,32], index: 2, kind: input, shape index: {}]   ;;  %s2974_s3 = inlined_call_operand.vmem [shape: f32[1,32], index: 3, kind: input, shape index: {}]   ;;  %s2975_s4 = inlined_call_operand.vmem [shape: f32[3,2,32,16], index: 4, kind: input, shape index: {}]   ;;  %s2976_s5 = inlined_call_operand.vmem [shape: f32[2,16,32], index: 5, kind: input, shape index: {}]   ;;  %s2977_s6 = inlined_call_operand.vmem [shape: f32[1,32], index: 6, kind: input, shape index: {}]   ;;  %s2978_s7 = inlined_call_operand.vmem [shape: f32[1,32], index: 7, kind: input, shape index: {}]   ;;  %s2979_s8 = inlined_call_operand.vmem [shape: f32[1,32], index: 8, kind: input, shape index: {}]   ;;  %s2980_s9 = inlined_call_operand.vmem [shape: f32[3,2,32,16], index: 9, kind: input, shape index: {}]   ;;  %s2981_s10 = inlined_call_operand.vmem [shape: f32[2,16,2], index: 10, kind: input, shape index: {}]   ;;  %s2982_s11 = inlined_call_operand.vmem [shape: f32[2,2,16], index: 11, kind: input, shape index: {}]   ;;  %s2983_s12 = inlined_call_operand.vmem [shape: f32[2,16,32], index: 12, kind: input, shape index: {}]   ;;  %s2984_s13 = inlined_call_operand.vmem [shape: f32[1,32], index: 13, kind: input, shape index: {}]   ;;  %s2985_s14 = inlined_call_operand.vmem [shape: f32[1,32], index: 14, kind: input, shape index: {}]   ;;  %s2986_s15 = inlined_call_operand.vmem [shape: f32[1,32], index: 15, kind: input, shape index: {}]   ;;  %s2987_s16 = inlined_call_operand.vmem [shape: f32[32,64], index: 16, kind: input, shape index: {}]   ;;  %s2988_s17 = inlined_call_operand.vmem [shape: f32[1,64], index: 17, kind: input, shape index: {}]   ;;  %s2989_s18 = inlined_call_operand.vmem [shape: f32[64,32], index: 18, kind: input, shape index: {}]   ;;  %s2990_s19 = inlined_call_operand.vmem [shape: f32[1,32], index: 19, kind: input, shape index: {}]   ;;  %s2991_s20 = inlined_call_operand.vmem [shape: f32[2,8,32], index: 20, kind: output, shape index: {}]  }
   0x1   :  { %2993 = sst [smem:[#allocation2_spill]] %s2971_s0 }
   0x2   :  { %2994 = sst [smem:[#allocation3_spill]] %s2972_s1  ;;  %s2449_s1 = smov 0  }
   0x3   :  { %2995 = sst [smem:[#allocation4_spill]] %s2973_s2 }
   0x4   :  { %2996 = sst [smem:[#allocation5_spill]] %s2974_s3 }
   0x5   :  { %2997 = sst [smem:[#allocation6_spill]] %s2975_s4 }
   0x6 LB: > { %s2163_s22 = sadd.s32 4294967295, %s2340_s1   ;;  %p2167_p0 = scmp.ge.s32.totalorder %s2340_s1, 1  ;;  %s2340_s1 = sphi %s2449_s1, %s30_s1  }
   0x7   : > { %p570_p1 = scmp.lt.s32.totalorder %s2340_s1, 3 }
   0x9   : > { %p571_p2 = pnand %p2167_p0, %p570_p1 }
   0xa   : > { %p630_p3 = scmp.lt.s32.totalorder (!%p571_p2), %s2163_s22, 1  ;;  %s2998_s25 = sld [smem:[#allocation2_spill]] (!%p571_p2) }
   0xb   : > { %574 = sbr.rel (%p571_p2) target bundleno = 3043 (0xbe3), region = 100  ;;  %s2999_s28 = sld [smem:[#allocation6_spill]] (!%p571_p2) }
   0xc   : > { %s3000_s4 = sld [smem:[#allocation4_spill]] (!%p571_p2) }
   0xd   : > { %s3001_s0 = sld [smem:[#allocation5_spill]] (!%p571_p2) }
  0x10   : > { %s3012_s22 = smov (!%p630_p3, %s2163_s22), 1  ;;  %vm646_vm0 = vcmask 261120   ;;  %v2342_v2 = vmov 32.0   ;;  %vm837_vm5 = vcmask 130048   ;;  %vm892_vm6 = vcmask 64512  }
  0x11   : > { %s2457_s23 = sshll.u32 %s3012_s22, 3  ;;  %2280 = vrcp.f32 %v2342_v2  ;;  %v687_v14 = vld [vmem:[%s2999_s28 + $0x18] sm:$0xff]  ;;  %v686_v18 = vld [vmem:[%s2999_s28 + $0x10] sm:$0xff]  ;;  %v685_v22 = vld [vmem:[%s2999_s28 + $0x8] sm:$0xff]  ;;  %vm1324_vm14 = vcmask 1041408   ;;  %vm1313_vm15 = vcmask 8192  }
  0x12   : > { %s633_s3 = scalar_lea.vmem %s2998_s25, %s2457_s23  ;;  %v691_v15 = vld [vmem:[%s2999_s28 + $0x38] sm:$0xff]  ;;  %707 = vmatpush.msra.mxu0 %v687_v14  ;;  %v690_v19 = vld [vmem:[%s2999_s28 + $0x30] sm:$0xff]  ;;  %v689_v23 = vld [vmem:[%s2999_s28 + $0x28] sm:$0xff]  ;;  %s641_s30 = scalar_lea.vmem %s2991_s20, %s2457_s23 }
  0x13   : > { %v2463_v0 = vld [vmem:[%s633_s3] sm:$0xff]  ;;  %v2180_v16 = vld [vmem:[%s2999_s28 + $0x78] sm:$0xff]  ;;  %727 = vmatpush.msra.mxu2 %v691_v15  ;;  %v2179_v20 = vld [vmem:[%s2999_s28 + $0x70] sm:$0xff] }
  0x14   : > { %v647_v1 = vsel %vm646_vm0, %v2463_v0, 0.0  ;;  %v2190_v17 = vld [vmem:[%s2999_s28 + $0xb8] sm:$0xff]  ;;  %776 = vmatpush.msra.mxu3 %v2180_v16  ;;  %708 = vmatpush.msra.mxu0 %v686_v18  ;;  %v2189_v21 = vld [vmem:[%s2999_s28 + $0xb0] sm:$0xff]  ;;  %v2178_v24 = vld [vmem:[%s2999_s28 + $0x68] sm:$0xff] }
  0x15   : > { %648 = vadd.xlane.f32.xlu0 %v647_v1  ;;  %825 = vmatpush.msra.mxu1 %v2190_v17  ;;  %v2188_v25 = vld [vmem:[%s2999_s28 + $0xa8] sm:$0xff]  ;;  %v684_v26 = vld [vmem:[%s2999_s28] sm:$0xff]  ;;  %v2176_v30 = vld [vmem:[%s2999_s28 + $0x58] sm:$0xff] }
  0x16   : > { %728 = vmatpush.msra.mxu2 %v690_v19  ;;  %777 = vmatpush.msra.mxu3 %v2179_v20  ;;  %v688_v27 = vld [vmem:[%s2999_s28 + $0x20] sm:$0xff]  ;;  %v2186_v31 = vld [vmem:[%s2999_s28 + $0x98] sm:$0xff]  ;;  %v2175_v32 = vld [vmem:[%s2999_s28 + $0x50] sm:$0xff] }
  0x17   : > { %v2281_v3 = vpop.eup %2280  ;;  %826 = vmatpush.msra.mxu1 %v2189_v21  ;;  %709 = vmatpush.msra.mxu0 %v685_v22  ;;  %v2177_v28 = vld [vmem:[%s2999_s28 + $0x60] sm:$0xff]  ;;  %v2185_v33 = vld [vmem:[%s2999_s28 + $0x90] sm:$0xff]  ;;  %v2174_v35 = vld [vmem:[%s2999_s28 + $0x48] sm:$0xff] }
  0x18   : > { %v651_v4 = vmul.f32 32.0, %v2281_v3  ;;  %vm655_vm1 = vweird.f32 %v2281_v3  ;;  %729 = vmatpush.msra.mxu2 %v689_v23  ;;  %778 = vmatpush.msra.mxu3 %v2178_v24  ;;  %v2187_v29 = vld [vmem:[%s2999_s28 + $0xa0] sm:$0xff]  ;;  %v2184_v36 = vld [vmem:[%s2999_s28 + $0x88] sm:$0xff]  ;;  %v836_v21 = vld [vmem:[%s2976_s5 + $0x18] sm:$0xff] }
  0x19   : > { %827 = vmatpush.msra.mxu1 %v2188_v25  ;;  %710 = vmatpush.msra.mxu0 %v684_v26  ;;  %v2173_v38 = vld [vmem:[%s2999_s28 + $0x40] sm:$0xff]  ;;  %v835_v22 = vld [vmem:[%s2976_s5 + $0x10] sm:$0xff] }
  0x1a   : > { %v652_v5 = vsub.f32 1.0, %v651_v4  ;;  %730 = vmatpush.msra.mxu2 %v688_v27  ;;  %779 = vmatpush.msra.mxu3 %v2177_v28  ;;  %v2183_v39 = vld [vmem:[%s2999_s28 + $0x80] sm:$0xff] }
  0x1b   : > { %828 = vmatpush.msra.mxu1 %v2187_v29  ;;  %805 = vmatpush.msrb.mxu0 %v2186_v31  ;;  %v2270_v47 = vld [vmem:[%s3000_s4] ss:$0 sm:$0xff]  ;;  %s3002_s4 = sld [smem:[#allocation3_spill]] }
  0x1c   : > { %v653_v6 = vmul.f32 %v2281_v3, %v652_v5  ;;  %756 = vmatpush.msrb.mxu2 %v2176_v30  ;;  %v2271_v49 = vld [vmem:[%s3001_s0] ss:$0 sm:$0xff] }
  0x1d   : > { %806 = vmatpush.msrb.mxu0 %v2185_v33  ;;  %v833_v20 = vld [vmem:[%s2976_s5] sm:$0xff] }
  0x1e   : > { %v654_v7 = vadd.f32 %v2281_v3, %v653_v6  ;;  %757 = vmatpush.msrb.mxu2 %v2175_v32 }
  0x1f   : > { %807 = vmatpush.msrb.mxu0 %v2184_v36 }
  0x20   : > { %v2467_v8 = vsel %vm655_vm1, %v2281_v3, %v654_v7  ;;  %758 = vmatpush.msrb.mxu2 %v2174_v35  ;;  %vm1320_vm1 = vcmask 15360  }
  0x21   : > { %808 = vmatpush.msrb.mxu0 %v2183_v39  ;;  %s637_s29 = scalar_lea.vmem %s3002_s4, %s2457_s23 }
  0x22   : > { %759 = vmatpush.msrb.mxu2 %v2173_v38  ;;  %v643_v23 = vld [vmem:[%s637_s29] sm:$0xff] }
  0x23   : > { %v1048_v24 = vsel %vm646_vm0, %v643_v23, 0.0 }
  0x88   : > { %v649_v9 = vpop.xlane.xlu0 %648 }
  0x89   : > { %v657_v10 = vmul.f32 %v2467_v8, %v649_v9 }
  0x8b   : > { %v2471_v11 = vsub.f32 %v2463_v0, %v657_v10 }
  0x8d   : > { %v659_v12 = vmul.f32 %v2471_v11, %v2471_v11 }
  0x8f   : > { %v660_v13 = vsel %vm646_vm0, %v659_v12, 0.0 }
  0x90   : > { %661 = vadd.xlane.f32.xlu0 %v660_v13  ;;  %v834_v13 = vld [vmem:[%s2976_s5 + $0x8] sm:$0xff] }
 0x103   : > { %v662_v34 = vpop.xlane.xlu0 %661 }
 0x104   : > { %v663_v37 = vmul.f32 %v662_v34, %v2467_v8  ;;  %v2272_v34 = vld [vmem:[%s2977_s6] ss:$0 sm:$0xff] }
 0x106   : > { %v664_v40 = vadd.f32 1e-05, %v663_v37 }
 0x108   : > { %2282 = vrsqrt.f32 %v664_v40  ;;  %vm671_vm3 = vweird.f32 %v664_v40 }
 0x10e   : > { %v2283_v41 = vpop.eup %2282 }
 0x10f   : > { %v666_v42 = vmul.f32 %v2283_v41, %v664_v40  ;;  %vm672_vm2 = vweird.f32 %v2283_v41 }
 0x110   : > { %vm673_vm4 = vmor %vm671_vm3, %vm672_vm2 }
 0x111   : > { %v667_v43 = vmul.f32 %v2283_v41, %v666_v42  ;;  %v2210_v42 = vld [vmem:[%s2980_s9 + $0x78] sm:$0xff] }
 0x113   : > { %v668_v44 = vmul.f32 0.5, %v667_v43  ;;  %v2205_v43 = vld [vmem:[%s2980_s9 + $0x50] sm:$0xff] }
 0x115   : > { %v669_v45 = vsub.f32 1.5, %v668_v44  ;;  %v2209_v44 = vld [vmem:[%s2980_s9 + $0x70] sm:$0xff] }
 0x117   : > { %v670_v46 = vmul.f32 %v2283_v41, %v669_v45 }
 0x119   : > { %v674_v48 = vsel %vm673_vm4, %v2283_v41, %v670_v46  ;;  %v2206_v41 = vld [vmem:[%s2980_s9 + $0x58] sm:$0xff]  ;;  %v2204_v46 = vld [vmem:[%s2980_s9 + $0x48] sm:$0xff] }
 0x11a   : > { %v675_v50 = vmul.f32 %v674_v48, %v2471_v11  ;;  %v2203_v48 = vld [vmem:[%s2980_s9 + $0x40] sm:$0xff] }
 0x11c   : > { %v679_v51 = vmul.f32 %v2270_v47, %v675_v50  ;;  %v2208_v47 = vld [vmem:[%s2980_s9 + $0x68] sm:$0xff] }
 0x11e   : > { %v683_v52 = vadd.f32 %v2271_v49, %v679_v51  ;;  %v2207_v49 = vld [vmem:[%s2980_s9 + $0x60] sm:$0xff] }
 0x120   : > { %2171 = vmatmul.msk.f32.vlgmr.msra.gmra.mxu0 %vm646_vm0, %v683_v52  ;;  %2172 = vmatmul.msk.f32.vlgmr.msra.gmra.mxu2 %vm646_vm0, %v683_v52 }
 0x121   : > { %2182 = vmatmul.msk.f32.vlgmr.msra.gmra.mxu3 %vm646_vm0, %v683_v52  ;;  %2192 = vmatmul.msk.f32.vlgmr.msra.gmra.mxu1 %vm646_vm0, %v683_v52 }
 0x128   : > { %2181 = vmatmul.msk.f32.vlgmr.msrb.gmra.mxu2 %vm646_vm0, %v683_v52  ;;  %2191 = vmatmul.msk.f32.vlgmr.msrb.gmra.mxu0 %vm646_vm0, %v683_v52 }
 0x19d   : > { %v712_v53 = vpop.f32.mrf.mxu0 }
 0x19e   : > { %v830_v54 = vpop.f32.mrf.mxu1 }
 0x19f   : > { %956 = vmatpush.msrb.mxu1 %v830_v54 }
 0x1a3   : > { %v732_v55 = vpop.f32.mrf.mxu2 }
 0x1a4   : > { %v781_v56 = vpop.f32.mrf.mxu3 }
 0x1a5   : > { %2195 = vmatpush.xpose.msk.msrb.mxu3 %vm837_vm5, %v781_v56  ;;  %v810_v57 = vpop.f32.mrf.mxu0 }
 0x1a6   : > { %933 = vmatpush.msra.mxu0 %v810_v57 }
 0x1a8   : > { %2196 = vmatmul.msk.f32.vlgmr.msrb.gmra.mxu3 %vm837_vm5, %v732_v55 }
 0x1a9   : > { %1001 = vmatpush.msra.mxu3 %v836_v21 }
 0x1ab   : > { %v761_v58 = vpop.f32.mrf.mxu2  ;;  %1002 = vmatpush.msra.mxu3 %v835_v22  ;;  %v2213_v22 = vld [vmem:[%s2980_s9 + $0x80] sm:$0xff] }
 0x1ac   : > { %2193 = vmatpush.xpose.msk.msra.mxu2 %vm837_vm5, %v761_v58 }
 0x1ad   : > { %1167 = vmatpush.msrb.mxu3 %v2210_v42 }
 0x1af   : > { %2194 = vmatmul.msk.f32.vlgmr.msra.gmra.mxu2 %vm837_vm5, %v712_v53  ;;  %1168 = vmatpush.msrb.mxu3 %v2209_v44 }
 0x1b0   : > { %978 = vmatpush.msrb.mxu2 %v834_v13  ;;  %v1076_v13 = vld [vmem:[%s2980_s9 + $0x20] sm:$0xff] }
 0x1b1   : > { %1169 = vmatpush.msrb.mxu3 %v2208_v47 }
 0x1b2   : > { %979 = vmatpush.msrb.mxu2 %v833_v20 }
 0x1b3   : > { %1170 = vmatpush.msrb.mxu3 %v2207_v49 }
 0x1b4   : > { %1147 = vmatpush.msra.mxu2 %v2206_v41  ;;  %v2717_v41 = vld [vmem:[%s2981_s10 + $0x10] sm:$0xff] }
 0x1b6   : > { %1148 = vmatpush.msra.mxu2 %v2205_v43 }
 0x1b8   : > { %1149 = vmatpush.msra.mxu2 %v2204_v46 }
 0x1ba   : > { %1150 = vmatpush.msra.mxu2 %v2203_v48 }
 0x22b   : > { %v887_v62 = vpop.f32.mrf.mxu3 }
 0x22c   : > { %v891_v63 = vmul.f32 0.17677669, %v887_v62  ;;  %v2273_v62 = vld [vmem:[%s2978_s7] ss:$0 sm:$0xff] }
 0x22e   : > { %v896_v1 = vsel %vm892_vm6, %v891_v63, -inf }
 0x232   : > { %v861_v59 = vpop.f32.mrf.mxu2 }
 0x233   : > { %v890_v60 = vmul.f32 0.17677669, %v861_v59 }
 0x235   : > { %v893_v61 = vsel %vm892_vm6, %v890_v60, -inf }
 0x236   : > { %894 = vmax.xlane.f32.xlu1 %v893_v61 }
 0x23e   : > { %897 = vmax.xlane.f32.xlu1 %v896_v1 }
 0x246   : > { %1049 = vadd.xlane.f32.xlu1 %v1048_v24 }
 0x2a9   : > { %v895_v2 = vpop.xlane.xlu1 %894 }
 0x2aa   : > { %v899_v3 = vsub.f32 %v890_v60, %v895_v2  ;;  %v2274_v2 = vld [vmem:[%s2979_s8] ss:$0 sm:$0xff] }
 0x2ac   : > { %v901_v4 = vmul.f32 1.442695, %v899_v3 }
 0x2ae   : > { %2284 = vpow2.f32 %v901_v4 }
 0x2b1   : > { %v898_v5 = vpop.xlane.xlu1 %897 }
 0x2b2   : > { %v900_v6 = vsub.f32 %v891_v63, %v898_v5  ;;  %v1075_v5 = vld [vmem:[%s2980_s9 + $0x18] sm:$0xff] }
 0x2b3   : > { %1095 = vmatpush.msrb.mxu0 %v1075_v5 }
 0x2b4   : > { %v2285_v7 = vpop.eup %2284  ;;  %v903_v9 = vmul.f32 1.442695, %v900_v6  ;;  %v1079_v6 = vld [vmem:[%s2980_s9 + $0x38] sm:$0xff] }
 0x2b5   : > { %v905_v10 = vsel %vm892_vm6, %v2285_v7, 0.0  ;;  %1115 = vmatpush.msra.mxu1 %v1079_v6 }
 0x2b6   : > { %2286 = vpow2.f32 %v903_v9  ;;  %906 = vadd.xlane.f32.xlu2 %v905_v10  ;;  %v1078_v9 = vld [vmem:[%s2980_s9 + $0x30] sm:$0xff]  ;;  %v1073_v10 = vld [vmem:[%s2980_s9 + $0x8] sm:$0xff] }
 0x2b7   : > { %1116 = vmatpush.msra.mxu1 %v1078_v9 }
 0x2b9   : > { %v1050_v28 = vpop.xlane.xlu1 %1049 }
 0x2ba   : > { %v1051_v33 = vmul.f32 %v1050_v28, %v2467_v8 }
 0x2bc   : > { %v2287_v11 = vpop.eup %2286  ;;  %v1052_v36 = vsub.f32 %v643_v23, %v1051_v33  ;;  %v2217_v23 = vld [vmem:[%s2980_s9 + $0xa0] sm:$0xff] }
 0x2bd   : > { %v908_v12 = vsel %vm892_vm6, %v2287_v11, 0.0 }
 0x2be   : > { %909 = vadd.xlane.f32.xlu2 %v908_v12  ;;  %v1053_v39 = vmul.f32 %v1052_v36, %v1052_v36  ;;  %v1072_v12 = vld [vmem:[%s2980_s9] sm:$0xff] }
 0x2c0   : > { %v1054_v40 = vsel %vm646_vm0, %v1053_v39, 0.0 }
 0x329   : > { %v907_v14 = vpop.xlane.xlu2 %906 }
 0x32a   : > { %2288 = vrcp.f32 %v907_v14  ;;  %v2216_v14 = vld [vmem:[%s2980_s9 + $0x98] sm:$0xff] }
 0x330   : > { %v2289_v15 = vpop.eup %2288 }
 0x331   : > { %v913_v16 = vmul.f32 %v2289_v15, %v2285_v7  ;;  %v910_v17 = vpop.xlane.xlu2 %909  ;;  %v1074_v7 = vld [vmem:[%s2980_s9 + $0x10] sm:$0xff]  ;;  %v2220_v15 = vld [vmem:[%s2980_s9 + $0xb8] sm:$0xff] }
 0x332   : > { %2290 = vrcp.f32 %v910_v17  ;;  %1096 = vmatpush.msrb.mxu0 %v1074_v7  ;;  %v2219_v17 = vld [vmem:[%s2980_s9 + $0xb0] sm:$0xff] }
 0x333   : > { %2197 = vmatmul.msk.f32.vlgmr.msra.gmra.mxu0 %vm892_vm6, %v913_v16  ;;  %v2215_v16 = vld [vmem:[%s2980_s9 + $0x90] sm:$0xff] }
 0x334   : > { %1097 = vmatpush.msrb.mxu0 %v1073_v10 }
 0x336   : > { %1098 = vmatpush.msrb.mxu0 %v1072_v12 }
 0x338   : > { %v2291_v18 = vpop.eup %2290  ;;  %1196 = vmatpush.msra.mxu0 %v2216_v14 }
 0x339   : > { %v914_v19 = vmul.f32 %v2291_v18, %v2287_v11  ;;  %v1077_v11 = vld [vmem:[%s2980_s9 + $0x28] sm:$0xff] }
 0x33a   : > { %1117 = vmatpush.msra.mxu1 %v1077_v11  ;;  %v2214_v18 = vld [vmem:[%s2980_s9 + $0x88] sm:$0xff]  ;;  %1197 = vmatpush.msra.mxu0 %v2215_v16 }
 0x33b   : > { %2198 = vmatmul.msk.f32.vlgmr.msrb.gmra.mxu1 %vm892_vm6, %v914_v19  ;;  %v2218_v19 = vld [vmem:[%s2980_s9 + $0xa8] sm:$0xff] }
 0x33c   : > { %1118 = vmatpush.msra.mxu1 %v1076_v13  ;;  %1198 = vmatpush.msra.mxu0 %v2214_v18 }
 0x33e   : > { %1216 = vmatpush.msrb.mxu1 %v2220_v15  ;;  %1199 = vmatpush.msra.mxu0 %v2213_v22 }
 0x340   : > { %1217 = vmatpush.msrb.mxu1 %v2219_v17 }
 0x342   : > { %1218 = vmatpush.msrb.mxu1 %v2218_v19 }
 0x344   : > { %1219 = vmatpush.msrb.mxu1 %v2217_v23 }
 0x3b0   : > { %v935_v25 = vpop.f32.mrf.mxu0 }
 0x3b1   : > { %2199 = vmatmul.msk.f32.vlgmr.msrb.gmra.mxu2 %vm837_vm5, %v935_v25 }
 0x3b8   : > { %v958_v26 = vpop.f32.mrf.mxu1 }
 0x3b9   : > { %2200 = vmatmul.msk.f32.vlgmr.msra.gmra.mxu3 %vm837_vm5, %v958_v26 }
 0x434   : > { %v981_v27 = vpop.f32.mrf.mxu2 }
 0x435   : > { %v1007_v30 = vsel %vm646_vm0, %v981_v27, 0.0 }
 0x43c   : > { %v1004_v29 = vpop.f32.mrf.mxu3 }
 0x43d   : > { %v1008_v31 = vsel %vm646_vm0, %v1004_v29, 0.0 }
 0x43e   : > { %v1009_v32 = vadd.f32 %v1008_v31, %v1007_v30 }
 0x440   : > { %v1010_v35 = vadd.f32 %v1009_v32, %v2463_v0 }
 0x442   : > { %v2598_v37 = vadd.f32 %v2272_v34, %v1010_v35  ;;  %v2343_v35 = vmov 8.0  }
 0x444   : > { %v1018_v38 = vsel %vm646_vm0, %v2598_v37, 0.0 }
 0x445   : > { %1019 = vadd.xlane.f32.xlu0 %v1018_v38  ;;  %v2705_v38 = vld [vmem:[%s2981_s10 + $0x18] sm:$0xff] }
 0x446   : > { %1307 = vmatpush.msra.mxu3 %v2705_v38 }
 0x448   : > { %1308 = vmatpush.msra.mxu3 %v2717_v41 }
 0x44d   : > { %1055 = vadd.xlane.f32.xlu0 %v1054_v40  ;;  %v2712_v40 = vld [vmem:[%s2981_s10] sm:$0xff] }
 0x4b8   : > { %v1020_v0 = vpop.xlane.xlu0 %1019 }
 0x4b9   : > { %v1021_v45 = vmul.f32 %v1020_v0, %v2467_v8 }
 0x4bb   : > { %v2629_v50 = vsub.f32 %v2598_v37, %v1021_v45 }
 0x4bd   : > { %v1023_v51 = vmul.f32 %v2629_v50, %v2629_v50 }
 0x4bf   : > { %v1024_v52 = vsel %vm646_vm0, %v1023_v51, 0.0 }
 0x4c0   : > { %1025 = vadd.xlane.f32.xlu2 %v1024_v52  ;;  %v1056_v53 = vpop.xlane.xlu0 %1055 }
 0x4c1   : > { %v1057_v54 = vmul.f32 %v1056_v53, %v2467_v8 }
 0x4c3   : > { %v1058_v55 = vadd.f32 1e-05, %v1057_v54 }
 0x4c5   : > { %2292 = vrsqrt.f32 %v1058_v55  ;;  %vm1065_vm7 = vweird.f32 %v1058_v55 }
 0x4cb   : > { %v2293_v56 = vpop.eup %2292 }
 0x4cc   : > { %v1060_v57 = vmul.f32 %v2293_v56, %v1058_v55  ;;  %vm1066_vm8 = vweird.f32 %v2293_v56 }
 0x4cd   : > { %vm1067_vm9 = vmor %vm1065_vm7, %vm1066_vm8 }
 0x4ce   : > { %v1061_v58 = vmul.f32 %v2293_v56, %v1060_v57 }
 0x4d0   : > { %v1062_v59 = vmul.f32 0.5, %v1061_v58 }
 0x4d2   : > { %v1063_v60 = vsub.f32 1.5, %v1062_v59 }
 0x4d4   : > { %v1064_v61 = vmul.f32 %v2293_v56, %v1063_v60 }
 0x4d6   : > { %v1068_v63 = vsel %vm1067_vm9, %v2293_v56, %v1064_v61 }
 0x4d7   : > { %v1069_v1 = vmul.f32 %v1068_v63, %v1052_v36  ;;  %v2700_v36 = vld [vmem:[%s2981_s10 + $0x8] sm:$0xff] }
 0x4d8   : > { %1284 = vmatpush.msrb.mxu2 %v2700_v36 }
 0x4d9   : > { %v1070_v3 = vmul.f32 %v2273_v62, %v1069_v1 }
 0x4da   : > { %1285 = vmatpush.msrb.mxu2 %v2712_v40 }
 0x4db   : > { %v1071_v4 = vadd.f32 %v2274_v2, %v1070_v3 }
 0x4dd   : > { %2211 = vmatmul.msk.f32.vlgmr.msra.gmra.mxu2 %vm646_vm0, %v1071_v4  ;;  %2212 = vmatmul.msk.f32.vlgmr.msrb.gmra.mxu3 %vm646_vm0, %v1071_v4 }
 0x4de   : > { %1466 = vmatpush.msra.mxu2 %v2700_v36  ;;  %1489 = vmatpush.msrb.mxu3 %v2705_v38 }
 0x4e0   : > { %1467 = vmatpush.msra.mxu2 %v2712_v40  ;;  %1490 = vmatpush.msrb.mxu3 %v2717_v41 }
 0x533   : > { %v1026_v20 = vpop.xlane.xlu2 %1025 }
 0x534   : > { %v1027_v21 = vmul.f32 %v1026_v20, %v2467_v8 }
 0x536   : > { %v1028_v24 = vadd.f32 1e-05, %v1027_v21 }
 0x538   : > { %2294 = vrsqrt.f32 %v1028_v24  ;;  %vm1035_vm11 = vweird.f32 %v1028_v24 }
 0x539   : > { %2296 = vrcp.f32 %v2343_v35 }
 0x53e   : > { %v2295_v25 = vpop.eup %2294 }
 0x53f   : > { %v1030_v26 = vmul.f32 %v2295_v25, %v1028_v24  ;;  %vm1036_vm10 = vweird.f32 %v2295_v25  ;;  %v2297_v39 = vpop.eup %2296 }
 0x540   : > { %vm1037_vm12 = vmor %vm1035_vm11, %vm1036_vm10  ;;  %v1253_v42 = vmul.f32 8.0, %v2297_v39  ;;  %vm1257_vm13 = vweird.f32 %v2297_v39 }
 0x541   : > { %v1031_v27 = vmul.f32 %v2295_v25, %v1030_v26 }
 0x542   : > { %v1254_v44 = vsub.f32 1.0, %v1253_v42 }
 0x543   : > { %v1032_v28 = vmul.f32 0.5, %v1031_v27 }
 0x544   : > { %v1255_v53 = vmul.f32 %v2297_v39, %v1254_v44 }
 0x545   : > { %v1033_v29 = vsub.f32 1.5, %v1032_v28 }
 0x546   : > { %v1256_v58 = vadd.f32 %v2297_v39, %v1255_v53 }
 0x547   : > { %v1034_v30 = vmul.f32 %v2295_v25, %v1033_v29 }
 0x548   : > { %v2750_v15 = vsel %vm1257_vm13, %v2297_v39, %v1256_v58 }
 0x549   : > { %v1038_v31 = vsel %vm1037_vm12, %v2295_v25, %v1034_v30 }
 0x54a   : > { %v1039_v32 = vmul.f32 %v1038_v31, %v2629_v50 }
 0x54c   : > { %v1043_v33 = vmul.f32 %v2273_v62, %v1039_v32 }
 0x54e   : > { %v1047_v34 = vadd.f32 %v2274_v2, %v1043_v33 }
 0x550   : > { %2201 = vmatmul.msk.f32.vlgmr.msrb.gmra.mxu0 %vm646_vm0, %v1047_v34  ;;  %2202 = vmatmul.msk.f32.vlgmr.msra.gmra.mxu1 %vm646_vm0, %v1047_v34 }
 0x558   : > { %2221 = vmatmul.msk.f32.vlgmr.msra.gmra.mxu0 %vm646_vm0, %v1071_v4  ;;  %2222 = vmatmul.msk.f32.vlgmr.msrb.gmra.mxu1 %vm646_vm0, %v1071_v4 }
 0x560   : > { %v2723_v0 = vpop.f32.mrf.mxu2  ;;  %v2725_v43 = vpop.f32.mrf.mxu3 }
 0x561   : > { %v1413_v45 = vsel %vm837_vm5, %v2723_v0, -inf  ;;  %v1427_v46 = vsel %vm837_vm5, %v2723_v0, 0.0  ;;  %v1420_v47 = vsel %vm837_vm5, %v2725_v43, -inf  ;;  %v1434_v48 = vsel %vm837_vm5, %v2725_v43, 0.0 }
 0x562   : > { %v1414_v49 = vrot.slane %v1413_v45, 4  ;;  %v1428_v50 = vrot.slane %v1427_v46, 4  ;;  %v1421_v51 = vrot.slane %v1420_v47, 4  ;;  %v1435_v52 = vrot.slane %v1434_v48, 4 }
 0x564   : > { %v1415_v54 = vmax.f32 %v1413_v45, %v1414_v49  ;;  %v1429_v55 = vadd.f32 %v1428_v50, %v1427_v46  ;;  %v1422_v56 = vmax.f32 %v1420_v47, %v1421_v51  ;;  %v1436_v57 = vadd.f32 %v1435_v52, %v1434_v48 }
 0x566   : > { %v1416_v6 = vrot.slane %v1415_v54, 2  ;;  %v1430_v7 = vrot.slane %v1429_v55, 2  ;;  %v1423_v9 = vrot.slane %v1422_v56, 2  ;;  %v1437_v10 = vrot.slane %v1436_v57, 2 }
 0x568   : > { %v1417_v20 = vmax.f32 %v1415_v54, %v1416_v6  ;;  %v1431_v21 = vadd.f32 %v1430_v7, %v1429_v55  ;;  %v1424_v22 = vmax.f32 %v1422_v56, %v1423_v9  ;;  %v1438_v23 = vadd.f32 %v1437_v10, %v1436_v57 }
 0x56a   : > { %v1432_v48 = vrot.slane %v1431_v21, 1  ;;  %v1439_v49 = vrot.slane %v1438_v23, 1  ;;  %v1418_v7 = vrot.slane %v1417_v20, 1  ;;  %v1425_v9 = vrot.slane %v1424_v22, 1 }
 0x5cd   : > { %v2737_v59 = vpop.f32.mrf.mxu0  ;;  %v2739_v60 = vpop.f32.mrf.mxu1 }
 0x5ce   : > { %v1224_v61 = vsel %vm837_vm5, %v2737_v59, -inf  ;;  %v1238_v62 = vsel %vm837_vm5, %v2737_v59, 0.0  ;;  %v1231_v63 = vsel %vm837_vm5, %v2739_v60, -inf  ;;  %v1245_v1 = vsel %vm837_vm5, %v2739_v60, 0.0 }
 0x5cf   : > { %v1225_v2 = vrot.slane %v1224_v61, 4  ;;  %v1239_v3 = vrot.slane %v1238_v62, 4  ;;  %v1232_v4 = vrot.slane %v1231_v63, 4  ;;  %v1246_v5 = vrot.slane %v1245_v1, 4 }
 0x5d1   : > { %v1226_v11 = vmax.f32 %v1224_v61, %v1225_v2  ;;  %v1240_v12 = vadd.f32 %v1239_v3, %v1238_v62  ;;  %v1233_v13 = vmax.f32 %v1231_v63, %v1232_v4  ;;  %v1247_v14 = vadd.f32 %v1246_v5, %v1245_v1 }
 0x5d2   : > { %v1433_v1 = vadd.f32 %v1432_v48, %v1431_v21  ;;  %v1440_v2 = vadd.f32 %v1439_v49, %v1438_v23 }
 0x5d3   : > { %v1227_v16 = vrot.slane %v1226_v11, 2  ;;  %v1241_v17 = vrot.slane %v1240_v12, 2  ;;  %v1234_v18 = vrot.slane %v1233_v13, 2  ;;  %v1248_v19 = vrot.slane %v1247_v14, 2 }
 0x5d5   : > { %v1228_v24 = vmax.f32 %v1226_v11, %v1227_v16  ;;  %v1242_v25 = vadd.f32 %v1241_v17, %v1240_v12  ;;  %v1235_v26 = vmax.f32 %v1233_v13, %v1234_v18  ;;  %v1249_v27 = vadd.f32 %v1248_v19, %v1247_v14  ;;  %v2752_v28 = vpop.f32.mrf.mxu0  ;;  %v2754_v29 = vpop.f32.mrf.mxu1 }
 0x5d6   : > { %v1592_v30 = vsel %vm837_vm5, %v2752_v28, -inf  ;;  %v1606_v31 = vsel %vm837_vm5, %v2752_v28, 0.0  ;;  %v1599_v32 = vsel %vm837_vm5, %v2754_v29, -inf  ;;  %v1613_v33 = vsel %vm837_vm5, %v2754_v29, 0.0 }
 0x5d7   : > { %v1229_v34 = vrot.slane %v1228_v24, 1  ;;  %v1243_v35 = vrot.slane %v1242_v25, 1  ;;  %v1236_v39 = vrot.slane %v1235_v26, 1  ;;  %v1250_v42 = vrot.slane %v1249_v27, 1 }
 0x5d8   : > { %v1593_v44 = vrot.slane %v1592_v30, 4  ;;  %v1607_v45 = vrot.slane %v1606_v31, 4  ;;  %v1600_v46 = vrot.slane %v1599_v32, 4  ;;  %v1614_v47 = vrot.slane %v1613_v33, 4 }
 0x5d9   : > { %v1244_v50 = vadd.f32 %v1243_v35, %v1242_v25  ;;  %v1251_v51 = vadd.f32 %v1250_v42, %v1249_v27  ;;  %v1230_v52 = vmax.f32 %v1228_v24, %v1229_v34  ;;  %v1237_v53 = vmax.f32 %v1235_v26, %v1236_v39 }
 0x5da   : > { %v1608_v54 = vadd.f32 %v1607_v45, %v1606_v31  ;;  %v1615_v55 = vadd.f32 %v1614_v47, %v1613_v33  ;;  %v1594_v58 = vmax.f32 %v1592_v30, %v1593_v44  ;;  %v1601_v61 = vmax.f32 %v1599_v32, %v1600_v46  ;;  %v1319_v32 = vld [vmem:[%s2982_s11 + $0x2] sm:$0x3]  ;;  %v1678_v46 = vld [vmem:[%s2982_s11] sm:$0x3] }
 0x5db   : > { %v1259_v56 = vmul.f32 %v2750_v15, %v1244_v50  ;;  %v1260_v57 = vmul.f32 %v2750_v15, %v1251_v51  ;;  %v1441_v12 = vmul.f32 %v1433_v1, %v2750_v15  ;;  %v1442_v13 = vmul.f32 %v1440_v2, %v2750_v15  ;;  %2227 = vmatpush.msk.msra.mxu1 %vm1324_vm14, %v1319_v32  ;;  %v1500_v33 = vld [vmem:[%s2982_s11 + $0x2] sm:$0x3] }
 0x5dc   : > { %v1609_v62 = vrot.slane %v1608_v54, 2  ;;  %v1616_v63 = vrot.slane %v1615_v55, 2  ;;  %v1595_v10 = vrot.slane %v1594_v58, 2  ;;  %v1602_v11 = vrot.slane %v1601_v61, 2  ;;  %v1679_v47 = vld [vmem:[%s2982_s11 + $0x2] sm:$0x3] }
 0x5dd   : > { %v1261_v3 = vadd.f32 %v1259_v56, %v1230_v52  ;;  %v1262_v4 = vadd.f32 %v1260_v57, %v1237_v53  ;;  %v1419_v17 = vmax.f32 %v1417_v20, %v1418_v7  ;;  %v1426_v18 = vmax.f32 %v1424_v22, %v1425_v9  ;;  %2235 = vmatpush.msk.msrb.mxu1 %vm1324_vm14, %v1500_v33 }
 0x5de   : > { %v1610_v5 = vadd.f32 %v1609_v62, %v1608_v54  ;;  %v1617_v6 = vadd.f32 %v1616_v63, %v1615_v55  ;;  %v1596_v19 = vmax.f32 %v1594_v58, %v1595_v10  ;;  %v1603_v21 = vmax.f32 %v1601_v61, %v1602_v11 }
 0x5df   : > { %2223 = vmatmul.msk.f32.vlgmr.msrb.gmra.mxu2 %vm837_vm5, %v1261_v3  ;;  %2224 = vmatmul.msk.f32.vlgmr.msra.gmra.mxu3 %vm837_vm5, %v1262_v4  ;;  %v1443_v23 = vadd.f32 %v1441_v12, %v1419_v17  ;;  %v1444_v24 = vadd.f32 %v1442_v13, %v1426_v18 }
 0x5e0   : > { %1645 = vmatpush.msrb.mxu2 %v2700_v36  ;;  %1668 = vmatpush.msra.mxu3 %v2705_v38  ;;  %v1611_v14 = vrot.slane %v1610_v5, 1  ;;  %v1618_v16 = vrot.slane %v1617_v6, 1  ;;  %v1597_v26 = vrot.slane %v1596_v19, 1  ;;  %v1604_v38 = vrot.slane %v1603_v21, 1 }
 0x5e2   : > { %1646 = vmatpush.msrb.mxu2 %v2712_v40  ;;  %1669 = vmatpush.msra.mxu3 %v2717_v41  ;;  %v1612_v25 = vadd.f32 %v1611_v14, %v1610_v5  ;;  %v1619_v36 = vadd.f32 %v1618_v16, %v1617_v6  ;;  %v1598_v20 = vmax.f32 %v1596_v19, %v1597_v26  ;;  %v1318_v41 = vld [vmem:[%s2982_s11] sm:$0x3] }
 0x5e3   : > { %v1605_v22 = vmax.f32 %v1603_v21, %v1604_v38  ;;  %2225 = vmatpush.msk.msrb.mxu0 %vm1324_vm14, %v1318_v41 }
 0x5e4   : > { %v1620_v27 = vmul.f32 %v1612_v25, %v2750_v15  ;;  %v1621_v40 = vmul.f32 %v1619_v36, %v2750_v15  ;;  %v1499_v15 = vld [vmem:[%s2982_s11] sm:$0x3] }
 0x5e5   : > { %2233 = vmatpush.msk.msra.mxu0 %vm1324_vm14, %v1499_v15 }
 0x5e6   : > { %v1622_v30 = vadd.f32 %v1620_v27, %v1598_v20  ;;  %v1623_v31 = vadd.f32 %v1621_v40, %v1605_v22 }
 0x5e7   : > { %2231 = vmatmul.msk.f32.vlgmr.msra.gmra.mxu2 %vm837_vm5, %v1443_v23  ;;  %2232 = vmatmul.msk.f32.vlgmr.msrb.gmra.mxu3 %vm837_vm5, %v1444_v24 }
 0x5ef   : > { %2239 = vmatmul.msk.f32.vlgmr.msrb.gmra.mxu2 %vm837_vm5, %v1622_v30  ;;  %2240 = vmatmul.msk.f32.vlgmr.msra.gmra.mxu3 %vm837_vm5, %v1623_v31 }
 0x662   : > { %v1287_v34 = vpop.f32.mrf.mxu2  ;;  %v1310_v35 = vpop.f32.mrf.mxu3 }
 0x663   : > { %v1314_v39 = vsel %vm1313_vm15, %v1287_v34, 0.0  ;;  %v1315_v42 = vsel %vm1313_vm15, %v1310_v35, 0.0 }
 0x664   : > { %v1316_v44 = vadd.f32 %v1315_v42, %v1314_v39 }
 0x666   : > { %v1317_v45 = vmax.f32 %v1316_v44, 0.0 }
 0x668   : > { %2226 = vmatmul.msk.f32.vlgmr.msrb.gmra.mxu0 %vm1320_vm1, %v1317_v45  ;;  %2228 = vmatmul.msk.f32.vlgmr.msra.gmra.mxu1 %vm1320_vm1, %v1317_v45 }
 0x669   : > { %2241 = vmatpush.msk.msrb.mxu0 %vm1324_vm14, %v1678_v46  ;;  %2243 = vmatpush.msk.msra.mxu1 %vm1324_vm14, %v1679_v47 }
 0x66a   : > { %v1469_v48 = vpop.f32.mrf.mxu2  ;;  %v1492_v49 = vpop.f32.mrf.mxu3 }
 0x66b   : > { %v1495_v50 = vsel %vm1313_vm15, %v1469_v48, 0.0  ;;  %v1496_v51 = vsel %vm1313_vm15, %v1492_v49, 0.0 }
 0x66c   : > { %v1497_v52 = vadd.f32 %v1496_v51, %v1495_v50 }
 0x66e   : > { %v1498_v53 = vmax.f32 %v1497_v52, 0.0 }
 0x670   : > { %2234 = vmatmul.msk.f32.vlgmr.msra.gmra.mxu0 %vm1320_vm1, %v1498_v53  ;;  %2236 = vmatmul.msk.f32.vlgmr.msrb.gmra.mxu1 %vm1320_vm1, %v1498_v53 }
 0x672   : > { %v1648_v54 = vpop.f32.mrf.mxu2  ;;  %v1671_v55 = vpop.f32.mrf.mxu3 }
 0x673   : > { %v1674_v56 = vsel %vm1313_vm15, %v1648_v54, 0.0  ;;  %v1675_v57 = vsel %vm1313_vm15, %v1671_v55, 0.0 }
 0x674   : > { %v1676_v58 = vadd.f32 %v1675_v57, %v1674_v56 }
 0x676   : > { %v1677_v61 = vmax.f32 %v1676_v58, 0.0  ;;  %v1772_v58 = vld [vmem:[%s2983_s12 + $0x8] sm:$0xff] }
 0x678   : > { %2242 = vmatmul.msk.f32.vlgmr.msrb.gmra.mxu0 %vm1320_vm1, %v1677_v61  ;;  %2244 = vmatmul.msk.f32.vlgmr.msra.gmra.mxu1 %vm1320_vm1, %v1677_v61 }
 0x6e5   : > { %v1345_v62 = vpop.f32.mrf.mxu0  ;;  %v1368_v63 = vpop.f32.mrf.mxu1 }
 0x6e6   : > { %v2229_v1 = vmul.f32 -1.442695, %v1345_v62  ;;  %v2230_v2 = vmul.f32 -1.442695, %v1368_v63 }
 0x6e8   : > { %2298 = vpow2.f32 %v2229_v1 }
 0x6e9   : > { %2300 = vpow2.f32 %v2230_v2 }
 0x6ed   : > { %v1524_v3 = vpop.f32.mrf.mxu0  ;;  %v1547_v4 = vpop.f32.mrf.mxu1 }
 0x6ee   : > { %v2299_v5 = vpop.eup %2298  ;;  %v2237_v6 = vmul.f32 -1.442695, %v1524_v3  ;;  %v2238_v10 = vmul.f32 -1.442695, %v1547_v4 }
 0x6ef   : > { %v2301_v7 = vpop.eup %2300  ;;  %v1377_v9 = vadd.f32 1.0, %v2299_v5 }
 0x6f0   : > { %v1378_v11 = vadd.f32 1.0, %v2301_v7  ;;  %2302 = vpow2.f32 %v2237_v6 }
 0x6f1   : > { %2304 = vrcp.f32 %v1377_v9  ;;  %v1388_v40 = vand.u32 2147483647, %v1377_v9  ;;  %v1390_v22 = vand.u32 2147483648, %v1377_v9  ;;  %vm1384_vm3 = vweird.f32 %v1377_v9 }
 0x6f2   : > { %2306 = vrcp.f32 %v1378_v11  ;;  %vm1399_vm4 = vweird.f32 %v1378_v11  ;;  %v1403_v35 = vand.u32 2147483647, %v1378_v11  ;;  %v1405_v39 = vand.u32 2147483648, %v1378_v11 }
 0x6f3   : > { %2308 = vpow2.f32 %v2238_v10  ;;  %vm2825_vm7 = vcmp.eq.f32.partialorder %v1388_v40, 8.507059e+37  ;;  %v1391_v45 = vor.u32 1.1754944e-38, %v1390_v22 }
 0x6f4   : > { %vm2842_vm11 = vcmp.eq.f32.partialorder %v1403_v35, 8.507059e+37  ;;  %v1406_v55 = vor.u32 1.1754944e-38, %v1405_v39 }
 0x6f5   : > { %v1703_v12 = vpop.f32.mrf.mxu0  ;;  %v1726_v13 = vpop.f32.mrf.mxu1 }
 0x6f6   : > { %v2303_v14 = vpop.eup %2302  ;;  %v2245_v16 = vmul.f32 -1.442695, %v1703_v12  ;;  %v2246_v19 = vmul.f32 -1.442695, %v1726_v13 }
 0x6f7   : > { %v2305_v17 = vpop.eup %2304  ;;  %v1556_v18 = vadd.f32 1.0, %v2303_v14 }
 0x6f8   : > { %v2816_v21 = vpop.eup %2306  ;;  %v1380_v23 = vmul.f32 %v2305_v17, %v1377_v9  ;;  %2310 = vpow2.f32 %v2245_v16  ;;  %vm1385_vm2 = vweird.f32 %v2305_v17 }
 0x6f9   : > { %v2309_v24 = vpop.eup %2308  ;;  %v1395_v25 = vmul.f32 %v2816_v21, %v1378_v11  ;;  %2312 = vrcp.f32 %v1556_v18  ;;  %vm2830_vm8 = vmor %vm1384_vm3, %vm1385_vm2  ;;  %v1569_v47 = vand.u32 2147483648, %v1556_v18  ;;  %vm1400_vm9 = vweird.f32 %v2816_v21 }
 0x6fa   : > { %v1381_v36 = vsub.f32 1.0, %v1380_v23  ;;  %v2819_v26 = vadd.f32 1.0, %v2309_v24  ;;  %2314 = vpow2.f32 %v2246_v19  ;;  %v1567_v53 = vand.u32 2147483647, %v1556_v18  ;;  %vm2848_vm12 = vmor %vm1399_vm4, %vm1400_vm9 }
 0x6fb   : > { %v1396_v38 = vsub.f32 1.0, %v1395_v25  ;;  %vm1563_vm13 = vweird.f32 %v1556_v18  ;;  %v1570_v62 = vor.u32 1.1754944e-38, %v1569_v47 }
 0x6fc   : > { %v1382_v27 = vmul.f32 %v2305_v17, %v1381_v36  ;;  %2316 = vrcp.f32 %v2819_v26  ;;  %v1584_v57 = vand.u32 2147483648, %v2819_v26  ;;  %v1582_v3 = vand.u32 2147483647, %v2819_v26 }
 0x6fd   : > { %v1397_v41 = vmul.f32 %v2816_v21, %v1396_v38  ;;  %vm1568_vm1 = vcmp.eq.f32.partialorder %v1567_v53, 8.507059e+37  ;;  %vm1578_vm2 = vweird.f32 %v2819_v26 }
 0x6fe   : > { %v2311_v20 = vpop.eup %2310  ;;  %v1383_v31 = vadd.f32 %v2305_v17, %v1382_v27  ;;  %v1585_v9 = vor.u32 1.1754944e-38, %v1584_v57  ;;  %vm1583_vm4 = vcmp.eq.f32.partialorder %v1582_v3, 8.507059e+37 }
 0x6ff   : > { %v2313_v30 = vpop.eup %2312  ;;  %v2823_v32 = vadd.f32 1.0, %v2311_v20  ;;  %v1398_v49 = vadd.f32 %v2816_v21, %v1397_v41 }
 0x700   : > { %v1559_v15 = vmul.f32 %v2313_v30, %v1556_v18  ;;  %v2315_v33 = vpop.eup %2314  ;;  %v1387_v51 = vsel %vm2830_vm8, %v2305_v17, %v1383_v31  ;;  %vm1564_vm10 = vweird.f32 %v2313_v30 }
 0x701   : > { %2318 = vrcp.f32 %v2823_v32  ;;  %v2834_v48 = vadd.f32 1.0, %v2315_v33  ;;  %v1392_v63 = vsel %vm2825_vm7, %v1391_v45, %v1387_v51  ;;  %vm1565_vm14 = vmor %vm1563_vm13, %vm1564_vm10  ;;  %v1402_v4 = vsel %vm2848_vm12, %v2816_v21, %v1398_v49 }
 0x702   : > { %v2317_v42 = vpop.eup %2316  ;;  %v1560_v46 = vsub.f32 1.0, %v1559_v15  ;;  %v1409_v11 = vperm.slane %v1392_v63, 0  ;;  %v1407_v16 = vsel %vm2842_vm11, %v1406_v55, %v1402_v4  ;;  %v1748_v17 = vand.u32 2147483648, %v2823_v32 }
 0x703   : > { %v1574_v50 = vmul.f32 %v2317_v42, %v2819_v26  ;;  %2320 = vrcp.f32 %v2834_v48  ;;  %vm1579_vm15 = vweird.f32 %v2317_v42  ;;  %v1746_v21 = vand.u32 2147483647, %v2823_v32 }
 0x704   : > { %v1561_v52 = vmul.f32 %v2313_v30, %v1560_v46  ;;  %vm1580_vm3 = vmor %vm1578_vm2, %vm1579_vm15  ;;  %v1410_v38 = vperm.slane %v1407_v16, 0  ;;  %vm1742_vm8 = vweird.f32 %v2823_v32  ;;  %v1411_v27 = vmul.f32 %v1409_v11, %v2737_v59  ;;  %v2275_v16 = vld [vmem:[%s2984_s13] ss:$0 sm:$0xff] }
 0x705   : > { %v1575_v56 = vsub.f32 1.0, %v1574_v50  ;;  %v1749_v20 = vor.u32 1.1754944e-38, %v1748_v17  ;;  %v1763_v22 = vand.u32 2147483648, %v2834_v48  ;;  %vm1747_vm11 = vcmp.eq.f32.partialorder %v1746_v21, 8.507059e+37 }
 0x706   : > { %v1562_v61 = vadd.f32 %v2313_v30, %v1561_v52  ;;  %vm1757_vm12 = vweird.f32 %v2834_v48  ;;  %v1412_v59 = vmul.f32 %v1410_v38, %v2739_v60  ;;  %v1985_v38 = vld [vmem:[%s2987_s16 + $0x8] sm:$0xff] }
 0x707   : > { %v2319_v1 = vpop.eup %2318  ;;  %v1576_v2 = vmul.f32 %v2317_v42, %v1575_v56  ;;  %v1764_v34 = vor.u32 1.1754944e-38, %v1763_v22 }
 0x708   : > { %v1738_v5 = vmul.f32 %v2319_v1, %v2823_v32  ;;  %v1566_v6 = vsel %vm1565_vm14, %v2313_v30, %v1562_v61  ;;  %vm1743_vm7 = vweird.f32 %v2319_v1  ;;  %v1774_v61 = vld [vmem:[%s2983_s12 + $0x18] sm:$0xff] }
 0x709   : > { %v1577_v7 = vadd.f32 %v2317_v42, %v1576_v2  ;;  %v1571_v10 = vsel %vm1568_vm1, %v1570_v62, %v1566_v6  ;;  %v2321_v12 = vpop.eup %2320  ;;  %vm1744_vm9 = vmor %vm1742_vm8, %vm1743_vm7  ;;  %v1773_v6 = vld [vmem:[%s2983_s12 + $0x10] sm:$0xff]  ;;  %vm2067_vm7 = vcmask 523264  }
 0x70a   : > { %v1739_v13 = vsub.f32 1.0, %v1738_v5  ;;  %v1588_v14 = vperm.slane %v1571_v10, 0  ;;  %v1753_v18 = vmul.f32 %v2321_v12, %v2834_v48  ;;  %vm1758_vm10 = vweird.f32 %v2321_v12  ;;  %v1771_v5 = vld [vmem:[%s2983_s12] sm:$0xff] }
 0x70b   : > { %v1581_v19 = vsel %vm1580_vm3, %v2317_v42, %v1577_v7  ;;  %vm1759_vm13 = vmor %vm1757_vm12, %vm1758_vm10 }
 0x70c   : > { %v1740_v23 = vmul.f32 %v2319_v1, %v1739_v13  ;;  %v1590_v24 = vmul.f32 %v1588_v14, %v2723_v0  ;;  %v1586_v25 = vsel %vm1583_vm4, %v1585_v9, %v1581_v19  ;;  %v1754_v36 = vsub.f32 1.0, %v1753_v18 }
 0x70d   : > { %v1589_v26 = vperm.slane %v1586_v25, 0  ;;  %v1761_v0 = vand.u32 2147483647, %v2834_v48 }
 0x70e   : > { %2247 = vmatpush.xpose.msk.msra.mxu2 %vm837_vm5, %v1590_v24  ;;  %v1741_v40 = vadd.f32 %v2319_v1, %v1740_v23  ;;  %v1755_v30 = vmul.f32 %v2321_v12, %v1754_v36 }
 0x70f   : > { %v1591_v31 = vmul.f32 %v1589_v26, %v2725_v43  ;;  %vm1762_vm14 = vcmp.eq.f32.partialorder %v1761_v0, 8.507059e+37  ;;  %v1987_v26 = vld [vmem:[%s2987_s16 + $0x18] sm:$0xff] }
 0x710   : > { %v1745_v41 = vsel %vm1744_vm9, %v2319_v1, %v1741_v40  ;;  %v1756_v15 = vadd.f32 %v2321_v12, %v1755_v30 }
 0x711   : > { %2249 = vmatpush.xpose.msk.msrb.mxu3 %vm837_vm5, %v1591_v31  ;;  %2248 = vmatmul.msk.f32.vlgmr.msra.gmra.mxu2 %vm837_vm5, %v1411_v27  ;;  %v1750_v32 = vsel %vm1747_vm11, %v1749_v20, %v1745_v41  ;;  %v1984_v27 = vld [vmem:[%s2987_s16] sm:$0xff] }
 0x712   : > { %v1767_v33 = vperm.slane %v1750_v32, 0  ;;  %v1760_v43 = vsel %vm1759_vm13, %v2321_v12, %v1756_v15  ;;  %1914 = vmatpush.msrb.mxu2 %v1772_v58  ;;  %v2062_v58 = vld [vmem:[%s2989_s18 + $0x18] sm:$0xff] }
 0x713   : > { %v1765_v39 = vsel %vm1762_vm14, %v1764_v34, %v1760_v43 }
 0x714   : > { %2250 = vmatmul.msk.f32.vlgmr.msrb.gmra.mxu3 %vm837_vm5, %v1412_v59  ;;  %v1769_v35 = vmul.f32 %v1767_v33, %v2752_v28  ;;  %v1768_v42 = vperm.slane %v1765_v39, 0  ;;  %1915 = vmatpush.msrb.mxu2 %v1771_v5  ;;  %v2276_v59 = vld [vmem:[%s2985_s14] ss:$0 sm:$0xff] }
 0x715   : > { %1937 = vmatpush.msra.mxu3 %v1774_v61  ;;  %v2278_v39 = vld [vmem:[%s2988_s17] ss:$0 sm:$0xff] }
 0x716   : > { %1869 = vmatpush.msra.mxu0 %v1769_v35  ;;  %v1770_v44 = vmul.f32 %v1768_v42, %v2754_v29 }
 0x717   : > { %1938 = vmatpush.msra.mxu3 %v1773_v6 }
 0x718   : > { %1892 = vmatpush.msrb.mxu1 %v1770_v44  ;;  %2007 = vmatpush.msrb.mxu0 %v1987_v26 }
 0x794   : > { %v1798_v45 = vpop.f32.mrf.mxu2 }
 0x795   : > { %v1827_v46 = vmul.f32 0.17677669, %v1798_v45 }
 0x797   : > { %v1824_v47 = vpop.f32.mrf.mxu3  ;;  %v1829_v60 = vsel %vm892_vm6, %v1827_v46, -inf }
 0x798   : > { %v1828_v48 = vmul.f32 0.17677669, %v1824_v47  ;;  %1830 = vmax.xlane.f32.xlu1 %v1829_v60 }
 0x79a   : > { %v1832_v49 = vsel %vm892_vm6, %v1828_v48, -inf }
 0x79b   : > { %1833 = vmax.xlane.f32.xlu2 %v1832_v49  ;;  %v2066_v49 = vld [vmem:[%s2989_s18 + $0x38] sm:$0xff] }
 0x79c   : > { %2079 = vmatpush.msra.mxu1 %v2066_v49 }
 0x80b   : > { %v1831_v50 = vpop.xlane.xlu1 %1830 }
 0x80c   : > { %v1835_v51 = vsub.f32 %v1827_v46, %v1831_v50 }
 0x80e   : > { %v1834_v52 = vpop.xlane.xlu2 %1833  ;;  %v1837_v28 = vmul.f32 1.442695, %v1835_v51 }
 0x80f   : > { %v1836_v53 = vsub.f32 %v1828_v48, %v1834_v52  ;;  %v2065_v52 = vld [vmem:[%s2989_s18 + $0x30] sm:$0xff] }
 0x810   : > { %2322 = vpow2.f32 %v1837_v28  ;;  %2080 = vmatpush.msra.mxu1 %v2065_v52 }
 0x811   : > { %v1839_v54 = vmul.f32 1.442695, %v1836_v53 }
 0x813   : > { %2324 = vpow2.f32 %v1839_v54  ;;  %v2064_v54 = vld [vmem:[%s2989_s18 + $0x28] sm:$0xff] }
 0x814   : > { %2081 = vmatpush.msra.mxu1 %v2064_v54 }
 0x816   : > { %v2323_v29 = vpop.eup %2322 }
 0x817   : > { %v1841_v55 = vsel %vm892_vm6, %v2323_v29, 0.0 }
 0x818   : > { %1842 = vadd.xlane.f32.xlu0 %v1841_v55  ;;  %v2063_v55 = vld [vmem:[%s2989_s18 + $0x20] sm:$0xff] }
 0x819   : > { %v2325_v56 = vpop.eup %2324  ;;  %2082 = vmatpush.msra.mxu1 %v2063_v55 }
 0x81a   : > { %v1844_v57 = vsel %vm892_vm6, %v2325_v56, 0.0 }
 0x81b   : > { %1845 = vadd.xlane.f32.xlu1 %v1844_v57  ;;  %2083 = vmatpush.msra.mxu1 %v2062_v58 }
 0x88b   : > { %v1843_v62 = vpop.xlane.xlu0 %1842 }
 0x88c   : > { %2326 = vrcp.f32 %v1843_v62  ;;  %v2061_v62 = vld [vmem:[%s2989_s18 + $0x10] sm:$0xff] }
 0x88d   : > { %2084 = vmatpush.msra.mxu1 %v2061_v62 }
 0x88e   : > { %v1846_v63 = vpop.xlane.xlu1 %1845 }
 0x88f   : > { %2328 = vrcp.f32 %v1846_v63 }
 0x892   : > { %v2327_v1 = vpop.eup %2326 }
 0x893   : > { %v1849_v2 = vmul.f32 %v2327_v1, %v2323_v29  ;;  %v2060_v1 = vld [vmem:[%s2989_s18 + $0x8] sm:$0xff] }
 0x894   : > { %2085 = vmatpush.msra.mxu1 %v2060_v1 }
 0x895   : > { %v2329_v3 = vpop.eup %2328  ;;  %2251 = vmatmul.msk.f32.vlgmr.msra.gmra.mxu0 %vm892_vm6, %v1849_v2 }
 0x896   : > { %v1850_v4 = vmul.f32 %v2329_v3, %v2325_v56  ;;  %v2059_v3 = vld [vmem:[%s2989_s18] sm:$0xff] }
 0x897   : > { %2086 = vmatpush.msra.mxu1 %v2059_v3 }
 0x898   : > { %2252 = vmatmul.msk.f32.vlgmr.msrb.gmra.mxu1 %vm892_vm6, %v1850_v4 }
 0x912   : > { %v1871_v7 = vpop.f32.mrf.mxu0 }
 0x913   : > { %2253 = vmatmul.msk.f32.vlgmr.msrb.gmra.mxu2 %vm837_vm5, %v1871_v7 }
 0x915   : > { %v1894_v9 = vpop.f32.mrf.mxu1 }
 0x916   : > { %2254 = vmatmul.msk.f32.vlgmr.msra.gmra.mxu3 %vm837_vm5, %v1894_v9 }
 0x996   : > { %v1917_v10 = vpop.f32.mrf.mxu2 }
 0x997   : > { %v1943_v11 = vsel %vm646_vm0, %v1917_v10, 0.0 }
 0x999   : > { %v1940_v12 = vpop.f32.mrf.mxu3 }
 0x99a   : > { %v1944_v13 = vsel %vm646_vm0, %v1940_v12, 0.0 }
 0x99b   : > { %v1945_v14 = vadd.f32 %v1944_v13, %v1943_v11 }
 0x99d   : > { %v1946_v17 = vadd.f32 %v1945_v14, %v2598_v37  ;;  %v1986_v37 = vld [vmem:[%s2987_s16 + $0x10] sm:$0xff] }
 0x99e   : > { %2008 = vmatpush.msrb.mxu0 %v1986_v37 }
 0x99f   : > { %v2905_v18 = vadd.f32 %v2275_v16, %v1946_v17 }
 0x9a0   : > { %2009 = vmatpush.msrb.mxu0 %v1985_v38 }
 0x9a1   : > { %v1954_v19 = vsel %vm646_vm0, %v2905_v18, 0.0 }
 0x9a2   : > { %1955 = vadd.xlane.f32.xlu2 %v1954_v19  ;;  %2010 = vmatpush.msrb.mxu0 %v1984_v27 }
 0xa15   : > { %v1956_v21 = vpop.xlane.xlu2 %1955 }
 0xa16   : > { %v1957_v23 = vmul.f32 %v1956_v21, %v2467_v8 }
 0xa18   : > { %v1958_v24 = vsub.f32 %v2905_v18, %v1957_v23 }
 0xa1a   : > { %v1959_v25 = vmul.f32 %v1958_v24, %v1958_v24 }
 0xa1c   : > { %v1960_v36 = vsel %vm646_vm0, %v1959_v25, 0.0 }
 0xa1d   : > { %1961 = vadd.xlane.f32.xlu0 %v1960_v36 }
 0xa90   : > { %v1962_v40 = vpop.xlane.xlu0 %1961 }
 0xa91   : > { %v1963_v20 = vmul.f32 %v1962_v40, %v2467_v8  ;;  %v2277_v8 = vld [vmem:[%s2986_s15] ss:$0 sm:$0xff] }
 0xa93   : > { %v1964_v22 = vadd.f32 1e-05, %v1963_v20 }
 0xa95   : > { %2330 = vrsqrt.f32 %v1964_v22  ;;  %vm1971_vm6 = vweird.f32 %v1964_v22 }
 0xa9b   : > { %v2331_v30 = vpop.eup %2330 }
 0xa9c   : > { %v1966_v31 = vmul.f32 %v2331_v30, %v1964_v22  ;;  %vm1972_vm5 = vweird.f32 %v2331_v30  ;;  %v2279_v22 = vld [vmem:[%s2990_s19] ss:$0 sm:$0xff] }
 0xa9d   : > { %vm1973_vm15 = vmor %vm1971_vm6, %vm1972_vm5 }
 0xa9e   : > { %v1967_v0 = vmul.f32 %v2331_v30, %v1966_v31 }
 0xaa0   : > { %v1968_v41 = vmul.f32 0.5, %v1967_v0 }
 0xaa2   : > { %v1969_v32 = vsub.f32 1.5, %v1968_v41 }
 0xaa4   : > { %v1970_v15 = vmul.f32 %v2331_v30, %v1969_v32 }
 0xaa6   : > { %v1974_v33 = vsel %vm1973_vm15, %v2331_v30, %v1970_v15 }
 0xaa7   : > { %v1975_v34 = vmul.f32 %v1974_v33, %v1958_v24 }
 0xaa9   : > { %v1979_v43 = vmul.f32 %v2276_v59, %v1975_v34 }
 0xaab   : > { %v1983_v35 = vadd.f32 %v2277_v8, %v1979_v43 }
 0xaad   : > { %2255 = vmatmul.msk.f32.vlgmr.msrb.gmra.mxu0 %vm646_vm0, %v1983_v35 }
 0xb2a   : > { %v2012_v42 = vpop.f32.mrf.mxu0 }
 0xb2b   : > { %v2013_v44 = vadd.f32 %v2278_v39, %v2012_v42 }
 0xb2d   : > { %v2016_v45 = vmul.f32 0.70710677, %v2013_v44  ;;  %v2015_v27 = vmul.f32 0.5, %v2013_v44 }
 0xb2f   : > { %v2017_v46 = vmul.f32 %v2016_v45, %v2016_v45 }
 0xb31   : > { %v2018_v47 = vmin.f32 %v2017_v46, 16.0 }
 0xb33   : > { %v2019_v60 = vmul.f32 2.1237322e-06, %v2018_v47  ;;  %v2030_v48 = vmul.f32 3.8918573e-05, %v2018_v47 }
 0xb35   : > { %v2020_v50 = vadd.f32 0.00028619796, %v2019_v60  ;;  %v2031_v51 = vadd.f32 0.001143296, %v2030_v48 }
 0xb37   : > { %v2021_v28 = vmul.f32 %v2020_v50, %v2018_v47  ;;  %v2032_v53 = vmul.f32 %v2031_v51, %v2018_v47 }
 0xb39   : > { %v2033_v29 = vadd.f32 0.014752088, %v2032_v53  ;;  %v2022_v56 = vadd.f32 0.0036580483, %v2021_v28 }
 0xb3b   : > { %v2034_v57 = vmul.f32 %v2033_v29, %v2018_v47  ;;  %v2023_v63 = vmul.f32 %v2022_v56, %v2018_v47 }
 0xb3d   : > { %v2035_v61 = vadd.f32 0.112945676, %v2034_v57  ;;  %v2024_v5 = vadd.f32 0.05243302, %v2023_v63 }
 0xb3f   : > { %v2036_v2 = vmul.f32 %v2035_v61, %v2018_v47  ;;  %v2025_v9 = vmul.f32 %v2024_v5, %v2018_v47 }
 0xb41   : > { %v2037_v4 = vadd.f32 0.4994258, %v2036_v2  ;;  %v2026_v10 = vadd.f32 0.18741608, %v2025_v9 }
 0xb43   : > { %v2038_v6 = vmul.f32 %v2037_v4, %v2018_v47  ;;  %v2027_v12 = vmul.f32 %v2026_v10, %v2018_v47 }
 0xb45   : > { %v2039_v7 = vadd.f32 1.0, %v2038_v6  ;;  %v2028_v17 = vadd.f32 1.1283791, %v2027_v12 }
 0xb47   : > { %2332 = vrcp.f32 %v2039_v7  ;;  %v2051_v16 = vand.u32 2147483648, %v2039_v7  ;;  %v2049_v21 = vand.u32 2147483647, %v2039_v7  ;;  %vm2045_vm2 = vweird.f32 %v2039_v7 }
 0xb48   : > { %v2029_v25 = vmul.f32 %v2028_v17, %v2016_v45 }
 0xb49   : > { %v2052_v24 = vor.u32 1.1754944e-38, %v2051_v16  ;;  %vm2050_vm4 = vcmp.eq.f32.partialorder %v2049_v21, 8.507059e+37 }
 0xb4d   : > { %v2333_v11 = vpop.eup %2332 }
 0xb4e   : > { %v2041_v13 = vmul.f32 %v2333_v11, %v2039_v7  ;;  %vm2046_vm1 = vweird.f32 %v2333_v11 }
 0xb4f   : > { %vm2047_vm3 = vmor %vm2045_vm2, %vm2046_vm1 }
 0xb50   : > { %v2042_v14 = vsub.f32 1.0, %v2041_v13 }
 0xb52   : > { %v2043_v19 = vmul.f32 %v2333_v11, %v2042_v14 }
 0xb54   : > { %v2044_v23 = vadd.f32 %v2333_v11, %v2043_v19 }
 0xb56   : > { %v2048_v36 = vsel %vm2047_vm3, %v2333_v11, %v2044_v23 }
 0xb57   : > { %v2053_v26 = vsel %vm2050_vm4, %v2052_v24, %v2048_v36 }
 0xb58   : > { %v2054_v37 = vmul.f32 %v2053_v26, %v2029_v25 }
 0xb5a   : > { %v2256_v38 = vclamps-f32 %v2054_v37, 1.0 }
 0xb5c   : > { %v2057_v40 = vadd.f32 1.0, %v2256_v38 }
 0xb5e   : > { %v2058_v20 = vmul.f32 %v2057_v40, %v2015_v27 }
 0xb60   : > { %2257 = vmatmul.msk.f32.vlgmr.msra.gmra.mxu1 %vm2067_vm7, %v2058_v20 }
 0xbdd   : > { %v2088_v30 = vpop.f32.mrf.mxu1 }
 0xbde   : > { %v2091_v31 = vadd.f32 %v2088_v30, %v2905_v18 }
 0xbe0   : > { %v2096_v0 = vadd.f32 %v2279_v22, %v2091_v31 }
 0xbe2   : > { %2097 = vst.msk [vmem:[%s641_s30] sm:$0xff] %vm646_vm0, %v2096_v0 }
 0xbe3 PF: > { %s30_s1 = sadd.s32 1, %s2340_s1  }
 0xbe4   : > { %p27_p4 = scmp.ge.s32.totalorder %s30_s1, 4  }
 0xbe6   :  { %29 = sbr.rel (!%p27_p4) target bundleno = 6 (0x6), region = 137 }

// kernel: transformer_decoder.3
= control target key start
LH: loop header
LB: loop body
LE: loop exit
PB: predicated region body
PF: predicated region fallthrough
CT: control target
= control target key end

     0   :  { %s3151_s0 = inlined_call_operand.vmem [shape: f32[2,8,32], index: 0, kind: input, shape index: {}]   ;;  %s3152_s1 = inlined_call_operand.vmem [shape: f32[2,8,32], index: 1, kind: input, shape index: {}]   ;;  %s3153_s2 = inlined_call_operand.vmem [shape: f32[1,32], index: 2, kind: input, shape index: {}]   ;;  %s3154_s3 = inlined_call_operand.vmem [shape: f32[1,32], index: 3, kind: input, shape index: {}]   ;;  %s3155_s4 = inlined_call_operand.vmem [shape: f32[3,2,32,16], index: 4, kind: input, shape index: {}]   ;;  %s3156_s5 = inlined_call_operand.vmem [shape: f32[2,16,32], index: 5, kind: input, shape index: {}]   ;;  %s3157_s6 = inlined_call_operand.vmem [shape: f32[1,32], index: 6, kind: input, shape index: {}]   ;;  %s3158_s7 = inlined_call_operand.vmem [shape: f32[1,32], index: 7, kind: input, shape index: {}]   ;;  %s3159_s8 = inlined_call_operand.vmem [shape: f32[1,32], index: 8, kind: input, shape index: {}]   ;;  %s3160_s9 = inlined_call_operand.vmem [shape: f32[3,2,32,16], index: 9, kind: input, shape index: {}]   ;;  %s3161_s10 = inlined_call_operand.vmem [shape: f32[2,16,2], index: 10, kind: input, shape index: {}]   ;;  %s3162_s11 = inlined_call_operand.vmem [shape: f32[2,2,16], index: 11, kind: input, shape index: {}]   ;;  %s3163_s12 = inlined_call_operand.vmem [shape: f32[2,16,32], index: 12, kind: input, shape index: {}]   ;;  %s3164_s13 = inlined_call_operand.vmem [shape: f32[1,32], index: 13, kind: input, shape index: {}]   ;;  %s3165_s14 = inlined_call_operand.vmem [shape: f32[1,32], index: 14, kind: input, shape index: {}]   ;;  %s3166_s15 = inlined_call_operand.vmem [shape: f32[1,32], index: 15, kind: input, shape index: {}]   ;;  %s3167_s16 = inlined_call_operand.vmem [shape: f32[32,64], index: 16, kind: input, shape index: {}]   ;;  %s3168_s17 = inlined_call_operand.vmem [shape: f32[1,64], index: 17, kind: input, shape index: {}]   ;;  %s3169_s18 = inlined_call_operand.vmem [shape: f32[64,32], index: 18, kind: input, shape index: {}]   ;;  %s3170_s19 = inlined_call_operand.vmem [shape: f32[1,32], index: 19, kind: input, shape index: {}]   ;;  %s3171_s20 = inlined_call_operand.hbm [shape: f32[2,8,32], index: 20, kind: output, shape index: {}]  }
   0x1   :  { %3181 = sst [smem:[#allocation11_spill]] %s3151_s0 }
   0x2   :  { %3182 = sst [smem:[#allocation12_spill]] %s3152_s1 }
   0x3   :  { %3183 = sst [smem:[#allocation13_spill]] %s3153_s2 }
   0x4   :  { %3184 = sst [smem:[#allocation14_spill]] %s3154_s3 }
   0x5   :  { %3185 = sst [smem:[#allocation15_spill]] %s3155_s4 }
   0x6   :  { %3186 = sst [smem:[#allocation16_spill]] %s3156_s5 }
   0x7   :  { %25 = vsyncpa [#allocation3], 0 }
   0x8   :  { %27 = vsyncpa [#allocation3 + $0x1], 0  ;;  %s2559_s1 = smov 0   ;;  %s2561_s22 = smov 0  }
   0x9   :  { %s2563_s23 = smov 0   ;;  %s2565_s24 = smov 0  }
   0xa LB: > { %3187 = sst [smem:[#allocation5_spill]] %s2438_s1  ;;  %s2580_s2 = sadd.s32 4294967295, %s2450_s24   ;;  %s2450_s24 = sphi %s2565_s24, %s3213_s24   ;;  %s2446_s23 = sphi %s2563_s23, %s3215_s23   ;;  %s2442_s22 = sphi %s2561_s22, %s3217_s22   ;;  %s2438_s1 = sphi %s2559_s1, %s3216_s1  }
   0xb   : > { %3188 = sst [smem:[#allocation6_spill]] %s2446_s23  ;;  %s2185_s25 = sadd.s32 4294967294, %s2450_s24  }
   0xc   : > { %3189 = sst [smem:[#allocation7_spill]] %s2450_s24  ;;  %s2584_s3 = sadd.s32 1, %s2450_s24  }
   0xd   : > { %3190 = sst [smem:[#allocation8_spill]] %s2584_s3  ;;  %s470_s26 = sadd.s32 1, %s2446_s23 }
   0xe   : > { %s467_s27 = ssub.s32 %s2450_s24, %s2584_s3  ;;  %p480_p0 = scmp.ne.s32.totalorder %s2446_s23, %s2442_s22 }
   0xf   : > { %p468_p1 = scmp.eq.s32.totalorder %s467_s27, 0  ;;  %p481_p2 = scmp.eq.s32.totalorder %s2580_s2, 1 }
  0x10   : > { %p486_p3 = scmp.ne.s32.totalorder %s2442_s22, %s2438_s1  ;;  %p487_p4 = scmp.eq.s32.totalorder %s2185_s25, 1 }
  0x11   : > { %s2595_s28 = scalar_select %p468_p1, %s2446_s23, %s470_s26  }
  0x12   : > { %p2597_p5 = por %p481_p2, %p480_p0  ;;  %p2601_p6 = por %p487_p4, %p486_p3 }
  0x13   : > { %3191 = sst [smem:[#allocation9_spill]] %s2595_s28  ;;  %p2188_p7 = scmp.ge.s32.totalorder %s2450_s24, 1 }
  0x14   : > { %s3193_s29 = scalar_select %p2601_p6, 1, 0 }
  0x15   : > { %p573_p8 = scmp.lt.s32.totalorder %s2450_s24, 3 }
  0x16   : > { %3194 = sst [smem:[#allocation10_spill]] %s3193_s29 }
  0x17   : > { %p574_p9 = pnand %p2188_p7, %p573_p8 }
  0x18   : > { %p634_p10 = scmp.lt.s32.totalorder (!%p574_p9), %s2580_s2, 1  ;;  %s3195_s26 = sld [smem:[#allocation11_spill]] (!%p574_p9) }
  0x19   : > { %577 = sbr.rel (%p574_p9) target bundleno = 3060 (0xbf4), region = 100  ;;  %s3197_s21 = sld [smem:[#allocation13_spill]] (!%p574_p9) }
  0x1a   : > { %s3199_s5 = sld [smem:[#allocation16_spill]] (!%p574_p9) }
  0x1e   : > { %s2609_s30 = scalar_select %p634_p10, %s2580_s2, 1  ;;  %vm646_vm0 = vcmask 261120   ;;  %v2452_v2 = vmov 32.0   ;;  %vm837_vm5 = vcmask 130048   ;;  %vm892_vm6 = vcmask 64512  }
  0x1f   : > { %2334 = vrcp.f32 %v2452_v2  ;;  %v2324_v47 = vld [vmem:[%s3197_s21] ss:$0 sm:$0xff]  ;;  %vm1324_vm14 = vcmask 1041408   ;;  %vm1313_vm15 = vcmask 8192  }
  0x20   : > { %s3173_s0 = sshll.u32 %s2609_s30, 3  ;;  %s3200_s21 = sshll.u32 %s2609_s30, 3 }
  0x21   : > { %s637_s27 = scalar_lea.vmem %s3195_s26, %s3173_s0  ;;  %s3196_s26 = sld [smem:[#allocation15_spill]] }
  0x22   : > { %v2617_v0 = vld [vmem:[%s637_s27] sm:$0xff]  ;;  %s3198_s27 = sld [smem:[#allocation14_spill]]  ;;  %s2280_s0 = sshll.u32 %s2580_s2, 3 }
  0x23   : > { %v647_v1 = vsel %vm646_vm0, %v2617_v0, 0.0  ;;  %s2109_s28 = scalar_lea.hbm %s3171_s20, %s2280_s0 }
  0x24   : > { %648 = vadd.xlane.f32.xlu0 %v647_v1  ;;  %s2113_s1 = sshll.u32 %s2109_s28, 4  ;;  %s2114_s1 = int_to_ptr.hbm [resolvable:$true] %s2113_s1 }
  0x25   : > { %v2335_v3 = vpop.eup %2334  ;;  %s2402_s24 = sshra.s32 %s2114_s1, 4  ;;  %s2403_s24 = int_to_ptr.hbm [resolvable:$true] %s2402_s24 }
  0x26   : > { %v651_v4 = vmul.f32 32.0, %v2335_v3  ;;  %vm655_vm1 = vweird.f32 %v2335_v3  ;;  %s2404_s0 = scalar_lea.hbm %s2403_s24, 8  ;;  %p2409_p0 = scmp.lt.s32.totalorder %s2403_s24, %s3171_s20 }
  0x27   : > { %v687_v14 = vld [vmem:[%s3196_s26 + $0x18] sm:$0xff]  ;;  %v686_v18 = vld [vmem:[%s3196_s26 + $0x10] sm:$0xff]  ;;  %v685_v22 = vld [vmem:[%s3196_s26 + $0x8] sm:$0xff]  ;;  %p2405_p11 = scmp.ne.s32.totalorder %s2403_s24, %s2404_s0 }
  0x28   : > { %v652_v5 = vsub.f32 1.0, %v651_v4  ;;  %v691_v15 = vld [vmem:[%s3196_s26 + $0x38] sm:$0xff]  ;;  %707 = vmatpush.msra.mxu0 %v687_v14  ;;  %v690_v19 = vld [vmem:[%s3196_s26 + $0x30] sm:$0xff]  ;;  %v689_v23 = vld [vmem:[%s3196_s26 + $0x28] sm:$0xff] }
  0x29   : > { %v2201_v16 = vld [vmem:[%s3196_s26 + $0x78] sm:$0xff]  ;;  %727 = vmatpush.msra.mxu2 %v691_v15  ;;  %v2200_v20 = vld [vmem:[%s3196_s26 + $0x70] sm:$0xff]  ;;  %v2199_v24 = vld [vmem:[%s3196_s26 + $0x68] sm:$0xff]  ;;  %p2406_p12 = pnand %p2405_p11, %p2597_p5 }
  0x2a   : > { %v653_v6 = vmul.f32 %v2335_v3, %v652_v5  ;;  %v2211_v17 = vld [vmem:[%s3196_s26 + $0xb8] sm:$0xff]  ;;  %776 = vmatpush.msra.mxu3 %v2201_v16  ;;  %708 = vmatpush.msra.mxu0 %v686_v18  ;;  %v2210_v21 = vld [vmem:[%s3196_s26 + $0xb0] sm:$0xff]  ;;  %v2209_v25 = vld [vmem:[%s3196_s26 + $0xa8] sm:$0xff] }
  0x2b   : > { %825 = vmatpush.msra.mxu1 %v2211_v17  ;;  %728 = vmatpush.msra.mxu2 %v690_v19  ;;  %v684_v26 = vld [vmem:[%s3196_s26] sm:$0xff]  ;;  %v2197_v30 = vld [vmem:[%s3196_s26 + $0x58] sm:$0xff]  ;;  %v2196_v32 = vld [vmem:[%s3196_s26 + $0x50] sm:$0xff]  ;;  %p2407_p13 = pneg %p2406_p12 }
  0x2c   : > { %v654_v7 = vadd.f32 %v2335_v3, %v653_v6  ;;  %777 = vmatpush.msra.mxu3 %v2200_v20  ;;  %709 = vmatpush.msra.mxu0 %v685_v22  ;;  %v688_v27 = vld [vmem:[%s3196_s26 + $0x20] sm:$0xff]  ;;  %v2207_v31 = vld [vmem:[%s3196_s26 + $0x98] sm:$0xff]  ;;  %v2206_v33 = vld [vmem:[%s3196_s26 + $0x90] sm:$0xff] }
  0x2d   : > { %826 = vmatpush.msra.mxu1 %v2210_v21  ;;  %729 = vmatpush.msra.mxu2 %v689_v23  ;;  %v2198_v28 = vld [vmem:[%s3196_s26 + $0x60] sm:$0xff]  ;;  %v2195_v35 = vld [vmem:[%s3196_s26 + $0x48] sm:$0xff]  ;;  %v836_v21 = vld [vmem:[%s3199_s5 + $0x18] sm:$0xff] }
  0x2e   : > { %v2621_v8 = vsel %vm655_vm1, %v2335_v3, %v654_v7  ;;  %778 = vmatpush.msra.mxu3 %v2199_v24  ;;  %710 = vmatpush.msra.mxu0 %v684_v26  ;;  %v2208_v29 = vld [vmem:[%s3196_s26 + $0xa0] sm:$0xff]  ;;  %v2205_v36 = vld [vmem:[%s3196_s26 + $0x88] sm:$0xff]  ;;  %v835_v22 = vld [vmem:[%s3199_s5 + $0x10] sm:$0xff]  ;;  %vm1320_vm1 = vcmask 15360  }
  0x2f   : > { %827 = vmatpush.msra.mxu1 %v2209_v25  ;;  %730 = vmatpush.msra.mxu2 %v688_v27  ;;  %v2194_v38 = vld [vmem:[%s3196_s26 + $0x40] sm:$0xff] }
  0x30   : > { %779 = vmatpush.msra.mxu3 %v2198_v28  ;;  %805 = vmatpush.msrb.mxu0 %v2207_v31  ;;  %v2204_v39 = vld [vmem:[%s3196_s26 + $0x80] sm:$0xff] }
  0x31   : > { %828 = vmatpush.msra.mxu1 %v2208_v29  ;;  %756 = vmatpush.msrb.mxu2 %v2197_v30  ;;  %v2325_v49 = vld [vmem:[%s3198_s27] ss:$0 sm:$0xff]  ;;  %s3201_s27 = sld [smem:[#allocation12_spill]] }
  0x32   : > { %806 = vmatpush.msrb.mxu0 %v2206_v33  ;;  %v833_v20 = vld [vmem:[%s3199_s5] sm:$0xff] }
  0x33   : > { %757 = vmatpush.msrb.mxu2 %v2196_v32 }
  0x34   : > { %807 = vmatpush.msrb.mxu0 %v2205_v36 }
  0x35   : > { %758 = vmatpush.msrb.mxu2 %v2195_v35 }
  0x36   : > { %808 = vmatpush.msrb.mxu0 %v2204_v39 }
  0x37   : > { %759 = vmatpush.msrb.mxu2 %v2194_v38  ;;  %s641_s23 = scalar_lea.vmem %s3201_s27, %s3200_s21  ;;  %s631_s21 = sand.u32 1, %s2442_s22  }
  0x38   : > { %v643_v23 = vld [vmem:[%s641_s23] sm:$0xff]  ;;  %s2189_s25 = sshll.u32 %s631_s21, 3  ;;  %s2099_s2 = scalar_lea.sflag [#allocation3], %s631_s21 }
  0x39   : > { %v1048_v24 = vsel %vm646_vm0, %v643_v23, 0.0  ;;  %s633_s3 = scalar_lea.vmem [#allocation2], %s2189_s25  ;;  %s2408_s25 = scalar_lea.hbm %s3171_s20, 16 }
  0x3a   : > { %s2111_s29 = sshll.u32 %s633_s3, 4  ;;  %p2410_p1 = scmp.lt.s32.totalorder %s2408_s25, %s2404_s0  ;;  %s2112_s29 = int_to_ptr.vmem [resolvable:$true] %s2111_s29 }
  0x3c   : > { %p2411_p2 = por %p2410_p1, %p2409_p0 }
  0x3e   : > { %p2412_p3 = pnand %p2411_p2, %p2407_p13 }
  0x97   : > { %v649_v9 = vpop.xlane.xlu0 %648 }
  0x98   : > { %v657_v10 = vmul.f32 %v2621_v8, %v649_v9 }
  0x9a   : > { %v2625_v11 = vsub.f32 %v2617_v0, %v657_v10 }
  0x9c   : > { %v659_v12 = vmul.f32 %v2625_v11, %v2625_v11 }
  0x9e   : > { %v660_v13 = vsel %vm646_vm0, %v659_v12, 0.0 }
  0x9f   : > { %661 = vadd.xlane.f32.xlu0 %v660_v13  ;;  %v834_v13 = vld [vmem:[%s3199_s5 + $0x8] sm:$0xff] }
 0x112   : > { %v662_v34 = vpop.xlane.xlu0 %661 }
 0x113   : > { %v663_v37 = vmul.f32 %v662_v34, %v2621_v8  ;;  %v2326_v34 = vld [vmem:[%s3157_s6] ss:$0 sm:$0xff] }
 0x115   : > { %v664_v40 = vadd.f32 1e-05, %v663_v37 }
 0x117   : > { %2336 = vrsqrt.f32 %v664_v40  ;;  %vm671_vm3 = vweird.f32 %v664_v40 }
 0x11d   : > { %v2337_v41 = vpop.eup %2336 }
 0x11e   : > { %v666_v42 = vmul.f32 %v2337_v41, %v664_v40  ;;  %vm672_vm2 = vweird.f32 %v2337_v41 }
 0x11f   : > { %vm673_vm4 = vmor %vm671_vm3, %vm672_vm2 }
 0x120   : > { %v667_v43 = vmul.f32 %v2337_v41, %v666_v42  ;;  %v2231_v42 = vld [vmem:[%s3160_s9 + $0x78] sm:$0xff] }
 0x122   : > { %v668_v44 = vmul.f32 0.5, %v667_v43  ;;  %v2226_v43 = vld [vmem:[%s3160_s9 + $0x50] sm:$0xff] }
 0x124   : > { %v669_v45 = vsub.f32 1.5, %v668_v44  ;;  %v2230_v44 = vld [vmem:[%s3160_s9 + $0x70] sm:$0xff] }
 0x126   : > { %v670_v46 = vmul.f32 %v2337_v41, %v669_v45 }
 0x128   : > { %v674_v48 = vsel %vm673_vm4, %v2337_v41, %v670_v46  ;;  %v2227_v41 = vld [vmem:[%s3160_s9 + $0x58] sm:$0xff]  ;;  %v2225_v46 = vld [vmem:[%s3160_s9 + $0x48] sm:$0xff] }
 0x129   : > { %v675_v50 = vmul.f32 %v674_v48, %v2625_v11  ;;  %v2224_v48 = vld [vmem:[%s3160_s9 + $0x40] sm:$0xff] }
 0x12b   : > { %v679_v51 = vmul.f32 %v2324_v47, %v675_v50  ;;  %v2229_v47 = vld [vmem:[%s3160_s9 + $0x68] sm:$0xff] }
 0x12d   : > { %v683_v52 = vadd.f32 %v2325_v49, %v679_v51  ;;  %v2228_v49 = vld [vmem:[%s3160_s9 + $0x60] sm:$0xff] }
 0x12f   : > { %2192 = vmatmul.msk.f32.vlgmr.msra.gmra.mxu0 %vm646_vm0, %v683_v52  ;;  %2193 = vmatmul.msk.f32.vlgmr.msra.gmra.mxu2 %vm646_vm0, %v683_v52 }
 0x130   : > { %2203 = vmatmul.msk.f32.vlgmr.msra.gmra.mxu3 %vm646_vm0, %v683_v52  ;;  %2213 = vmatmul.msk.f32.vlgmr.msra.gmra.mxu1 %vm646_vm0, %v683_v52 }
 0x137   : > { %2202 = vmatmul.msk.f32.vlgmr.msrb.gmra.mxu2 %vm646_vm0, %v683_v52  ;;  %2212 = vmatmul.msk.f32.vlgmr.msrb.gmra.mxu0 %vm646_vm0, %v683_v52 }
 0x1ac   : > { %v712_v53 = vpop.f32.mrf.mxu0 }
 0x1ad   : > { %v830_v54 = vpop.f32.mrf.mxu1 }
 0x1ae   : > { %956 = vmatpush.msrb.mxu1 %v830_v54 }
 0x1b2   : > { %v732_v55 = vpop.f32.mrf.mxu2 }
 0x1b3   : > { %v781_v56 = vpop.f32.mrf.mxu3 }
 0x1b4   : > { %2216 = vmatpush.xpose.msk.msrb.mxu3 %vm837_vm5, %v781_v56  ;;  %v810_v57 = vpop.f32.mrf.mxu0 }
 0x1b5   : > { %933 = vmatpush.msra.mxu0 %v810_v57 }
 0x1b7   : > { %2217 = vmatmul.msk.f32.vlgmr.msrb.gmra.mxu3 %vm837_vm5, %v732_v55 }
 0x1b8   : > { %1001 = vmatpush.msra.mxu3 %v836_v21 }
 0x1ba   : > { %v761_v58 = vpop.f32.mrf.mxu2  ;;  %1002 = vmatpush.msra.mxu3 %v835_v22  ;;  %v2234_v22 = vld [vmem:[%s3160_s9 + $0x80] sm:$0xff] }
 0x1bb   : > { %2214 = vmatpush.xpose.msk.msra.mxu2 %vm837_vm5, %v761_v58 }
 0x1bc   : > { %1167 = vmatpush.msrb.mxu3 %v2231_v42 }
 0x1be   : > { %2215 = vmatmul.msk.f32.vlgmr.msra.gmra.mxu2 %vm837_vm5, %v712_v53  ;;  %1168 = vmatpush.msrb.mxu3 %v2230_v44 }
 0x1bf   : > { %978 = vmatpush.msrb.mxu2 %v834_v13  ;;  %v1076_v13 = vld [vmem:[%s3160_s9 + $0x20] sm:$0xff] }
 0x1c0   : > { %1169 = vmatpush.msrb.mxu3 %v2229_v47 }
 0x1c1   : > { %979 = vmatpush.msrb.mxu2 %v833_v20 }
 0x1c2   : > { %1170 = vmatpush.msrb.mxu3 %v2228_v49 }
 0x1c3   : > { %1147 = vmatpush.msra.mxu2 %v2227_v41  ;;  %v2872_v41 = vld [vmem:[%s3161_s10 + $0x10] sm:$0xff] }
 0x1c5   : > { %1148 = vmatpush.msra.mxu2 %v2226_v43 }
 0x1c7   : > { %1149 = vmatpush.msra.mxu2 %v2225_v46 }
 0x1c9   : > { %1150 = vmatpush.msra.mxu2 %v2224_v48 }
 0x23a   : > { %v887_v62 = vpop.f32.mrf.mxu3 }
 0x23b   : > { %v891_v63 = vmul.f32 0.17677669, %v887_v62  ;;  %v2327_v62 = vld [vmem:[%s3158_s7] ss:$0 sm:$0xff] }
 0x23d   : > { %v896_v1 = vsel %vm892_vm6, %v891_v63, -inf }
 0x241   : > { %v861_v59 = vpop.f32.mrf.mxu2 }
 0x242   : > { %v890_v60 = vmul.f32 0.17677669, %v861_v59 }
 0x244   : > { %v893_v61 = vsel %vm892_vm6, %v890_v60, -inf }
 0x245   : > { %894 = vmax.xlane.f32.xlu1 %v893_v61 }
 0x24d   : > { %897 = vmax.xlane.f32.xlu1 %v896_v1 }
 0x255   : > { %1049 = vadd.xlane.f32.xlu1 %v1048_v24 }
 0x2b8   : > { %v895_v2 = vpop.xlane.xlu1 %894 }
 0x2b9   : > { %v899_v3 = vsub.f32 %v890_v60, %v895_v2  ;;  %v2328_v2 = vld [vmem:[%s3159_s8] ss:$0 sm:$0xff] }
 0x2bb   : > { %v901_v4 = vmul.f32 1.442695, %v899_v3 }
 0x2bd   : > { %2338 = vpow2.f32 %v901_v4 }
 0x2c0   : > { %v898_v5 = vpop.xlane.xlu1 %897 }
 0x2c1   : > { %v900_v6 = vsub.f32 %v891_v63, %v898_v5  ;;  %v1075_v5 = vld [vmem:[%s3160_s9 + $0x18] sm:$0xff] }
 0x2c2   : > { %1095 = vmatpush.msrb.mxu0 %v1075_v5 }
 0x2c3   : > { %v2339_v7 = vpop.eup %2338  ;;  %v903_v9 = vmul.f32 1.442695, %v900_v6  ;;  %v1079_v6 = vld [vmem:[%s3160_s9 + $0x38] sm:$0xff] }
 0x2c4   : > { %v905_v10 = vsel %vm892_vm6, %v2339_v7, 0.0  ;;  %1115 = vmatpush.msra.mxu1 %v1079_v6 }
 0x2c5   : > { %2340 = vpow2.f32 %v903_v9  ;;  %906 = vadd.xlane.f32.xlu2 %v905_v10  ;;  %v1078_v9 = vld [vmem:[%s3160_s9 + $0x30] sm:$0xff]  ;;  %v1073_v10 = vld [vmem:[%s3160_s9 + $0x8] sm:$0xff] }
 0x2c6   : > { %1116 = vmatpush.msra.mxu1 %v1078_v9 }
 0x2c8   : > { %v1050_v28 = vpop.xlane.xlu1 %1049 }
 0x2c9   : > { %v1051_v33 = vmul.f32 %v1050_v28, %v2621_v8 }
 0x2cb   : > { %v2341_v11 = vpop.eup %2340  ;;  %v1052_v36 = vsub.f32 %v643_v23, %v1051_v33  ;;  %v2238_v23 = vld [vmem:[%s3160_s9 + $0xa0] sm:$0xff] }
 0x2cc   : > { %v908_v12 = vsel %vm892_vm6, %v2341_v11, 0.0 }
 0x2cd   : > { %909 = vadd.xlane.f32.xlu2 %v908_v12  ;;  %v1053_v39 = vmul.f32 %v1052_v36, %v1052_v36  ;;  %v1072_v12 = vld [vmem:[%s3160_s9] sm:$0xff] }
 0x2cf   : > { %v1054_v40 = vsel %vm646_vm0, %v1053_v39, 0.0 }
 0x338   : > { %v907_v14 = vpop.xlane.xlu2 %906 }
 0x339   : > { %2342 = vrcp.f32 %v907_v14  ;;  %v2237_v14 = vld [vmem:[%s3160_s9 + $0x98] sm:$0xff] }
 0x33f   : > { %v2343_v15 = vpop.eup %2342 }
 0x340   : > { %v913_v16 = vmul.f32 %v2343_v15, %v2339_v7  ;;  %v910_v17 = vpop.xlane.xlu2 %909  ;;  %v1074_v7 = vld [vmem:[%s3160_s9 + $0x10] sm:$0xff]  ;;  %v2241_v15 = vld [vmem:[%s3160_s9 + $0xb8] sm:$0xff] }
 0x341   : > { %2344 = vrcp.f32 %v910_v17  ;;  %1096 = vmatpush.msrb.mxu0 %v1074_v7  ;;  %v2240_v17 = vld [vmem:[%s3160_s9 + $0xb0] sm:$0xff] }
 0x342   : > { %2218 = vmatmul.msk.f32.vlgmr.msra.gmra.mxu0 %vm892_vm6, %v913_v16  ;;  %v2236_v16 = vld [vmem:[%s3160_s9 + $0x90] sm:$0xff] }
 0x343   : > { %1097 = vmatpush.msrb.mxu0 %v1073_v10 }
 0x345   : > { %1098 = vmatpush.msrb.mxu0 %v1072_v12 }
 0x347   : > { %v2345_v18 = vpop.eup %2344  ;;  %1196 = vmatpush.msra.mxu0 %v2237_v14 }
 0x348   : > { %v914_v19 = vmul.f32 %v2345_v18, %v2341_v11  ;;  %v1077_v11 = vld [vmem:[%s3160_s9 + $0x28] sm:$0xff] }
 0x349   : > { %1117 = vmatpush.msra.mxu1 %v1077_v11  ;;  %v2235_v18 = vld [vmem:[%s3160_s9 + $0x88] sm:$0xff]  ;;  %1197 = vmatpush.msra.mxu0 %v2236_v16 }
 0x34a   : > { %2219 = vmatmul.msk.f32.vlgmr.msrb.gmra.mxu1 %vm892_vm6, %v914_v19  ;;  %v2239_v19 = vld [vmem:[%s3160_s9 + $0xa8] sm:$0xff] }
 0x34b   : > { %1118 = vmatpush.msra.mxu1 %v1076_v13  ;;  %1198 = vmatpush.msra.mxu0 %v2235_v18 }
 0x34d   : > { %1216 = vmatpush.msrb.mxu1 %v2241_v15  ;;  %1199 = vmatpush.msra.mxu0 %v2234_v22 }
 0x34f   : > { %1217 = vmatpush.msrb.mxu1 %v2240_v17 }
 0x351   : > { %1218 = vmatpush.msrb.mxu1 %v2239_v19 }
 0x353   : > { %1219 = vmatpush.msrb.mxu1 %v2238_v23 }
 0x3bf   : > { %v935_v25 = vpop.f32.mrf.mxu0 }
 0x3c0   : > { %2220 = vmatmul.msk.f32.vlgmr.msrb.gmra.mxu2 %vm837_vm5, %v935_v25 }
 0x3c7   : > { %v958_v26 = vpop.f32.mrf.mxu1 }
 0x3c8   : > { %2221 = vmatmul.msk.f32.vlgmr.msra.gmra.mxu3 %vm837_vm5, %v958_v26 }
 0x443   : > { %v981_v27 = vpop.f32.mrf.mxu2 }
 0x444   : > { %v1007_v30 = vsel %vm646_vm0, %v981_v27, 0.0 }
 0x44b   : > { %v1004_v29 = vpop.f32.mrf.mxu3 }
 0x44c   : > { %v1008_v31 = vsel %vm646_vm0, %v1004_v29, 0.0 }
 0x44d   : > { %v1009_v32 = vadd.f32 %v1008_v31, %v1007_v30 }
 0x44f   : > { %v1010_v35 = vadd.f32 %v1009_v32, %v2617_v0 }
 0x451   : > { %v2753_v37 = vadd.f32 %v2326_v34, %v1010_v35  ;;  %v2453_v35 = vmov 8.0  }
 0x453   : > { %v1018_v38 = vsel %vm646_vm0, %v2753_v37, 0.0 }
 0x454   : > { %1019 = vadd.xlane.f32.xlu0 %v1018_v38  ;;  %v2860_v38 = vld [vmem:[%s3161_s10 + $0x18] sm:$0xff] }
 0x455   : > { %1307 = vmatpush.msra.mxu3 %v2860_v38 }
 0x457   : > { %1308 = vmatpush.msra.mxu3 %v2872_v41 }
 0x45c   : > { %1055 = vadd.xlane.f32.xlu0 %v1054_v40  ;;  %v2867_v40 = vld [vmem:[%s3161_s10] sm:$0xff] }
 0x4c7   : > { %v1020_v0 = vpop.xlane.xlu0 %1019 }
 0x4c8   : > { %v1021_v45 = vmul.f32 %v1020_v0, %v2621_v8 }
 0x4ca   : > { %v2784_v50 = vsub.f32 %v2753_v37, %v1021_v45 }
 0x4cc   : > { %v1023_v51 = vmul.f32 %v2784_v50, %v2784_v50 }
 0x4ce   : > { %v1024_v52 = vsel %vm646_vm0, %v1023_v51, 0.0 }
 0x4cf   : > { %1025 = vadd.xlane.f32.xlu2 %v1024_v52  ;;  %v1056_v53 = vpop.xlane.xlu0 %1055 }
 0x4d0   : > { %v1057_v54 = vmul.f32 %v1056_v53, %v2621_v8 }
 0x4d2   : > { %v1058_v55 = vadd.f32 1e-05, %v1057_v54 }
 0x4d4   : > { %2346 = vrsqrt.f32 %v1058_v55  ;;  %vm1065_vm7 = vweird.f32 %v1058_v55 }
 0x4da   : > { %v2347_v56 = vpop.eup %2346 }
 0x4db   : > { %v1060_v57 = vmul.f32 %v2347_v56, %v1058_v55  ;;  %vm1066_vm8 = vweird.f32 %v2347_v56 }
 0x4dc   : > { %vm1067_vm9 = vmor %vm1065_vm7, %vm1066_vm8 }
 0x4dd   : > { %v1061_v58 = vmul.f32 %v2347_v56, %v1060_v57 }
 0x4df   : > { %v1062_v59 = vmul.f32 0.5, %v1061_v58 }
 0x4e1   : > { %v1063_v60 = vsub.f32 1.5, %v1062_v59 }
 0x4e3   : > { %v1064_v61 = vmul.f32 %v2347_v56, %v1063_v60 }
 0x4e5   : > { %v1068_v63 = vsel %vm1067_vm9, %v2347_v56, %v1064_v61 }
 0x4e6   : > { %v1069_v1 = vmul.f32 %v1068_v63, %v1052_v36  ;;  %v2855_v36 = vld [vmem:[%s3161_s10 + $0x8] sm:$0xff] }
 0x4e7   : > { %1284 = vmatpush.msrb.mxu2 %v2855_v36 }
 0x4e8   : > { %v1070_v3 = vmul.f32 %v2327_v62, %v1069_v1 }
 0x4e9   : > { %1285 = vmatpush.msrb.mxu2 %v2867_v40 }
 0x4ea   : > { %v1071_v4 = vadd.f32 %v2328_v2, %v1070_v3 }
 0x4ec   : > { %2232 = vmatmul.msk.f32.vlgmr.msra.gmra.mxu2 %vm646_vm0, %v1071_v4  ;;  %2233 = vmatmul.msk.f32.vlgmr.msrb.gmra.mxu3 %vm646_vm0, %v1071_v4 }
 0x4ed   : > { %1466 = vmatpush.msra.mxu2 %v2855_v36  ;;  %1489 = vmatpush.msrb.mxu3 %v2860_v38 }
 0x4ef   : > { %1467 = vmatpush.msra.mxu2 %v2867_v40  ;;  %1490 = vmatpush.msrb.mxu3 %v2872_v41 }
 0x542   : > { %v1026_v20 = vpop.xlane.xlu2 %1025 }
 0x543   : > { %v1027_v21 = vmul.f32 %v1026_v20, %v2621_v8 }
 0x545   : > { %v1028_v24 = vadd.f32 1e-05, %v1027_v21 }
 0x547   : > { %2348 = vrsqrt.f32 %v1028_v24  ;;  %vm1035_vm11 = vweird.f32 %v1028_v24 }
 0x548   : > { %2350 = vrcp.f32 %v2453_v35 }
 0x54d   : > { %v2349_v25 = vpop.eup %2348 }
 0x54e   : > { %v1030_v26 = vmul.f32 %v2349_v25, %v1028_v24  ;;  %vm1036_vm10 = vweird.f32 %v2349_v25  ;;  %v2351_v39 = vpop.eup %2350 }
 0x54f   : > { %vm1037_vm12 = vmor %vm1035_vm11, %vm1036_vm10  ;;  %v1253_v42 = vmul.f32 8.0, %v2351_v39  ;;  %vm1257_vm13 = vweird.f32 %v2351_v39 }
 0x550   : > { %v1031_v27 = vmul.f32 %v2349_v25, %v1030_v26 }
 0x551   : > { %v1254_v44 = vsub.f32 1.0, %v1253_v42 }
 0x552   : > { %v1032_v28 = vmul.f32 0.5, %v1031_v27 }
 0x553   : > { %v1255_v53 = vmul.f32 %v2351_v39, %v1254_v44 }
 0x554   : > { %v1033_v29 = vsub.f32 1.5, %v1032_v28 }
 0x555   : > { %v1256_v58 = vadd.f32 %v2351_v39, %v1255_v53 }
 0x556   : > { %v1034_v30 = vmul.f32 %v2349_v25, %v1033_v29 }
 0x557   : > { %v2905_v15 = vsel %vm1257_vm13, %v2351_v39, %v1256_v58 }
 0x558   : > { %v1038_v31 = vsel %vm1037_vm12, %v2349_v25, %v1034_v30 }
 0x559   : > { %v1039_v32 = vmul.f32 %v1038_v31, %v2784_v50 }
 0x55b   : > { %v1043_v33 = vmul.f32 %v2327_v62, %v1039_v32 }
 0x55d   : > { %v1047_v34 = vadd.f32 %v2328_v2, %v1043_v33 }
 0x55f   : > { %2222 = vmatmul.msk.f32.vlgmr.msrb.gmra.mxu0 %vm646_vm0, %v1047_v34  ;;  %2223 = vmatmul.msk.f32.vlgmr.msra.gmra.mxu1 %vm646_vm0, %v1047_v34 }
 0x567   : > { %2242 = vmatmul.msk.f32.vlgmr.msra.gmra.mxu0 %vm646_vm0, %v1071_v4  ;;  %2243 = vmatmul.msk.f32.vlgmr.msrb.gmra.mxu1 %vm646_vm0, %v1071_v4 }
 0x56f   : > { %v2878_v0 = vpop.f32.mrf.mxu2  ;;  %v2880_v43 = vpop.f32.mrf.mxu3 }
 0x570   : > { %v1413_v45 = vsel %vm837_vm5, %v2878_v0, -inf  ;;  %v1427_v46 = vsel %vm837_vm5, %v2878_v0, 0.0  ;;  %v1420_v47 = vsel %vm837_vm5, %v2880_v43, -inf  ;;  %v1434_v48 = vsel %vm837_vm5, %v2880_v43, 0.0 }
 0x571   : > { %v1414_v49 = vrot.slane %v1413_v45, 4  ;;  %v1428_v50 = vrot.slane %v1427_v46, 4  ;;  %v1421_v51 = vrot.slane %v1420_v47, 4  ;;  %v1435_v52 = vrot.slane %v1434_v48, 4 }
 0x573   : > { %v1415_v54 = vmax.f32 %v1413_v45, %v1414_v49  ;;  %v1429_v55 = vadd.f32 %v1428_v50, %v1427_v46  ;;  %v1422_v56 = vmax.f32 %v1420_v47, %v1421_v51  ;;  %v1436_v57 = vadd.f32 %v1435_v52, %v1434_v48 }
 0x575   : > { %v1416_v6 = vrot.slane %v1415_v54, 2  ;;  %v1430_v7 = vrot.slane %v1429_v55, 2  ;;  %v1423_v9 = vrot.slane %v1422_v56, 2  ;;  %v1437_v10 = vrot.slane %v1436_v57, 2 }
 0x577   : > { %v1417_v20 = vmax.f32 %v1415_v54, %v1416_v6  ;;  %v1431_v21 = vadd.f32 %v1430_v7, %v1429_v55  ;;  %v1424_v22 = vmax.f32 %v1422_v56, %v1423_v9  ;;  %v1438_v23 = vadd.f32 %v1437_v10, %v1436_v57 }
 0x579   : > { %v1432_v48 = vrot.slane %v1431_v21, 1  ;;  %v1439_v49 = vrot.slane %v1438_v23, 1  ;;  %v1418_v7 = vrot.slane %v1417_v20, 1  ;;  %v1425_v9 = vrot.slane %v1424_v22, 1 }
 0x5dc   : > { %v2892_v59 = vpop.f32.mrf.mxu0  ;;  %v2894_v60 = vpop.f32.mrf.mxu1 }
 0x5dd   : > { %v1224_v61 = vsel %vm837_vm5, %v2892_v59, -inf  ;;  %v1238_v62 = vsel %vm837_vm5, %v2892_v59, 0.0  ;;  %v1231_v63 = vsel %vm837_vm5, %v2894_v60, -inf  ;;  %v1245_v1 = vsel %vm837_vm5, %v2894_v60, 0.0 }
 0x5de   : > { %v1225_v2 = vrot.slane %v1224_v61, 4  ;;  %v1239_v3 = vrot.slane %v1238_v62, 4  ;;  %v1232_v4 = vrot.slane %v1231_v63, 4  ;;  %v1246_v5 = vrot.slane %v1245_v1, 4 }
 0x5e0   : > { %v1226_v11 = vmax.f32 %v1224_v61, %v1225_v2  ;;  %v1240_v12 = vadd.f32 %v1239_v3, %v1238_v62  ;;  %v1233_v13 = vmax.f32 %v1231_v63, %v1232_v4  ;;  %v1247_v14 = vadd.f32 %v1246_v5, %v1245_v1 }
 0x5e1   : > { %v1433_v1 = vadd.f32 %v1432_v48, %v1431_v21  ;;  %v1440_v2 = vadd.f32 %v1439_v49, %v1438_v23 }
 0x5e2   : > { %v1227_v16 = vrot.slane %v1226_v11, 2  ;;  %v1241_v17 = vrot.slane %v1240_v12, 2  ;;  %v1234_v18 = vrot.slane %v1233_v13, 2  ;;  %v1248_v19 = vrot.slane %v1247_v14, 2 }
 0x5e4   : > { %v1228_v24 = vmax.f32 %v1226_v11, %v1227_v16  ;;  %v1242_v25 = vadd.f32 %v1241_v17, %v1240_v12  ;;  %v1235_v26 = vmax.f32 %v1233_v13, %v1234_v18  ;;  %v1249_v27 = vadd.f32 %v1248_v19, %v1247_v14  ;;  %v2907_v28 = vpop.f32.mrf.mxu0  ;;  %v2909_v29 = vpop.f32.mrf.mxu1 }
 0x5e5   : > { %v1592_v30 = vsel %vm837_vm5, %v2907_v28, -inf  ;;  %v1606_v31 = vsel %vm837_vm5, %v2907_v28, 0.0  ;;  %v1599_v32 = vsel %vm837_vm5, %v2909_v29, -inf  ;;  %v1613_v33 = vsel %vm837_vm5, %v2909_v29, 0.0 }
 0x5e6   : > { %v1229_v34 = vrot.slane %v1228_v24, 1  ;;  %v1243_v35 = vrot.slane %v1242_v25, 1  ;;  %v1236_v39 = vrot.slane %v1235_v26, 1  ;;  %v1250_v42 = vrot.slane %v1249_v27, 1 }
 0x5e7   : > { %v1593_v44 = vrot.slane %v1592_v30, 4  ;;  %v1607_v45 = vrot.slane %v1606_v31, 4  ;;  %v1600_v46 = vrot.slane %v1599_v32, 4  ;;  %v1614_v47 = vrot.slane %v1613_v33, 4 }
 0x5e8   : > { %v1244_v50 = vadd.f32 %v1243_v35, %v1242_v25  ;;  %v1251_v51 = vadd.f32 %v1250_v42, %v1249_v27  ;;  %v1230_v52 = vmax.f32 %v1228_v24, %v1229_v34  ;;  %v1237_v53 = vmax.f32 %v1235_v26, %v1236_v39 }
 0x5e9   : > { %v1608_v54 = vadd.f32 %v1607_v45, %v1606_v31  ;;  %v1615_v55 = vadd.f32 %v1614_v47, %v1613_v33  ;;  %v1594_v58 = vmax.f32 %v1592_v30, %v1593_v44  ;;  %v1601_v61 = vmax.f32 %v1599_v32, %v1600_v46  ;;  %v1319_v32 = vld [vmem:[%s3162_s11 + $0x2] sm:$0x3]  ;;  %v1678_v46 = vld [vmem:[%s3162_s11] sm:$0x3] }
 0x5ea   : > { %v1259_v56 = vmul.f32 %v2905_v15, %v1244_v50  ;;  %v1260_v57 = vmul.f32 %v2905_v15, %v1251_v51  ;;  %v1441_v12 = vmul.f32 %v1433_v1, %v2905_v15  ;;  %v1442_v13 = vmul.f32 %v1440_v2, %v2905_v15  ;;  %2248 = vmatpush.msk.msra.mxu1 %vm1324_vm14, %v1319_v32  ;;  %v1500_v33 = vld [vmem:[%s3162_s11 + $0x2] sm:$0x3] }
 0x5eb   : > { %v1609_v62 = vrot.slane %v1608_v54, 2  ;;  %v1616_v63 = vrot.slane %v1615_v55, 2  ;;  %v1595_v10 = vrot.slane %v1594_v58, 2  ;;  %v1602_v11 = vrot.slane %v1601_v61, 2  ;;  %v1679_v47 = vld [vmem:[%s3162_s11 + $0x2] sm:$0x3] }
 0x5ec   : > { %v1261_v3 = vadd.f32 %v1259_v56, %v1230_v52  ;;  %v1262_v4 = vadd.f32 %v1260_v57, %v1237_v53  ;;  %v1419_v17 = vmax.f32 %v1417_v20, %v1418_v7  ;;  %v1426_v18 = vmax.f32 %v1424_v22, %v1425_v9  ;;  %2256 = vmatpush.msk.msrb.mxu1 %vm1324_vm14, %v1500_v33 }
 0x5ed   : > { %v1610_v5 = vadd.f32 %v1609_v62, %v1608_v54  ;;  %v1617_v6 = vadd.f32 %v1616_v63, %v1615_v55  ;;  %v1596_v19 = vmax.f32 %v1594_v58, %v1595_v10  ;;  %v1603_v21 = vmax.f32 %v1601_v61, %v1602_v11 }
 0x5ee   : > { %2244 = vmatmul.msk.f32.vlgmr.msrb.gmra.mxu2 %vm837_vm5, %v1261_v3  ;;  %2245 = vmatmul.msk.f32.vlgmr.msra.gmra.mxu3 %vm837_vm5, %v1262_v4  ;;  %v1443_v23 = vadd.f32 %v1441_v12, %v1419_v17  ;;  %v1444_v24 = vadd.f32 %v1442_v13, %v1426_v18 }
 0x5ef   : > { %1645 = vmatpush.msrb.mxu2 %v2855_v36  ;;  %1668 = vmatpush.msra.mxu3 %v2860_v38  ;;  %v1611_v14 = vrot.slane %v1610_v5, 1  ;;  %v1618_v16 = vrot.slane %v1617_v6, 1  ;;  %v1597_v26 = vrot.slane %v1596_v19, 1  ;;  %v1604_v38 = vrot.slane %v1603_v21, 1 }
 0x5f1   : > { %1646 = vmatpush.msrb.mxu2 %v2867_v40  ;;  %1669 = vmatpush.msra.mxu3 %v2872_v41  ;;  %v1612_v25 = vadd.f32 %v1611_v14, %v1610_v5  ;;  %v1619_v36 = vadd.f32 %v1618_v16, %v1617_v6  ;;  %v1598_v20 = vmax.f32 %v1596_v19, %v1597_v26  ;;  %v1318_v41 = vld [vmem:[%s3162_s11] sm:$0x3] }
 0x5f2   : > { %v1605_v22 = vmax.f32 %v1603_v21, %v1604_v38  ;;  %2246 = vmatpush.msk.msrb.mxu0 %vm1324_vm14, %v1318_v41 }
 0x5f3   : > { %v1620_v27 = vmul.f32 %v1612_v25, %v2905_v15  ;;  %v1621_v40 = vmul.f32 %v1619_v36, %v2905_v15  ;;  %v1499_v15 = vld [vmem:[%s3162_s11] sm:$0x3] }
 0x5f4   : > { %2254 = vmatpush.msk.msra.mxu0 %vm1324_vm14, %v1499_v15 }
 0x5f5   : > { %v1622_v30 = vadd.f32 %v1620_v27, %v1598_v20  ;;  %v1623_v31 = vadd.f32 %v1621_v40, %v1605_v22 }
 0x5f6   : > { %2252 = vmatmul.msk.f32.vlgmr.msra.gmra.mxu2 %vm837_vm5, %v1443_v23  ;;  %2253 = vmatmul.msk.f32.vlgmr.msrb.gmra.mxu3 %vm837_vm5, %v1444_v24 }
 0x5fe   : > { %2260 = vmatmul.msk.f32.vlgmr.msrb.gmra.mxu2 %vm837_vm5, %v1622_v30  ;;  %2261 = vmatmul.msk.f32.vlgmr.msra.gmra.mxu3 %vm837_vm5, %v1623_v31 }
 0x671   : > { %v1287_v34 = vpop.f32.mrf.mxu2  ;;  %v1310_v35 = vpop.f32.mrf.mxu3 }
 0x672   : > { %v1314_v39 = vsel %vm1313_vm15, %v1287_v34, 0.0  ;;  %v1315_v42 = vsel %vm1313_vm15, %v1310_v35, 0.0 }
 0x673   : > { %v1316_v44 = vadd.f32 %v1315_v42, %v1314_v39 }
 0x675   : > { %v1317_v45 = vmax.f32 %v1316_v44, 0.0 }
 0x677   : > { %2247 = vmatmul.msk.f32.vlgmr.msrb.gmra.mxu0 %vm1320_vm1, %v1317_v45  ;;  %2249 = vmatmul.msk.f32.vlgmr.msra.gmra.mxu1 %vm1320_vm1, %v1317_v45 }
 0x678   : > { %2262 = vmatpush.msk.msrb.mxu0 %vm1324_vm14, %v1678_v46  ;;  %2264 = vmatpush.msk.msra.mxu1 %vm1324_vm14, %v1679_v47 }
 0x679   : > { %v1469_v48 = vpop.f32.mrf.mxu2  ;;  %v1492_v49 = vpop.f32.mrf.mxu3 }
 0x67a   : > { %v1495_v50 = vsel %vm1313_vm15, %v1469_v48, 0.0  ;;  %v1496_v51 = vsel %vm1313_vm15, %v1492_v49, 0.0 }
 0x67b   : > { %v1497_v52 = vadd.f32 %v1496_v51, %v1495_v50 }
 0x67d   : > { %v1498_v53 = vmax.f32 %v1497_v52, 0.0 }
 0x67f   : > { %2255 = vmatmul.msk.f32.vlgmr.msra.gmra.mxu0 %vm1320_vm1, %v1498_v53  ;;  %2257 = vmatmul.msk.f32.vlgmr.msrb.gmra.mxu1 %vm1320_vm1, %v1498_v53 }
 0x681   : > { %v1648_v54 = vpop.f32.mrf.mxu2  ;;  %v1671_v55 = vpop.f32.mrf.mxu3 }
 0x682   : > { %v1674_v56 = vsel %vm1313_vm15, %v1648_v54, 0.0  ;;  %v1675_v57 = vsel %vm1313_vm15, %v1671_v55, 0.0 }
 0x683   : > { %v1676_v58 = vadd.f32 %v1675_v57, %v1674_v56 }
 0x685   : > { %v1677_v61 = vmax.f32 %v1676_v58, 0.0  ;;  %v1772_v58 = vld [vmem:[%s3163_s12 + $0x8] sm:$0xff] }
 0x687   : > { %2263 = vmatmul.msk.f32.vlgmr.msrb.gmra.mxu0 %vm1320_vm1, %v1677_v61  ;;  %2265 = vmatmul.msk.f32.vlgmr.msra.gmra.mxu1 %vm1320_vm1, %v1677_v61 }
 0x6f4   : > { %v1345_v62 = vpop.f32.mrf.mxu0  ;;  %v1368_v63 = vpop.f32.mrf.mxu1 }
 0x6f5   : > { %v2250_v1 = vmul.f32 -1.442695, %v1345_v62  ;;  %v2251_v2 = vmul.f32 -1.442695, %v1368_v63 }
 0x6f7   : > { %2352 = vpow2.f32 %v2250_v1 }
 0x6f8   : > { %2354 = vpow2.f32 %v2251_v2 }
 0x6fc   : > { %v1524_v3 = vpop.f32.mrf.mxu0  ;;  %v1547_v4 = vpop.f32.mrf.mxu1 }
 0x6fd   : > { %v2353_v5 = vpop.eup %2352  ;;  %v2258_v6 = vmul.f32 -1.442695, %v1524_v3  ;;  %v2259_v10 = vmul.f32 -1.442695, %v1547_v4 }
 0x6fe   : > { %v2355_v7 = vpop.eup %2354  ;;  %v1377_v9 = vadd.f32 1.0, %v2353_v5 }
 0x6ff   : > { %v1378_v11 = vadd.f32 1.0, %v2355_v7  ;;  %2356 = vpow2.f32 %v2258_v6 }
 0x700   : > { %2358 = vrcp.f32 %v1377_v9  ;;  %v1388_v40 = vand.u32 2147483647, %v1377_v9  ;;  %v1390_v22 = vand.u32 2147483648, %v1377_v9  ;;  %vm1384_vm3 = vweird.f32 %v1377_v9 }
 0x701   : > { %2360 = vrcp.f32 %v1378_v11  ;;  %vm1399_vm4 = vweird.f32 %v1378_v11  ;;  %v1403_v35 = vand.u32 2147483647, %v1378_v11  ;;  %v1405_v39 = vand.u32 2147483648, %v1378_v11 }
 0x702   : > { %2362 = vpow2.f32 %v2259_v10  ;;  %vm2980_vm7 = vcmp.eq.f32.partialorder %v1388_v40, 8.507059e+37  ;;  %v1391_v45 = vor.u32 1.1754944e-38, %v1390_v22 }
 0x703   : > { %vm2997_vm11 = vcmp.eq.f32.partialorder %v1403_v35, 8.507059e+37  ;;  %v1406_v55 = vor.u32 1.1754944e-38, %v1405_v39 }
 0x704   : > { %v1703_v12 = vpop.f32.mrf.mxu0  ;;  %v1726_v13 = vpop.f32.mrf.mxu1 }
 0x705   : > { %v2357_v14 = vpop.eup %2356  ;;  %v2266_v16 = vmul.f32 -1.442695, %v1703_v12  ;;  %v2267_v19 = vmul.f32 -1.442695, %v1726_v13 }
 0x706   : > { %v2359_v17 = vpop.eup %2358  ;;  %v1556_v18 = vadd.f32 1.0, %v2357_v14 }
 0x707   : > { %v2971_v21 = vpop.eup %2360  ;;  %v1380_v23 = vmul.f32 %v2359_v17, %v1377_v9  ;;  %2364 = vpow2.f32 %v2266_v16  ;;  %vm1385_vm2 = vweird.f32 %v2359_v17 }
 0x708   : > { %v2363_v24 = vpop.eup %2362  ;;  %v1395_v25 = vmul.f32 %v2971_v21, %v1378_v11  ;;  %2366 = vrcp.f32 %v1556_v18  ;;  %vm2985_vm8 = vmor %vm1384_vm3, %vm1385_vm2  ;;  %v1569_v47 = vand.u32 2147483648, %v1556_v18  ;;  %vm1400_vm9 = vweird.f32 %v2971_v21 }
 0x709   : > { %v1381_v36 = vsub.f32 1.0, %v1380_v23  ;;  %v2974_v26 = vadd.f32 1.0, %v2363_v24  ;;  %2368 = vpow2.f32 %v2267_v19  ;;  %v1567_v53 = vand.u32 2147483647, %v1556_v18  ;;  %vm3003_vm12 = vmor %vm1399_vm4, %vm1400_vm9 }
 0x70a   : > { %v1396_v38 = vsub.f32 1.0, %v1395_v25  ;;  %vm1563_vm13 = vweird.f32 %v1556_v18  ;;  %v1570_v62 = vor.u32 1.1754944e-38, %v1569_v47 }
 0x70b   : > { %v1382_v27 = vmul.f32 %v2359_v17, %v1381_v36  ;;  %2370 = vrcp.f32 %v2974_v26  ;;  %v1584_v57 = vand.u32 2147483648, %v2974_v26  ;;  %v1582_v3 = vand.u32 2147483647, %v2974_v26 }
 0x70c   : > { %v1397_v41 = vmul.f32 %v2971_v21, %v1396_v38  ;;  %vm1568_vm1 = vcmp.eq.f32.partialorder %v1567_v53, 8.507059e+37  ;;  %vm1578_vm2 = vweird.f32 %v2974_v26 }
 0x70d   : > { %v2365_v20 = vpop.eup %2364  ;;  %v1383_v31 = vadd.f32 %v2359_v17, %v1382_v27  ;;  %v1585_v9 = vor.u32 1.1754944e-38, %v1584_v57  ;;  %vm1583_vm4 = vcmp.eq.f32.partialorder %v1582_v3, 8.507059e+37 }
 0x70e   : > { %v2367_v30 = vpop.eup %2366  ;;  %v2978_v32 = vadd.f32 1.0, %v2365_v20  ;;  %v1398_v49 = vadd.f32 %v2971_v21, %v1397_v41 }
 0x70f   : > { %v1559_v15 = vmul.f32 %v2367_v30, %v1556_v18  ;;  %v2369_v33 = vpop.eup %2368  ;;  %v1387_v51 = vsel %vm2985_vm8, %v2359_v17, %v1383_v31  ;;  %vm1564_vm10 = vweird.f32 %v2367_v30 }
 0x710   : > { %2372 = vrcp.f32 %v2978_v32  ;;  %v2989_v48 = vadd.f32 1.0, %v2369_v33  ;;  %v1392_v63 = vsel %vm2980_vm7, %v1391_v45, %v1387_v51  ;;  %vm1565_vm14 = vmor %vm1563_vm13, %vm1564_vm10  ;;  %v1402_v4 = vsel %vm3003_vm12, %v2971_v21, %v1398_v49 }
 0x711   : > { %v2371_v42 = vpop.eup %2370  ;;  %v1560_v46 = vsub.f32 1.0, %v1559_v15  ;;  %v1409_v11 = vperm.slane %v1392_v63, 0  ;;  %v1407_v16 = vsel %vm2997_vm11, %v1406_v55, %v1402_v4  ;;  %v1748_v17 = vand.u32 2147483648, %v2978_v32 }
 0x712   : > { %v1574_v50 = vmul.f32 %v2371_v42, %v2974_v26  ;;  %2374 = vrcp.f32 %v2989_v48  ;;  %vm1579_vm15 = vweird.f32 %v2371_v42  ;;  %v1746_v21 = vand.u32 2147483647, %v2978_v32 }
 0x713   : > { %v1561_v52 = vmul.f32 %v2367_v30, %v1560_v46  ;;  %vm1580_vm3 = vmor %vm1578_vm2, %vm1579_vm15  ;;  %v1410_v38 = vperm.slane %v1407_v16, 0  ;;  %vm1742_vm8 = vweird.f32 %v2978_v32  ;;  %v1411_v27 = vmul.f32 %v1409_v11, %v2892_v59  ;;  %v2329_v16 = vld [vmem:[%s3164_s13] ss:$0 sm:$0xff] }
 0x714   : > { %v1575_v56 = vsub.f32 1.0, %v1574_v50  ;;  %v1749_v20 = vor.u32 1.1754944e-38, %v1748_v17  ;;  %v1763_v22 = vand.u32 2147483648, %v2989_v48  ;;  %vm1747_vm11 = vcmp.eq.f32.partialorder %v1746_v21, 8.507059e+37 }
 0x715   : > { %v1562_v61 = vadd.f32 %v2367_v30, %v1561_v52  ;;  %vm1757_vm12 = vweird.f32 %v2989_v48  ;;  %v1412_v59 = vmul.f32 %v1410_v38, %v2894_v60  ;;  %v1985_v38 = vld [vmem:[%s3167_s16 + $0x8] sm:$0xff] }
 0x716   : > { %v2373_v1 = vpop.eup %2372  ;;  %v1576_v2 = vmul.f32 %v2371_v42, %v1575_v56  ;;  %v1764_v34 = vor.u32 1.1754944e-38, %v1763_v22 }
 0x717   : > { %v1738_v5 = vmul.f32 %v2373_v1, %v2978_v32  ;;  %v1566_v6 = vsel %vm1565_vm14, %v2367_v30, %v1562_v61  ;;  %vm1743_vm7 = vweird.f32 %v2373_v1  ;;  %v1774_v61 = vld [vmem:[%s3163_s12 + $0x18] sm:$0xff] }
 0x718   : > { %v1577_v7 = vadd.f32 %v2371_v42, %v1576_v2  ;;  %v1571_v10 = vsel %vm1568_vm1, %v1570_v62, %v1566_v6  ;;  %v2375_v12 = vpop.eup %2374  ;;  %vm1744_vm9 = vmor %vm1742_vm8, %vm1743_vm7  ;;  %v1773_v6 = vld [vmem:[%s3163_s12 + $0x10] sm:$0xff]  ;;  %vm2067_vm7 = vcmask 523264  }
 0x719   : > { %v1739_v13 = vsub.f32 1.0, %v1738_v5  ;;  %v1588_v14 = vperm.slane %v1571_v10, 0  ;;  %v1753_v18 = vmul.f32 %v2375_v12, %v2989_v48  ;;  %vm1758_vm10 = vweird.f32 %v2375_v12  ;;  %v1771_v5 = vld [vmem:[%s3163_s12] sm:$0xff] }
 0x71a   : > { %v1581_v19 = vsel %vm1580_vm3, %v2371_v42, %v1577_v7  ;;  %vm1759_vm13 = vmor %vm1757_vm12, %vm1758_vm10 }
 0x71b   : > { %v1740_v23 = vmul.f32 %v2373_v1, %v1739_v13  ;;  %v1590_v24 = vmul.f32 %v1588_v14, %v2878_v0  ;;  %v1586_v25 = vsel %vm1583_vm4, %v1585_v9, %v1581_v19  ;;  %v1754_v36 = vsub.f32 1.0, %v1753_v18 }
 0x71c   : > { %v1589_v26 = vperm.slane %v1586_v25, 0  ;;  %v1761_v0 = vand.u32 2147483647, %v2989_v48 }
 0x71d   : > { %2268 = vmatpush.xpose.msk.msra.mxu2 %vm837_vm5, %v1590_v24  ;;  %v1741_v40 = vadd.f32 %v2373_v1, %v1740_v23  ;;  %v1755_v30 = vmul.f32 %v2375_v12, %v1754_v36 }
 0x71e   : > { %v1591_v31 = vmul.f32 %v1589_v26, %v2880_v43  ;;  %vm1762_vm14 = vcmp.eq.f32.partialorder %v1761_v0, 8.507059e+37  ;;  %v1987_v26 = vld [vmem:[%s3167_s16 + $0x18] sm:$0xff] }
 0x71f   : > { %v1745_v41 = vsel %vm1744_vm9, %v2373_v1, %v1741_v40  ;;  %v1756_v15 = vadd.f32 %v2375_v12, %v1755_v30 }
 0x720   : > { %2270 = vmatpush.xpose.msk.msrb.mxu3 %vm837_vm5, %v1591_v31  ;;  %2269 = vmatmul.msk.f32.vlgmr.msra.gmra.mxu2 %vm837_vm5, %v1411_v27  ;;  %v1750_v32 = vsel %vm1747_vm11, %v1749_v20, %v1745_v41  ;;  %v1984_v27 = vld [vmem:[%s3167_s16] sm:$0xff] }
 0x721   : > { %v1767_v33 = vperm.slane %v1750_v32, 0  ;;  %v1760_v43 = vsel %vm1759_vm13, %v2375_v12, %v1756_v15  ;;  %1914 = vmatpush.msrb.mxu2 %v1772_v58  ;;  %v2062_v58 = vld [vmem:[%s3169_s18 + $0x18] sm:$0xff] }
 0x722   : > { %v1765_v39 = vsel %vm1762_vm14, %v1764_v34, %v1760_v43 }
 0x723   : > { %2271 = vmatmul.msk.f32.vlgmr.msrb.gmra.mxu3 %vm837_vm5, %v1412_v59  ;;  %v1769_v35 = vmul.f32 %v1767_v33, %v2907_v28  ;;  %v1768_v42 = vperm.slane %v1765_v39, 0  ;;  %1915 = vmatpush.msrb.mxu2 %v1771_v5  ;;  %v2330_v59 = vld [vmem:[%s3165_s14] ss:$0 sm:$0xff] }
 0x724   : > { %1937 = vmatpush.msra.mxu3 %v1774_v61  ;;  %v2332_v39 = vld [vmem:[%s3168_s17] ss:$0 sm:$0xff] }
 0x725   : > { %1869 = vmatpush.msra.mxu0 %v1769_v35  ;;  %v1770_v44 = vmul.f32 %v1768_v42, %v2909_v29 }
 0x726   : > { %1938 = vmatpush.msra.mxu3 %v1773_v6 }
 0x727   : > { %1892 = vmatpush.msrb.mxu1 %v1770_v44  ;;  %2007 = vmatpush.msrb.mxu0 %v1987_v26 }
 0x7a3   : > { %v1798_v45 = vpop.f32.mrf.mxu2 }
 0x7a4   : > { %v1827_v46 = vmul.f32 0.17677669, %v1798_v45 }
 0x7a6   : > { %v1824_v47 = vpop.f32.mrf.mxu3  ;;  %v1829_v60 = vsel %vm892_vm6, %v1827_v46, -inf }
 0x7a7   : > { %v1828_v48 = vmul.f32 0.17677669, %v1824_v47  ;;  %1830 = vmax.xlane.f32.xlu1 %v1829_v60 }
 0x7a9   : > { %v1832_v49 = vsel %vm892_vm6, %v1828_v48, -inf }
 0x7aa   : > { %1833 = vmax.xlane.f32.xlu2 %v1832_v49  ;;  %v2066_v49 = vld [vmem:[%s3169_s18 + $0x38] sm:$0xff] }
 0x7ab   : > { %2079 = vmatpush.msra.mxu1 %v2066_v49 }
 0x81a   : > { %v1831_v50 = vpop.xlane.xlu1 %1830 }
 0x81b   : > { %v1835_v51 = vsub.f32 %v1827_v46, %v1831_v50 }
 0x81d   : > { %v1834_v52 = vpop.xlane.xlu2 %1833  ;;  %v1837_v28 = vmul.f32 1.442695, %v1835_v51 }
 0x81e   : > { %v1836_v53 = vsub.f32 %v1828_v48, %v1834_v52  ;;  %v2065_v52 = vld [vmem:[%s3169_s18 + $0x30] sm:$0xff] }
 0x81f   : > { %2376 = vpow2.f32 %v1837_v28  ;;  %2080 = vmatpush.msra.mxu1 %v2065_v52 }
 0x820   : > { %v1839_v54 = vmul.f32 1.442695, %v1836_v53 }
 0x822   : > { %2378 = vpow2.f32 %v1839_v54  ;;  %v2064_v54 = vld [vmem:[%s3169_s18 + $0x28] sm:$0xff] }
 0x823   : > { %2081 = vmatpush.msra.mxu1 %v2064_v54 }
 0x825   : > { %v2377_v29 = vpop.eup %2376 }
 0x826   : > { %v1841_v55 = vsel %vm892_vm6, %v2377_v29, 0.0 }
 0x827   : > { %1842 = vadd.xlane.f32.xlu0 %v1841_v55  ;;  %v2063_v55 = vld [vmem:[%s3169_s18 + $0x20] sm:$0xff] }
 0x828   : > { %v2379_v56 = vpop.eup %2378  ;;  %2082 = vmatpush.msra.mxu1 %v2063_v55 }
 0x829   : > { %v1844_v57 = vsel %vm892_vm6, %v2379_v56, 0.0 }
 0x82a   : > { %1845 = vadd.xlane.f32.xlu1 %v1844_v57  ;;  %2083 = vmatpush.msra.mxu1 %v2062_v58 }
 0x89a   : > { %v1843_v62 = vpop.xlane.xlu0 %1842 }
 0x89b   : > { %2380 = vrcp.f32 %v1843_v62  ;;  %v2061_v62 = vld [vmem:[%s3169_s18 + $0x10] sm:$0xff] }
 0x89c   : > { %2084 = vmatpush.msra.mxu1 %v2061_v62 }
 0x89d   : > { %v1846_v63 = vpop.xlane.xlu1 %1845 }
 0x89e   : > { %2382 = vrcp.f32 %v1846_v63 }
 0x8a1   : > { %v2381_v1 = vpop.eup %2380 }
 0x8a2   : > { %v1849_v2 = vmul.f32 %v2381_v1, %v2377_v29  ;;  %v2060_v1 = vld [vmem:[%s3169_s18 + $0x8] sm:$0xff] }
 0x8a3   : > { %2085 = vmatpush.msra.mxu1 %v2060_v1 }
 0x8a4   : > { %v2383_v3 = vpop.eup %2382  ;;  %2272 = vmatmul.msk.f32.vlgmr.msra.gmra.mxu0 %vm892_vm6, %v1849_v2 }
 0x8a5   : > { %v1850_v4 = vmul.f32 %v2383_v3, %v2379_v56  ;;  %v2059_v3 = vld [vmem:[%s3169_s18] sm:$0xff] }
 0x8a6   : > { %2086 = vmatpush.msra.mxu1 %v2059_v3 }
 0x8a7   : > { %2273 = vmatmul.msk.f32.vlgmr.msrb.gmra.mxu1 %vm892_vm6, %v1850_v4 }
 0x921   : > { %v1871_v7 = vpop.f32.mrf.mxu0 }
 0x922   : > { %2274 = vmatmul.msk.f32.vlgmr.msrb.gmra.mxu2 %vm837_vm5, %v1871_v7 }
 0x924   : > { %v1894_v9 = vpop.f32.mrf.mxu1 }
 0x925   : > { %2275 = vmatmul.msk.f32.vlgmr.msra.gmra.mxu3 %vm837_vm5, %v1894_v9 }
 0x9a5   : > { %v1917_v10 = vpop.f32.mrf.mxu2 }
 0x9a6   : > { %v1943_v11 = vsel %vm646_vm0, %v1917_v10, 0.0 }
 0x9a8   : > { %v1940_v12 = vpop.f32.mrf.mxu3 }
 0x9a9   : > { %v1944_v13 = vsel %vm646_vm0, %v1940_v12, 0.0 }
 0x9aa   : > { %v1945_v14 = vadd.f32 %v1944_v13, %v1943_v11 }
 0x9ac   : > { %v1946_v17 = vadd.f32 %v1945_v14, %v2753_v37  ;;  %v1986_v37 = vld [vmem:[%s3167_s16 + $0x10] sm:$0xff] }
 0x9ad   : > { %2008 = vmatpush.msrb.mxu0 %v1986_v37 }
 0x9ae   : > { %v3060_v18 = vadd.f32 %v2329_v16, %v1946_v17 }
 0x9af   : > { %2009 = vmatpush.msrb.mxu0 %v1985_v38 }
 0x9b0   : > { %v1954_v19 = vsel %vm646_vm0, %v3060_v18, 0.0 }
 0x9b1   : > { %1955 = vadd.xlane.f32.xlu2 %v1954_v19  ;;  %2010 = vmatpush.msrb.mxu0 %v1984_v27 }
 0xa24   : > { %v1956_v21 = vpop.xlane.xlu2 %1955 }
 0xa25   : > { %v1957_v23 = vmul.f32 %v1956_v21, %v2621_v8 }
 0xa27   : > { %v1958_v24 = vsub.f32 %v3060_v18, %v1957_v23 }
 0xa29   : > { %v1959_v25 = vmul.f32 %v1958_v24, %v1958_v24 }
 0xa2b   : > { %v1960_v36 = vsel %vm646_vm0, %v1959_v25, 0.0 }
 0xa2c   : > { %1961 = vadd.xlane.f32.xlu0 %v1960_v36 }
 0xa9f   : > { %v1962_v40 = vpop.xlane.xlu0 %1961 }
 0xaa0   : > { %v1963_v20 = vmul.f32 %v1962_v40, %v2621_v8  ;;  %v2331_v8 = vld [vmem:[%s3166_s15] ss:$0 sm:$0xff] }
 0xaa2   : > { %v1964_v22 = vadd.f32 1e-05, %v1963_v20 }
 0xaa4   : > { %2384 = vrsqrt.f32 %v1964_v22  ;;  %vm1971_vm6 = vweird.f32 %v1964_v22 }
 0xaaa   : > { %v2385_v30 = vpop.eup %2384 }
 0xaab   : > { %v1966_v31 = vmul.f32 %v2385_v30, %v1964_v22  ;;  %vm1972_vm5 = vweird.f32 %v2385_v30  ;;  %v2333_v22 = vld [vmem:[%s3170_s19] ss:$0 sm:$0xff] }
 0xaac   : > { %vm1973_vm15 = vmor %vm1971_vm6, %vm1972_vm5 }
 0xaad   : > { %v1967_v0 = vmul.f32 %v2385_v30, %v1966_v31 }
 0xaaf   : > { %v1968_v41 = vmul.f32 0.5, %v1967_v0 }
 0xab1   : > { %v1969_v32 = vsub.f32 1.5, %v1968_v41 }
 0xab3   : > { %v1970_v15 = vmul.f32 %v2385_v30, %v1969_v32 }
 0xab5   : > { %v1974_v33 = vsel %vm1973_vm15, %v2385_v30, %v1970_v15 }
 0xab6   : > { %v1975_v34 = vmul.f32 %v1974_v33, %v1958_v24 }
 0xab8   : > { %v1979_v43 = vmul.f32 %v2330_v59, %v1975_v34 }
 0xaba   : > { %v1983_v35 = vadd.f32 %v2331_v8, %v1979_v43 }
 0xabc   : > { %2276 = vmatmul.msk.f32.vlgmr.msrb.gmra.mxu0 %vm646_vm0, %v1983_v35 }
 0xb39   : > { %v2012_v42 = vpop.f32.mrf.mxu0 }
 0xb3a   : > { %v2013_v44 = vadd.f32 %v2332_v39, %v2012_v42 }
 0xb3c   : > { %v2016_v45 = vmul.f32 0.70710677, %v2013_v44  ;;  %v2015_v27 = vmul.f32 0.5, %v2013_v44 }
 0xb3e   : > { %v2017_v46 = vmul.f32 %v2016_v45, %v2016_v45 }
 0xb40   : > { %v2018_v47 = vmin.f32 %v2017_v46, 16.0 }
 0xb42   : > { %v2019_v60 = vmul.f32 2.1237322e-06, %v2018_v47  ;;  %v2030_v48 = vmul.f32 3.8918573e-05, %v2018_v47 }
 0xb44   : > { %v2020_v50 = vadd.f32 0.00028619796, %v2019_v60  ;;  %v2031_v51 = vadd.f32 0.001143296, %v2030_v48 }
 0xb46   : > { %v2021_v28 = vmul.f32 %v2020_v50, %v2018_v47  ;;  %v2032_v53 = vmul.f32 %v2031_v51, %v2018_v47 }
 0xb48   : > { %v2033_v29 = vadd.f32 0.014752088, %v2032_v53  ;;  %v2022_v56 = vadd.f32 0.0036580483, %v2021_v28 }
 0xb4a   : > { %v2034_v57 = vmul.f32 %v2033_v29, %v2018_v47  ;;  %v2023_v63 = vmul.f32 %v2022_v56, %v2018_v47 }
 0xb4c   : > { %v2035_v61 = vadd.f32 0.112945676, %v2034_v57  ;;  %v2024_v5 = vadd.f32 0.05243302, %v2023_v63 }
 0xb4e   : > { %v2036_v2 = vmul.f32 %v2035_v61, %v2018_v47  ;;  %v2025_v9 = vmul.f32 %v2024_v5, %v2018_v47 }
 0xb50   : > { %v2037_v4 = vadd.f32 0.4994258, %v2036_v2  ;;  %v2026_v10 = vadd.f32 0.18741608, %v2025_v9 }
 0xb52   : > { %v2038_v6 = vmul.f32 %v2037_v4, %v2018_v47  ;;  %v2027_v12 = vmul.f32 %v2026_v10, %v2018_v47 }
 0xb54   : > { %v2039_v7 = vadd.f32 1.0, %v2038_v6  ;;  %v2028_v17 = vadd.f32 1.1283791, %v2027_v12 }
 0xb56   : > { %2386 = vrcp.f32 %v2039_v7  ;;  %v2051_v16 = vand.u32 2147483648, %v2039_v7  ;;  %v2049_v21 = vand.u32 2147483647, %v2039_v7  ;;  %vm2045_vm2 = vweird.f32 %v2039_v7 }
 0xb57   : > { %v2029_v25 = vmul.f32 %v2028_v17, %v2016_v45 }
 0xb58   : > { %v2052_v24 = vor.u32 1.1754944e-38, %v2051_v16  ;;  %vm2050_vm4 = vcmp.eq.f32.partialorder %v2049_v21, 8.507059e+37 }
 0xb5c   : > { %v2387_v11 = vpop.eup %2386 }
 0xb5d   : > { %v2041_v13 = vmul.f32 %v2387_v11, %v2039_v7  ;;  %vm2046_vm1 = vweird.f32 %v2387_v11 }
 0xb5e   : > { %vm2047_vm3 = vmor %vm2045_vm2, %vm2046_vm1 }
 0xb5f   : > { %v2042_v14 = vsub.f32 1.0, %v2041_v13 }
 0xb61   : > { %v2043_v19 = vmul.f32 %v2387_v11, %v2042_v14 }
 0xb63   : > { %v2044_v23 = vadd.f32 %v2387_v11, %v2043_v19 }
 0xb65   : > { %v2048_v36 = vsel %vm2047_vm3, %v2387_v11, %v2044_v23 }
 0xb66   : > { %v2053_v26 = vsel %vm2050_vm4, %v2052_v24, %v2048_v36 }
 0xb67   : > { %v2054_v37 = vmul.f32 %v2053_v26, %v2029_v25 }
 0xb69   : > { %v2277_v38 = vclamps-f32 %v2054_v37, 1.0 }
 0xb6b   : > { %v2057_v40 = vadd.f32 1.0, %v2277_v38 }
 0xb6d   : > { %v2058_v20 = vmul.f32 %v2057_v40, %v2015_v27 }
 0xb6f   : > { %2278 = vmatmul.msk.f32.vlgmr.msra.gmra.mxu1 %vm2067_vm7, %v2058_v20 }
 0xbec   : > { %v2088_v30 = vpop.f32.mrf.mxu1 }
 0xbed   : > { %v2091_v31 = vadd.f32 %v2088_v30, %v3060_v18 }
 0xbef   : > { %v2096_v0 = vadd.f32 %v2333_v22, %v2091_v31 }
 0xbf1   : > { %2097 = vst.msk [vmem:[%s633_s3] sm:$0xff] %vm646_vm0, %v2096_v0 }
 0xbf2   : > { %2415 = shalt.err (!%p2412_p3)
}
 0xbf3   : > { %2283 = dma.vmem_to_hbm [thread:$0]  (%p2597_p5), %s2112_s29, 128, %s2114_s1, %s2099_s2  }
 0xbf4 PF: > { %s3210_s21 = sld [smem:[#allocation7_spill]] }
 0xbf5   : > { %s3211_s26 = sld [smem:[#allocation5_spill]] }
 0xbfa   : > { %p2289_p4 = scmp.ge.s32.totalorder %s3210_s21, 2 }
 0xbfb   : > { %s2125_s5 = sand.u32 1, %s3211_s26  }
 0xbfc   : > { %p2286_p7 = pnand %p2289_p4, %p2601_p6  ;;  %s2126_s27 = scalar_lea.sflag [#allocation3], %s2125_s5 }
 0xbfe   : > { %p2287_p8 = pneg %p2286_p7 }
 0xc00   : > { %2433 = dma.done.wait (%p2287_p8), %s2126_s27, 128  }
 0xc01   : > { %2435 = vsyncadd (%p2287_p8), %s2126_s27, 4294967168  ;;  %s3213_s24 = sld [smem:[#allocation8_spill]]  ;;  %s3216_s1 = smov %s2442_s22 }
 0xc02   : > { %s3214_s0 = sld [smem:[#allocation6_spill]] }
 0xc03   : > { %s3215_s23 = sld [smem:[#allocation9_spill]] }
 0xc07   : > { %p30_p9 = scmp.ge.s32.totalorder %s3213_s24, 4  }
 0xc08   : > { %s3217_s22 = smov %s3214_s0 }
 0xc09   :  { %32 = sbr.rel (!%p30_p9) target bundleno = 10 (0xa), region = 142 }
 0xc0e   :  { %2132 = vsyncpa [#allocation3], 1 }
 0xc0f   :  { %2134 = vsyncpa [#allocation3 + $0x1], 1 }

</bundles_post_ra>
